<compile_context>
chip_gen: v6e
topology: v6e:2x2x1
jax: 0.10.0
libtpu: 0.0.40
codegen_flags: <defaults>
</compile_context>

<pallas_src>
import functools

import jax
import jax.numpy as jnp
from jax.experimental import pallas as pl
from jax.experimental.pallas import tpu as pltpu

# ----------------------------- config (synthetic, lane-dense "tiny roberta") -------------------
VOCAB = 64
PAD_ID = 1
MAX_POS = 72
HIDDEN = 128          # lane-dense (multiple of 128)
N_HEADS = 2
HEAD_DIM = HIDDEN // N_HEADS
INTERMEDIATE = 256    # lane-dense (multiple of 128)
N_LAYERS = 2
LN_EPS = 1e-5


def _vmem():
    # whole-array block resident in VMEM (shapes here are tiny; see TODO above for scaling)
    return pl.BlockSpec(memory_space=pltpu.MemorySpace.VMEM)


# ----------------------------------- in-kernel helpers -----------------------------------------
def _mm(a, w):
    """bf16-input MXU matmul with f32 accumulation."""
    return jnp.dot(a.astype(jnp.bfloat16), w.astype(jnp.bfloat16),
                   preferred_element_type=jnp.float32)


def _layernorm(x, g, b):
    mu = jnp.mean(x, axis=-1, keepdims=True)
    var = jnp.mean(jnp.square(x - mu), axis=-1, keepdims=True)
    return (x - mu) * jax.lax.rsqrt(var + LN_EPS) * g + b


# ----------------------------------- Pallas kernels --------------------------------------------
def _layernorm_kernel(x_ref, g_ref, b_ref, o_ref):
    """o = LayerNorm(x) over the last dim. x:(M,H) g,b:(1,H)."""
    o_ref[...] = _layernorm(x_ref[...], g_ref[...], b_ref[...]).astype(o_ref.dtype)


def _encoder_layer_kernel(x_ref, bias_ref,
                          wqkv_ref, bqkv_ref, wo_ref, bo_ref, ln1g_ref, ln1b_ref,
                          wi_ref, bi_ref, wf_ref, bf_ref, ln2g_ref, ln2b_ref,
                          o_ref, *, batch, seq, n_heads, head_dim, scale):
    """One full RoBERTa encoder layer, fused.

    x:(B*S,H)  bias:(B,S) additive key mask  wqkv:(H,3H)  wo:(H,H)  wi:(H,I)  wf:(I,H)
    """
    hidden = n_heads * head_dim
    x = x_ref[...]                                        # (B*S, H) f32

    # ---- fused QKV projection: one MXU pass, N = 3*H lanes ----
    qkv = _mm(x, wqkv_ref[...]) + bqkv_ref[...]           # (B*S, 3H) f32
    bias = bias_ref[...]                                  # (B, S) f32

    # ---- attention: per-(batch, head) 2-D matmuls (statically unrolled, tiny B*nH) ----
    ctx_rows = []
    for b in range(batch):
        r0 = b * seq
        bias_b = bias[b:b + 1, :]                         # (1, S)
        heads = []
        for h in range(n_heads):
            c0 = h * head_dim
            # pre-scale q (fewer VPU multiplies than scaling the (S,S) score matrix)
            q = qkv[r0:r0 + seq, c0:c0 + head_dim] * scale
            k = qkv[r0:r0 + seq, hidden + c0:hidden + c0 + head_dim]
            v = qkv[r0:r0 + seq, 2 * hidden + c0:2 * hidden + c0 + head_dim]
            # scores = q @ k^T, contracting head_dim of both operands (no explicit transpose)
            s = jax.lax.dot_general(
                q.astype(jnp.bfloat16), k.astype(jnp.bfloat16),
                (((1,), (1,)), ((), ())),
                preferred_element_type=jnp.float32)       # (S, S) f32
            s = s + bias_b                                # additive key mask (f32 path)
            # manual softmax: max-sub, exp (EUP), row-sum, approx reciprocal (EUP slot)
            m = jnp.max(s, axis=-1, keepdims=True)
            p = jnp.exp(s - m)
            denom = jnp.sum(p, axis=-1, keepdims=True)
            p = p * pl.reciprocal(denom, approx=True)
            heads.append(_mm(p, v))                       # (S, head_dim) f32
        ctx_rows.append(jnp.concatenate(heads, axis=-1))  # (S, H)
    ctx = jnp.concatenate(ctx_rows, axis=0)               # (B*S, H)

    # ---- output projection + residual + LayerNorm ----
    attn_out = _mm(ctx, wo_ref[...]) + bo_ref[...]
    y = _layernorm(attn_out + x, ln1g_ref[...], ln1b_ref[...])

    # ---- FFN + residual + LayerNorm ----
    inter = _mm(y, wi_ref[...]) + bi_ref[...]
    # TODO(synk): HF RoBERTa uses exact erf-GELU; tanh approximation kept (EUP-friendly).
    inter = jax.nn.gelu(inter, approximate=True)
    ffn = _mm(inter, wf_ref[...]) + bf_ref[...]
    o_ref[...] = _layernorm(ffn + y, ln2g_ref[...], ln2b_ref[...]).astype(o_ref.dtype)


def _pooler_regressor_kernel(cls_ref, pw_ref, pb_ref, rw_ref, rb_ref, o_ref):
    """Fused pooler + regressor head.

    cls:(B,H)  pw:(H,H)  pb:(1,H)  rw:(1,H) (regressor weight, row layout)  rb:(1,1)  o:(B,1).
    The N=1 regressor matmul is expressed as a VPU multiply + lane reduction.
    """
    pooled = jnp.tanh(_mm(cls_ref[...], pw_ref[...]) + pb_ref[...])       # (B, H) f32
    out = jnp.sum(pooled * rw_ref[...], axis=-1, keepdims=True) + rb_ref[...]
    o_ref[...] = out.astype(o_ref.dtype)


# ----------------------------------- kernel wrappers -------------------------------------------
def pallas_layernorm(x, g, b):
    return pl.pallas_call(
        _layernorm_kernel,
        out_shape=jax.ShapeDtypeStruct(x.shape, jnp.float32),
        in_specs=[_vmem(), _vmem(), _vmem()],
        out_specs=_vmem(),
    )(x, g, b)


def pallas_encoder_layer(lp, x, attn_bias, batch, seq):
    kernel = functools.partial(
        _encoder_layer_kernel, batch=batch, seq=seq,
        n_heads=N_HEADS, head_dim=HEAD_DIM, scale=1.0 / (HEAD_DIM ** 0.5))
    return pl.pallas_call(
        kernel,
        out_shape=jax.ShapeDtypeStruct(x.shape, jnp.float32),
        in_specs=[_vmem()] * 14,
        out_specs=_vmem(),
    )(x, attn_bias,
      lp["qkv_w"], lp["qkv_b"], lp["o_w"], lp["o_b"], lp["ln1_g"], lp["ln1_b"],
      lp["i_w"], lp["i_b"], lp["f_w"], lp["f_b"], lp["ln2_g"], lp["ln2_b"])


def pallas_pooler_regressor(cls, pw, pb, rw, rb):
    B = cls.shape[0]
    return pl.pallas_call(
        _pooler_regressor_kernel,
        out_shape=jax.ShapeDtypeStruct((B, 1), jnp.float32),
        in_specs=[_vmem()] * 5,
        out_specs=_vmem(),
    )(cls, pw, pb, rw, rb)


# ----------------------------------- parameter init --------------------------------------------
def init_params(key):
    def nrm(k, shape):
        return 0.02 * jax.random.normal(k, shape, dtype=jnp.float32)

    keys = iter(jax.random.split(key, 8 + 8 * N_LAYERS))
    p = {
        "word_emb": nrm(next(keys), (VOCAB, HIDDEN)),
        "pos_emb": nrm(next(keys), (MAX_POS, HIDDEN)),
        "type_emb": nrm(next(keys), (1, HIDDEN)),
        "emb_ln_g": jnp.ones((1, HIDDEN), jnp.float32),
        "emb_ln_b": jnp.zeros((1, HIDDEN), jnp.float32),
        "pool_w": nrm(next(keys), (HIDDEN, HIDDEN)),
        "pool_b": jnp.zeros((1, HIDDEN), jnp.float32),
        "reg_w": nrm(next(keys), (1, HIDDEN)),     # stored row-major for in-kernel lane reduce
        "reg_b": jnp.zeros((1, 1), jnp.float32),
        "layers": [],
    }
    for _ in range(N_LAYERS):
        p["layers"].append({
            # fused QKV weight: [Wq | Wk | Wv] along the output (lane) axis
            "qkv_w": nrm(next(keys), (HIDDEN, 3 * HIDDEN)),
            "qkv_b": jnp.zeros((1, 3 * HIDDEN), jnp.float32),
            "o_w": nrm(next(keys), (HIDDEN, HIDDEN)), "o_b": jnp.zeros((1, HIDDEN), jnp.float32),
            "ln1_g": jnp.ones((1, HIDDEN), jnp.float32), "ln1_b": jnp.zeros((1, HIDDEN), jnp.float32),
            "i_w": nrm(next(keys), (HIDDEN, INTERMEDIATE)),
            "i_b": jnp.zeros((1, INTERMEDIATE), jnp.float32),
            "f_w": nrm(next(keys), (INTERMEDIATE, HIDDEN)),
            "f_b": jnp.zeros((1, HIDDEN), jnp.float32),
            "ln2_g": jnp.ones((1, HIDDEN), jnp.float32), "ln2_b": jnp.zeros((1, HIDDEN), jnp.float32),
        })
    return p


# ----------------------------------- model forward ---------------------------------------------
def roberta_regressor_forward(params, input_ids, attention_mask):
    B, S = input_ids.shape

    # -- embeddings (gathers / cumsum position ids are plain-JAX glue) --
    tok_mask = (input_ids != PAD_ID).astype(jnp.int32)
    position_ids = jnp.cumsum(tok_mask, axis=1) * tok_mask + PAD_ID      # RoBERTa position-id rule
    emb = (params["word_emb"][input_ids]
           + params["pos_emb"][position_ids]
           + params["type_emb"][0][None, None, :])
    x = pallas_layernorm(emb.reshape(B * S, HIDDEN),
                         params["emb_ln_g"], params["emb_ln_b"])         # (B*S, H)

    # additive attention bias: 0 where attended, large-negative where masked (kept in f32)
    attn_bias = (attention_mask.astype(jnp.float32) - 1.0) * 1e9         # (B, S)

    # -- encoder: one fused Pallas kernel per layer, activations stay (B*S, H) between calls --
    for lp in params["layers"]:
        x = pallas_encoder_layer(lp, x, attn_bias, B, S)

    # -- pooler tanh(Linear(h[:,0])) + Dropout(eval => identity) + Linear(H,1), fused --
    cls = x.reshape(B, S, HIDDEN)[:, 0, :]                               # (B, H)
    out = pallas_pooler_regressor(cls, params["pool_w"], params["pool_b"],
                                  params["reg_w"], params["reg_b"])      # (B, 1)
    return out


# --------------------------------------- main ---------------------------------------------------
if __name__ == "__main__":
    key = jax.random.PRNGKey(0)
    pkey, ikey = jax.random.split(key)
    params = init_params(pkey)

    B, S = 2, 8
    input_ids = jax.random.randint(ikey, (B, S), minval=3, maxval=VOCAB, dtype=jnp.int32)
    attention_mask = jnp.ones((B, S), jnp.int32)
    # mask out last two tokens of the second sequence (and set them to <pad>)
    attention_mask = attention_mask.at[1, -2:].set(0)
    input_ids = input_ids.at[1, -2:].set(PAD_ID)

    fwd = jax.jit(roberta_regressor_forward)
    out = fwd(params, input_ids, attention_mask)
    jax.block_until_ready(out)
    assert out.shape == (B, 1) and out.dtype == jnp.float32
    print("KERNEL_OK")
</pallas_src>

<mosaic_0001>
module attributes {stable_mosaic.version = 11 : i64} {
  func.func @_layernorm_kernel(%arg0: memref<16x128xf32, #tpu.memory_space<vmem>>, %arg1: memref<1x128xf32, #tpu.memory_space<vmem>>, %arg2: memref<1x128xf32, #tpu.memory_space<vmem>>, %arg3: memref<16x128xf32, #tpu.memory_space<vmem>>) attributes {dimension_semantics = [], scalar_prefetch = 0 : i64, scratch_operands = 0 : i64, tpu.core_type = #tpu.core_type<tc>} {
    %c0 = arith.constant 0 : index
    %c0_0 = arith.constant 0 : index
    %0 = vector.load %arg0[%c0, %c0_0] : memref<16x128xf32, #tpu.memory_space<vmem>>, vector<16x128xf32>
    %c0_1 = arith.constant 0 : index
    %c0_2 = arith.constant 0 : index
    %1 = vector.load %arg1[%c0_1, %c0_2] : memref<1x128xf32, #tpu.memory_space<vmem>>, vector<1x128xf32>
    %c0_3 = arith.constant 0 : index
    %c0_4 = arith.constant 0 : index
    %2 = vector.load %arg2[%c0_3, %c0_4] : memref<1x128xf32, #tpu.memory_space<vmem>>, vector<1x128xf32>
    %cst = arith.constant dense<0.000000e+00> : vector<16xf32>
    %3 = vector.multi_reduction <add>, %0, %cst [1] : vector<16x128xf32> to vector<16xf32>
    %4 = vector.shape_cast %3 : vector<16xf32> to vector<16x1xf32>
    %cst_5 = arith.constant 1.280000e+02 : f32
    %5 = vector.broadcast %cst_5 : f32 to vector<16x1xf32>
    %6 = arith.divf %4, %5 : vector<16x1xf32>
    %7 = vector.broadcast %6 : vector<16x1xf32> to vector<16x128xf32>
    %8 = arith.subf %0, %7 : vector<16x128xf32>
    %9 = arith.mulf %8, %8 : vector<16x128xf32>
    %cst_6 = arith.constant dense<0.000000e+00> : vector<16xf32>
    %10 = vector.multi_reduction <add>, %9, %cst_6 [1] : vector<16x128xf32> to vector<16xf32>
    %11 = vector.shape_cast %10 : vector<16xf32> to vector<16x1xf32>
    %cst_7 = arith.constant 1.280000e+02 : f32
    %12 = vector.broadcast %cst_7 : f32 to vector<16x1xf32>
    %13 = arith.divf %11, %12 : vector<16x1xf32>
    %14 = vector.broadcast %6 : vector<16x1xf32> to vector<16x128xf32>
    %15 = arith.subf %0, %14 : vector<16x128xf32>
    %cst_8 = arith.constant 9.99999974E-6 : f32
    %16 = vector.broadcast %cst_8 : f32 to vector<16x1xf32>
    %17 = arith.addf %13, %16 : vector<16x1xf32>
    %18 = math.rsqrt %17 : vector<16x1xf32>
    %19 = vector.broadcast %18 : vector<16x1xf32> to vector<16x128xf32>
    %20 = arith.mulf %15, %19 : vector<16x128xf32>
    %21 = vector.broadcast %1 : vector<1x128xf32> to vector<16x128xf32>
    %22 = arith.mulf %20, %21 : vector<16x128xf32>
    %23 = vector.broadcast %2 : vector<1x128xf32> to vector<16x128xf32>
    %24 = arith.addf %22, %23 : vector<16x128xf32>
    %c0_9 = arith.constant 0 : index
    %c0_10 = arith.constant 0 : index
    %25 = vector.load %arg3[%c0_9, %c0_10] : memref<16x128xf32, #tpu.memory_space<vmem>>, vector<16x128xf32>
    tpu.vector_store %arg3[%c0_9, %c0_10], %24 {strides = array<i32>} : memref<16x128xf32, #tpu.memory_space<vmem>>, vector<16x128xf32>,
    return
  }
}

module attributes {stable_mosaic.version = 11 : i64} {
  func.func @_encoder_layer_kernel(%arg0: memref<16x128xf32, #tpu.memory_space<vmem>>, %arg1: memref<2x8xf32, #tpu.memory_space<vmem>>, %arg2: memref<128x384xf32, #tpu.memory_space<vmem>>, %arg3: memref<1x384xf32, #tpu.memory_space<vmem>>, %arg4: memref<128x128xf32, #tpu.memory_space<vmem>>, %arg5: memref<1x128xf32, #tpu.memory_space<vmem>>, %arg6: memref<1x128xf32, #tpu.memory_space<vmem>>, %arg7: memref<1x128xf32, #tpu.memory_space<vmem>>, %arg8: memref<128x256xf32, #tpu.memory_space<vmem>>, %arg9: memref<1x256xf32, #tpu.memory_space<vmem>>, %arg10: memref<256x128xf32, #tpu.memory_space<vmem>>, %arg11: memref<1x128xf32, #tpu.memory_space<vmem>>, %arg12: memref<1x128xf32, #tpu.memory_space<vmem>>, %arg13: memref<1x128xf32, #tpu.memory_space<vmem>>, %arg14: memref<16x128xf32, #tpu.memory_space<vmem>>) attributes {dimension_semantics = [], scalar_prefetch = 0 : i64, scratch_operands = 0 : i64, tpu.core_type = #tpu.core_type<tc>} {
    %c0 = arith.constant 0 : index
    %c0_0 = arith.constant 0 : index
    %0 = vector.load %arg0[%c0, %c0_0] : memref<16x128xf32, #tpu.memory_space<vmem>>, vector<16x128xf32>
    %c0_1 = arith.constant 0 : index
    %c0_2 = arith.constant 0 : index
    %1 = vector.load %arg2[%c0_1, %c0_2] : memref<128x384xf32, #tpu.memory_space<vmem>>, vector<128x384xf32>
    %2 = arith.truncf %0 : vector<16x128xf32> to vector<16x128xbf16>
    %3 = arith.truncf %1 : vector<128x384xf32> to vector<128x384xbf16>
    %cst = arith.constant dense<0.000000e+00> : vector<16x384xf32>
    %4 = tpu.matmul %2, %3, %cst {dimension_numbers = #tpu.dot_dimension_numbers<[1], [0], [0], [1], [0, 0, 1, 1], [], []>} : vector<16x128xbf16>, vector<128x384xbf16>, vector<16x384xf32> -> vector<16x384xf32>
    %c0_3 = arith.constant 0 : index
    %c0_4 = arith.constant 0 : index
    %5 = vector.load %arg3[%c0_3, %c0_4] : memref<1x384xf32, #tpu.memory_space<vmem>>, vector<1x384xf32>
    %6 = vector.broadcast %5 : vector<1x384xf32> to vector<16x384xf32>
    %7 = arith.addf %4, %6 : vector<16x384xf32>
    %c0_5 = arith.constant 0 : index
    %c0_6 = arith.constant 0 : index
    %8 = vector.load %arg1[%c0_5, %c0_6] : memref<2x8xf32, #tpu.memory_space<vmem>>, vector<2x8xf32>
    %9 = vector.extract_strided_slice %8 {offsets = [0, 0], sizes = [1, 8], strides = [1, 1]} : vector<2x8xf32> to vector<1x8xf32>
    %10 = vector.extract_strided_slice %7 {offsets = [0, 0], sizes = [8, 64], strides = [1, 1]} : vector<16x384xf32> to vector<8x64xf32>
    %cst_7 = arith.constant 1.250000e-01 : f32
    %11 = vector.broadcast %cst_7 : f32 to vector<8x64xf32>
    %12 = arith.mulf %10, %11 : vector<8x64xf32>
    %13 = vector.extract_strided_slice %7 {offsets = [0, 128], sizes = [8, 64], strides = [1, 1]} : vector<16x384xf32> to vector<8x64xf32>
    %14 = vector.extract_strided_slice %7 {offsets = [0, 256], sizes = [8, 64], strides = [1, 1]} : vector<16x384xf32> to vector<8x64xf32>
    %15 = arith.truncf %12 : vector<8x64xf32> to vector<8x64xbf16>
    %16 = arith.truncf %13 : vector<8x64xf32> to vector<8x64xbf16>
    %cst_8 = arith.constant dense<0.000000e+00> : vector<8x8xf32>
    %17 = tpu.matmul %15, %16, %cst_8 {dimension_numbers = #tpu.dot_dimension_numbers<[1], [1], [0], [0], [0, 0, 1, 0], [], []>} : vector<8x64xbf16>, vector<8x64xbf16>, vector<8x8xf32> -> vector<8x8xf32>
    %18 = vector.broadcast %9 : vector<1x8xf32> to vector<8x8xf32>
    %19 = arith.addf %17, %18 : vector<8x8xf32>
    %cst_9 = arith.constant dense<0xFF800000> : vector<8xf32>
    %20 = vector.multi_reduction <maximumf>, %19, %cst_9 [1] : vector<8x8xf32> to vector<8xf32>
    %21 = vector.shape_cast %20 : vector<8xf32> to vector<8x1xf32>
    %22 = vector.broadcast %21 : vector<8x1xf32> to vector<8x8xf32>
    %23 = arith.subf %19, %22 : vector<8x8xf32>
    %24 = math.exp %23 : vector<8x8xf32>
    %cst_10 = arith.constant dense<0.000000e+00> : vector<8xf32>
    %25 = vector.multi_reduction <add>, %24, %cst_10 [1] : vector<8x8xf32> to vector<8xf32>
    %26 = vector.shape_cast %25 : vector<8xf32> to vector<8x1xf32>
    %27 = tpu.reciprocal %26 {approx = true} : vector<8x1xf32> -> vector<8x1xf32>
    %28 = vector.broadcast %27 : vector<8x1xf32> to vector<8x8xf32>
    %29 = arith.mulf %24, %28 : vector<8x8xf32>
    %30 = arith.truncf %29 : vector<8x8xf32> to vector<8x8xbf16>
    %31 = arith.truncf %14 : vector<8x64xf32> to vector<8x64xbf16>
    %cst_11 = arith.constant dense<0.000000e+00> : vector<8x64xf32>
    %32 = tpu.matmul %30, %31, %cst_11 {dimension_numbers = #tpu.dot_dimension_numbers<[1], [0], [0], [1], [0, 0, 1, 1], [], []>} : vector<8x8xbf16>, vector<8x64xbf16>, vector<8x64xf32> -> vector<8x64xf32>
    %33 = vector.extract_strided_slice %7 {offsets = [0, 64], sizes = [8, 64], strides = [1, 1]} : vector<16x384xf32> to vector<8x64xf32>
    %cst_12 = arith.constant 1.250000e-01 : f32
    %34 = vector.broadcast %cst_12 : f32 to vector<8x64xf32>
    %35 = arith.mulf %33, %34 : vector<8x64xf32>
    %36 = vector.extract_strided_slice %7 {offsets = [0, 192], sizes = [8, 64], strides = [1, 1]} : vector<16x384xf32> to vector<8x64xf32>
    %37 = vector.extract_strided_slice %7 {offsets = [0, 320], sizes = [8, 64], strides = [1, 1]} : vector<16x384xf32> to vector<8x64xf32>
    %38 = arith.truncf %35 : vector<8x64xf32> to vector<8x64xbf16>
    %39 = arith.truncf %36 : vector<8x64xf32> to vector<8x64xbf16>
    %cst_13 = arith.constant dense<0.000000e+00> : vector<8x8xf32>
    %40 = tpu.matmul %38, %39, %cst_13 {dimension_numbers = #tpu.dot_dimension_numbers<[1], [1], [0], [0], [0, 0, 1, 0], [], []>} : vector<8x64xbf16>, vector<8x64xbf16>, vector<8x8xf32> -> vector<8x8xf32>
    %41 = vector.broadcast %9 : vector<1x8xf32> to vector<8x8xf32>
    %42 = arith.addf %40, %41 : vector<8x8xf32>
    %cst_14 = arith.constant dense<0xFF800000> : vector<8xf32>
    %43 = vector.multi_reduction <maximumf>, %42, %cst_14 [1] : vector<8x8xf32> to vector<8xf32>
    %44 = vector.shape_cast %43 : vector<8xf32> to vector<8x1xf32>
    %45 = vector.broadcast %44 : vector<8x1xf32> to vector<8x8xf32>
    %46 = arith.subf %42, %45 : vector<8x8xf32>
    %47 = math.exp %46 : vector<8x8xf32>
    %cst_15 = arith.constant dense<0.000000e+00> : vector<8xf32>
    %48 = vector.multi_reduction <add>, %47, %cst_15 [1] : vector<8x8xf32> to vector<8xf32>
    %49 = vector.shape_cast %48 : vector<8xf32> to vector<8x1xf32>
    %50 = tpu.reciprocal %49 {approx = true} : vector<8x1xf32> -> vector<8x1xf32>
    %51 = vector.broadcast %50 : vector<8x1xf32> to vector<8x8xf32>
    %52 = arith.mulf %47, %51 : vector<8x8xf32>
    %53 = arith.truncf %52 : vector<8x8xf32> to vector<8x8xbf16>
    %54 = arith.truncf %37 : vector<8x64xf32> to vector<8x64xbf16>
    %cst_16 = arith.constant dense<0.000000e+00> : vector<8x64xf32>
    %55 = tpu.matmul %53, %54, %cst_16 {dimension_numbers = #tpu.dot_dimension_numbers<[1], [0], [0], [1], [0, 0, 1, 1], [], []>} : vector<8x8xbf16>, vector<8x64xbf16>, vector<8x64xf32> -> vector<8x64xf32>
    %56 = tpu.concatenate %32, %55 in 1 : vector<8x64xf32>, vector<8x64xf32> -> vector<8x128xf32>
    %57 = vector.extract_strided_slice %8 {offsets = [1, 0], sizes = [1, 8], strides = [1, 1]} : vector<2x8xf32> to vector<1x8xf32>
    %58 = vector.extract_strided_slice %7 {offsets = [8, 0], sizes = [8, 64], strides = [1, 1]} : vector<16x384xf32> to vector<8x64xf32>
    %cst_17 = arith.constant 1.250000e-01 : f32
    %59 = vector.broadcast %cst_17 : f32 to vector<8x64xf32>
    %60 = arith.mulf %58, %59 : vector<8x64xf32>
    %61 = vector.extract_strided_slice %7 {offsets = [8, 128], sizes = [8, 64], strides = [1, 1]} : vector<16x384xf32> to vector<8x64xf32>
    %62 = vector.extract_strided_slice %7 {offsets = [8, 256], sizes = [8, 64], strides = [1, 1]} : vector<16x384xf32> to vector<8x64xf32>
    %63 = arith.truncf %60 : vector<8x64xf32> to vector<8x64xbf16>
    %64 = arith.truncf %61 : vector<8x64xf32> to vector<8x64xbf16>
    %cst_18 = arith.constant dense<0.000000e+00> : vector<8x8xf32>
    %65 = tpu.matmul %63, %64, %cst_18 {dimension_numbers = #tpu.dot_dimension_numbers<[1], [1], [0], [0], [0, 0, 1, 0], [], []>} : vector<8x64xbf16>, vector<8x64xbf16>, vector<8x8xf32> -> vector<8x8xf32>
    %66 = vector.broadcast %57 : vector<1x8xf32> to vector<8x8xf32>
    %67 = arith.addf %65, %66 : vector<8x8xf32>
    %cst_19 = arith.constant dense<0xFF800000> : vector<8xf32>
    %68 = vector.multi_reduction <maximumf>, %67, %cst_19 [1] : vector<8x8xf32> to vector<8xf32>
    %69 = vector.shape_cast %68 : vector<8xf32> to vector<8x1xf32>
    %70 = vector.broadcast %69 : vector<8x1xf32> to vector<8x8xf32>
    %71 = arith.subf %67, %70 : vector<8x8xf32>
    %72 = math.exp %71 : vector<8x8xf32>
    %cst_20 = arith.constant dense<0.000000e+00> : vector<8xf32>
    %73 = vector.multi_reduction <add>, %72, %cst_20 [1] : vector<8x8xf32> to vector<8xf32>
    %74 = vector.shape_cast %73 : vector<8xf32> to vector<8x1xf32>
    %75 = tpu.reciprocal %74 {approx = true} : vector<8x1xf32> -> vector<8x1xf32>
    %76 = vector.broadcast %75 : vector<8x1xf32> to vector<8x8xf32>
    %77 = arith.mulf %72, %76 : vector<8x8xf32>
    %78 = arith.truncf %77 : vector<8x8xf32> to vector<8x8xbf16>
    %79 = arith.truncf %62 : vector<8x64xf32> to vector<8x64xbf16>
    %cst_21 = arith.constant dense<0.000000e+00> : vector<8x64xf32>
    %80 = tpu.matmul %78, %79, %cst_21 {dimension_numbers = #tpu.dot_dimension_numbers<[1], [0], [0], [1], [0, 0, 1, 1], [], []>} : vector<8x8xbf16>, vector<8x64xbf16>, vector<8x64xf32> -> vector<8x64xf32>
    %81 = vector.extract_strided_slice %7 {offsets = [8, 64], sizes = [8, 64], strides = [1, 1]} : vector<16x384xf32> to vector<8x64xf32>
    %cst_22 = arith.constant 1.250000e-01 : f32
    %82 = vector.broadcast %cst_22 : f32 to vector<8x64xf32>
    %83 = arith.mulf %81, %82 : vector<8x64xf32>
    %84 = vector.extract_strided_slice %7 {offsets = [8, 192], sizes = [8, 64], strides = [1, 1]} : vector<16x384xf32> to vector<8x64xf32>
    %85 = vector.extract_strided_slice %7 {offsets = [8, 320], sizes = [8, 64], strides = [1, 1]} : vector<16x384xf32> to vector<8x64xf32>
    %86 = arith.truncf %83 : vector<8x64xf32> to vector<8x64xbf16>
    %87 = arith.truncf %84 : vector<8x64xf32> to vector<8x64xbf16>
    %cst_23 = arith.constant dense<0.000000e+00> : vector<8x8xf32>
    %88 = tpu.matmul %86, %87, %cst_23 {dimension_numbers = #tpu.dot_dimension_numbers<[1], [1], [0], [0], [0, 0, 1, 0], [], []>} : vector<8x64xbf16>, vector<8x64xbf16>, vector<8x8xf32> -> vector<8x8xf32>
    %89 = vector.broadcast %57 : vector<1x8xf32> to vector<8x8xf32>
    %90 = arith.addf %88, %89 : vector<8x8xf32>
    %cst_24 = arith.constant dense<0xFF800000> : vector<8xf32>
    %91 = vector.multi_reduction <maximumf>, %90, %cst_24 [1] : vector<8x8xf32> to vector<8xf32>
    %92 = vector.shape_cast %91 : vector<8xf32> to vector<8x1xf32>
    %93 = vector.broadcast %92 : vector<8x1xf32> to vector<8x8xf32>
    %94 = arith.subf %90, %93 : vector<8x8xf32>
    %95 = math.exp %94 : vector<8x8xf32>
    %cst_25 = arith.constant dense<0.000000e+00> : vector<8xf32>
    %96 = vector.multi_reduction <add>, %95, %cst_25 [1] : vector<8x8xf32> to vector<8xf32>
    %97 = vector.shape_cast %96 : vector<8xf32> to vector<8x1xf32>
    %98 = tpu.reciprocal %97 {approx = true} : vector<8x1xf32> -> vector<8x1xf32>
    %99 = vector.broadcast %98 : vector<8x1xf32> to vector<8x8xf32>
    %100 = arith.mulf %95, %99 : vector<8x8xf32>
    %101 = arith.truncf %100 : vector<8x8xf32> to vector<8x8xbf16>
    %102 = arith.truncf %85 : vector<8x64xf32> to vector<8x64xbf16>
    %cst_26 = arith.constant dense<0.000000e+00> : vector<8x64xf32>
    %103 = tpu.matmul %101, %102, %cst_26 {dimension_numbers = #tpu.dot_dimension_numbers<[1], [0], [0], [1], [0, 0, 1, 1], [], []>} : vector<8x8xbf16>, vector<8x64xbf16>, vector<8x64xf32> -> vector<8x64xf32>
    %104 = tpu.concatenate %80, %103 in 1 : vector<8x64xf32>, vector<8x64xf32> -> vector<8x128xf32>
    %105 = tpu.concatenate %56, %104 in 0 : vector<8x128xf32>, vector<8x128xf32> -> vector<16x128xf32>
    %c0_27 = arith.constant 0 : index
    %c0_28 = arith.constant 0 : index
    %106 = vector.load %arg4[%c0_27, %c0_28] : memref<128x128xf32, #tpu.memory_space<vmem>>, vector<128x128xf32>
    %107 = arith.truncf %105 : vector<16x128xf32> to vector<16x128xbf16>
    %108 = arith.truncf %106 : vector<128x128xf32> to vector<128x128xbf16>
    %cst_29 = arith.constant dense<0.000000e+00> : vector<16x128xf32>
    %109 = tpu.matmul %107, %108, %cst_29 {dimension_numbers = #tpu.dot_dimension_numbers<[1], [0], [0], [1], [0, 0, 1, 1], [], []>} : vector<16x128xbf16>, vector<128x128xbf16>, vector<16x128xf32> -> vector<16x128xf32>
    %c0_30 = arith.constant 0 : index
    %c0_31 = arith.constant 0 : index
    %110 = vector.load %arg5[%c0_30, %c0_31] : memref<1x128xf32, #tpu.memory_space<vmem>>, vector<1x128xf32>
    %111 = vector.broadcast %110 : vector<1x128xf32> to vector<16x128xf32>
    %112 = arith.addf %109, %111 : vector<16x128xf32>
    %113 = arith.addf %112, %0 : vector<16x128xf32>
    %c0_32 = arith.constant 0 : index
    %c0_33 = arith.constant 0 : index
    %114 = vector.load %arg6[%c0_32, %c0_33] : memref<1x128xf32, #tpu.memory_space<vmem>>, vector<1x128xf32>
    %c0_34 = arith.constant 0 : index
    %c0_35 = arith.constant 0 : index
    %115 = vector.load %arg7[%c0_34, %c0_35] : memref<1x128xf32, #tpu.memory_space<vmem>>, vector<1x128xf32>
    %cst_36 = arith.constant dense<0.000000e+00> : vector<16xf32>
    %116 = vector.multi_reduction <add>, %113, %cst_36 [1] : vector<16x128xf32> to vector<16xf32>
    %117 = vector.shape_cast %116 : vector<16xf32> to vector<16x1xf32>
    %cst_37 = arith.constant 1.280000e+02 : f32
    %118 = vector.broadcast %cst_37 : f32 to vector<16x1xf32>
    %119 = arith.divf %117, %118 : vector<16x1xf32>
    %120 = vector.broadcast %119 : vector<16x1xf32> to vector<16x128xf32>
    %121 = arith.subf %113, %120 : vector<16x128xf32>
    %122 = arith.mulf %121, %121 : vector<16x128xf32>
    %cst_38 = arith.constant dense<0.000000e+00> : vector<16xf32>
    %123 = vector.multi_reduction <add>, %122, %cst_38 [1] : vector<16x128xf32> to vector<16xf32>
    %124 = vector.shape_cast %123 : vector<16xf32> to vector<16x1xf32>
    %cst_39 = arith.constant 1.280000e+02 : f32
    %125 = vector.broadcast %cst_39 : f32 to vector<16x1xf32>
    %126 = arith.divf %124, %125 : vector<16x1xf32>
    %127 = vector.broadcast %119 : vector<16x1xf32> to vector<16x128xf32>
    %128 = arith.subf %113, %127 : vector<16x128xf32>
    %cst_40 = arith.constant 9.99999974E-6 : f32
    %129 = vector.broadcast %cst_40 : f32 to vector<16x1xf32>
    %130 = arith.addf %126, %129 : vector<16x1xf32>
    %131 = math.rsqrt %130 : vector<16x1xf32>
    %132 = vector.broadcast %131 : vector<16x1xf32> to vector<16x128xf32>
    %133 = arith.mulf %128, %132 : vector<16x128xf32>
    %134 = vector.broadcast %114 : vector<1x128xf32> to vector<16x128xf32>
    %135 = arith.mulf %133, %134 : vector<16x128xf32>
    %136 = vector.broadcast %115 : vector<1x128xf32> to vector<16x128xf32>
    %137 = arith.addf %135, %136 : vector<16x128xf32>
    %c0_41 = arith.constant 0 : index
    %c0_42 = arith.constant 0 : index
    %138 = vector.load %arg8[%c0_41, %c0_42] : memref<128x256xf32, #tpu.memory_space<vmem>>, vector<128x256xf32>
    %139 = arith.truncf %137 : vector<16x128xf32> to vector<16x128xbf16>
    %140 = arith.truncf %138 : vector<128x256xf32> to vector<128x256xbf16>
    %cst_43 = arith.constant dense<0.000000e+00> : vector<16x256xf32>
    %141 = tpu.matmul %139, %140, %cst_43 {dimension_numbers = #tpu.dot_dimension_numbers<[1], [0], [0], [1], [0, 0, 1, 1], [], []>} : vector<16x128xbf16>, vector<128x256xbf16>, vector<16x256xf32> -> vector<16x256xf32>
    %c0_44 = arith.constant 0 : index
    %c0_45 = arith.constant 0 : index
    %142 = vector.load %arg9[%c0_44, %c0_45] : memref<1x256xf32, #tpu.memory_space<vmem>>, vector<1x256xf32>
    %143 = vector.broadcast %142 : vector<1x256xf32> to vector<16x256xf32>
    %144 = arith.addf %141, %143 : vector<16x256xf32>
    %145 = arith.mulf %144, %144 : vector<16x256xf32>
    %146 = arith.mulf %144, %145 : vector<16x256xf32>
    %cst_46 = arith.constant 4.471500e-02 : f32
    %147 = vector.broadcast %cst_46 : f32 to vector<16x256xf32>
    %148 = arith.mulf %147, %146 : vector<16x256xf32>
    %149 = arith.addf %144, %148 : vector<16x256xf32>
    %cst_47 = arith.constant 0.797884583 : f32
    %150 = vector.broadcast %cst_47 : f32 to vector<16x256xf32>
    %151 = arith.mulf %150, %149 : vector<16x256xf32>
    %152 = math.tanh %151 : vector<16x256xf32>
    %cst_48 = arith.constant 1.000000e+00 : f32
    %153 = vector.broadcast %cst_48 : f32 to vector<16x256xf32>
    %154 = arith.addf %153, %152 : vector<16x256xf32>
    %cst_49 = arith.constant 5.000000e-01 : f32
    %155 = vector.broadcast %cst_49 : f32 to vector<16x256xf32>
    %156 = arith.mulf %155, %154 : vector<16x256xf32>
    %157 = arith.mulf %144, %156 : vector<16x256xf32>
    %c0_50 = arith.constant 0 : index
    %c0_51 = arith.constant 0 : index
    %158 = vector.load %arg10[%c0_50, %c0_51] : memref<256x128xf32, #tpu.memory_space<vmem>>, vector<256x128xf32>
    %159 = arith.truncf %157 : vector<16x256xf32> to vector<16x256xbf16>
    %160 = arith.truncf %158 : vector<256x128xf32> to vector<256x128xbf16>
    %cst_52 = arith.constant dense<0.000000e+00> : vector<16x128xf32>
    %161 = tpu.matmul %159, %160, %cst_52 {dimension_numbers = #tpu.dot_dimension_numbers<[1], [0], [0], [1], [0, 0, 1, 1], [], []>} : vector<16x256xbf16>, vector<256x128xbf16>, vector<16x128xf32> -> vector<16x128xf32>
    %c0_53 = arith.constant 0 : index
    %c0_54 = arith.constant 0 : index
    %162 = vector.load %arg11[%c0_53, %c0_54] : memref<1x128xf32, #tpu.memory_space<vmem>>, vector<1x128xf32>
    %163 = vector.broadcast %162 : vector<1x128xf32> to vector<16x128xf32>
    %164 = arith.addf %161, %163 : vector<16x128xf32>
    %165 = arith.addf %164, %137 : vector<16x128xf32>
    %c0_55 = arith.constant 0 : index
    %c0_56 = arith.constant 0 : index
    %166 = vector.load %arg12[%c0_55, %c0_56] : memref<1x128xf32, #tpu.memory_space<vmem>>, vector<1x128xf32>
    %c0_57 = arith.constant 0 : index
    %c0_58 = arith.constant 0 : index
    %167 = vector.load %arg13[%c0_57, %c0_58] : memref<1x128xf32, #tpu.memory_space<vmem>>, vector<1x128xf32>
    %cst_59 = arith.constant dense<0.000000e+00> : vector<16xf32>
    %168 = vector.multi_reduction <add>, %165, %cst_59 [1] : vector<16x128xf32> to vector<16xf32>
    %169 = vector.shape_cast %168 : vector<16xf32> to vector<16x1xf32>
    %cst_60 = arith.constant 1.280000e+02 : f32
    %170 = vector.broadcast %cst_60 : f32 to vector<16x1xf32>
    %171 = arith.divf %169, %170 : vector<16x1xf32>
    %172 = vector.broadcast %171 : vector<16x1xf32> to vector<16x128xf32>
    %173 = arith.subf %165, %172 : vector<16x128xf32>
    %174 = arith.mulf %173, %173 : vector<16x128xf32>
    %cst_61 = arith.constant dense<0.000000e+00> : vector<16xf32>
    %175 = vector.multi_reduction <add>, %174, %cst_61 [1] : vector<16x128xf32> to vector<16xf32>
    %176 = vector.shape_cast %175 : vector<16xf32> to vector<16x1xf32>
    %cst_62 = arith.constant 1.280000e+02 : f32
    %177 = vector.broadcast %cst_62 : f32 to vector<16x1xf32>
    %178 = arith.divf %176, %177 : vector<16x1xf32>
    %179 = vector.broadcast %171 : vector<16x1xf32> to vector<16x128xf32>
    %180 = arith.subf %165, %179 : vector<16x128xf32>
    %cst_63 = arith.constant 9.99999974E-6 : f32
    %181 = vector.broadcast %cst_63 : f32 to vector<16x1xf32>
    %182 = arith.addf %178, %181 : vector<16x1xf32>
    %183 = math.rsqrt %182 : vector<16x1xf32>
    %184 = vector.broadcast %183 : vector<16x1xf32> to vector<16x128xf32>
    %185 = arith.mulf %180, %184 : vector<16x128xf32>
    %186 = vector.broadcast %166 : vector<1x128xf32> to vector<16x128xf32>
    %187 = arith.mulf %185, %186 : vector<16x128xf32>
    %188 = vector.broadcast %167 : vector<1x128xf32> to vector<16x128xf32>
    %189 = arith.addf %187, %188 : vector<16x128xf32>
    %c0_64 = arith.constant 0 : index
    %c0_65 = arith.constant 0 : index
    %190 = vector.load %arg14[%c0_64, %c0_65] : memref<16x128xf32, #tpu.memory_space<vmem>>, vector<16x128xf32>
    tpu.vector_store %arg14[%c0_64, %c0_65], %189 {strides = array<i32>} : memref<16x128xf32, #tpu.memory_space<vmem>>, vector<16x128xf32>,
    return
  }
}

module attributes {stable_mosaic.version = 11 : i64} {
  func.func @_pooler_regressor_kernel(%arg0: memref<2x128xf32, #tpu.memory_space<vmem>>, %arg1: memref<128x128xf32, #tpu.memory_space<vmem>>, %arg2: memref<1x128xf32, #tpu.memory_space<vmem>>, %arg3: memref<1x128xf32, #tpu.memory_space<vmem>>, %arg4: memref<1x1xf32, #tpu.memory_space<vmem>>, %arg5: memref<2x1xf32, #tpu.memory_space<vmem>>) attributes {dimension_semantics = [], scalar_prefetch = 0 : i64, scratch_operands = 0 : i64, tpu.core_type = #tpu.core_type<tc>} {
    %c0 = arith.constant 0 : index
    %c0_0 = arith.constant 0 : index
    %0 = vector.load %arg0[%c0, %c0_0] : memref<2x128xf32, #tpu.memory_space<vmem>>, vector<2x128xf32>
    %c0_1 = arith.constant 0 : index
    %c0_2 = arith.constant 0 : index
    %1 = vector.load %arg1[%c0_1, %c0_2] : memref<128x128xf32, #tpu.memory_space<vmem>>, vector<128x128xf32>
    %2 = arith.truncf %0 : vector<2x128xf32> to vector<2x128xbf16>
    %3 = arith.truncf %1 : vector<128x128xf32> to vector<128x128xbf16>
    %cst = arith.constant dense<0.000000e+00> : vector<2x128xf32>
    %4 = tpu.matmul %2, %3, %cst {dimension_numbers = #tpu.dot_dimension_numbers<[1], [0], [0], [1], [0, 0, 1, 1], [], []>} : vector<2x128xbf16>, vector<128x128xbf16>, vector<2x128xf32> -> vector<2x128xf32>
    %c0_3 = arith.constant 0 : index
    %c0_4 = arith.constant 0 : index
    %5 = vector.load %arg2[%c0_3, %c0_4] : memref<1x128xf32, #tpu.memory_space<vmem>>, vector<1x128xf32>
    %6 = vector.broadcast %5 : vector<1x128xf32> to vector<2x128xf32>
    %7 = arith.addf %4, %6 : vector<2x128xf32>
    %8 = math.tanh %7 : vector<2x128xf32>
    %c0_5 = arith.constant 0 : index
    %c0_6 = arith.constant 0 : index
    %9 = vector.load %arg3[%c0_5, %c0_6] : memref<1x128xf32, #tpu.memory_space<vmem>>, vector<1x128xf32>
    %10 = vector.broadcast %9 : vector<1x128xf32> to vector<2x128xf32>
    %11 = arith.mulf %8, %10 : vector<2x128xf32>
    %cst_7 = arith.constant dense<0.000000e+00> : vector<2xf32>
    %12 = vector.multi_reduction <add>, %11, %cst_7 [1] : vector<2x128xf32> to vector<2xf32>
    %13 = vector.shape_cast %12 : vector<2xf32> to vector<2x1xf32>
    %c0_8 = arith.constant 0 : index
    %c0_9 = arith.constant 0 : index
    %14 = vector.load %arg4[%c0_8, %c0_9] : memref<1x1xf32, #tpu.memory_space<vmem>>, vector<1x1xf32>
    %15 = vector.broadcast %14 : vector<1x1xf32> to vector<2x1xf32>
    %16 = arith.addf %13, %15 : vector<2x1xf32>
    %c0_10 = arith.constant 0 : index
    %c0_11 = arith.constant 0 : index
    %17 = vector.load %arg5[%c0_10, %c0_11] : memref<2x1xf32, #tpu.memory_space<vmem>>, vector<2x1xf32>
    tpu.vector_store %arg5[%c0_10, %c0_11], %16 {strides = array<i32>} : memref<2x1xf32, #tpu.memory_space<vmem>>, vector<2x1xf32>,
    return
  }
}

module attributes {stable_mosaic.version = 11 : i64} {
  func.func @_encoder_layer_kernel(%arg0: memref<16x128xf32, #tpu.memory_space<vmem>>, %arg1: memref<2x8xf32, #tpu.memory_space<vmem>>, %arg2: memref<128x384xf32, #tpu.memory_space<vmem>>, %arg3: memref<1x384xf32, #tpu.memory_space<vmem>>, %arg4: memref<128x128xf32, #tpu.memory_space<vmem>>, %arg5: memref<1x128xf32, #tpu.memory_space<vmem>>, %arg6: memref<1x128xf32, #tpu.memory_space<vmem>>, %arg7: memref<1x128xf32, #tpu.memory_space<vmem>>, %arg8: memref<128x256xf32, #tpu.memory_space<vmem>>, %arg9: memref<1x256xf32, #tpu.memory_space<vmem>>, %arg10: memref<256x128xf32, #tpu.memory_space<vmem>>, %arg11: memref<1x128xf32, #tpu.memory_space<vmem>>, %arg12: memref<1x128xf32, #tpu.memory_space<vmem>>, %arg13: memref<1x128xf32, #tpu.memory_space<vmem>>, %arg14: memref<16x128xf32, #tpu.memory_space<vmem>>) attributes {dimension_semantics = [], scalar_prefetch = 0 : i64, scratch_operands = 0 : i64, tpu.core_type = #tpu.core_type<tc>} {
    %c0 = arith.constant 0 : index
    %c0_0 = arith.constant 0 : index
    %0 = vector.load %arg0[%c0, %c0_0] : memref<16x128xf32, #tpu.memory_space<vmem>>, vector<16x128xf32>
    %c0_1 = arith.constant 0 : index
    %c0_2 = arith.constant 0 : index
    %1 = vector.load %arg2[%c0_1, %c0_2] : memref<128x384xf32, #tpu.memory_space<vmem>>, vector<128x384xf32>
    %2 = arith.truncf %0 : vector<16x128xf32> to vector<16x128xbf16>
    %3 = arith.truncf %1 : vector<128x384xf32> to vector<128x384xbf16>
    %cst = arith.constant dense<0.000000e+00> : vector<16x384xf32>
    %4 = tpu.matmul %2, %3, %cst {dimension_numbers = #tpu.dot_dimension_numbers<[1], [0], [0], [1], [0, 0, 1, 1], [], []>} : vector<16x128xbf16>, vector<128x384xbf16>, vector<16x384xf32> -> vector<16x384xf32>
    %c0_3 = arith.constant 0 : index
    %c0_4 = arith.constant 0 : index
    %5 = vector.load %arg3[%c0_3, %c0_4] : memref<1x384xf32, #tpu.memory_space<vmem>>, vector<1x384xf32>
    %6 = vector.broadcast %5 : vector<1x384xf32> to vector<16x384xf32>
    %7 = arith.addf %4, %6 : vector<16x384xf32>
    %c0_5 = arith.constant 0 : index
    %c0_6 = arith.constant 0 : index
    %8 = vector.load %arg1[%c0_5, %c0_6] : memref<2x8xf32, #tpu.memory_space<vmem>>, vector<2x8xf32>
    %9 = vector.extract_strided_slice %8 {offsets = [0, 0], sizes = [1, 8], strides = [1, 1]} : vector<2x8xf32> to vector<1x8xf32>
    %10 = vector.extract_strided_slice %7 {offsets = [0, 0], sizes = [8, 64], strides = [1, 1]} : vector<16x384xf32> to vector<8x64xf32>
    %cst_7 = arith.constant 1.250000e-01 : f32
    %11 = vector.broadcast %cst_7 : f32 to vector<8x64xf32>
    %12 = arith.mulf %10, %11 : vector<8x64xf32>
    %13 = vector.extract_strided_slice %7 {offsets = [0, 128], sizes = [8, 64], strides = [1, 1]} : vector<16x384xf32> to vector<8x64xf32>
    %14 = vector.extract_strided_slice %7 {offsets = [0, 256], sizes = [8, 64], strides = [1, 1]} : vector<16x384xf32> to vector<8x64xf32>
    %15 = arith.truncf %12 : vector<8x64xf32> to vector<8x64xbf16>
    %16 = arith.truncf %13 : vector<8x64xf32> to vector<8x64xbf16>
    %cst_8 = arith.constant dense<0.000000e+00> : vector<8x8xf32>
    %17 = tpu.matmul %15, %16, %cst_8 {dimension_numbers = #tpu.dot_dimension_numbers<[1], [1], [0], [0], [0, 0, 1, 0], [], []>} : vector<8x64xbf16>, vector<8x64xbf16>, vector<8x8xf32> -> vector<8x8xf32>
    %18 = vector.broadcast %9 : vector<1x8xf32> to vector<8x8xf32>
    %19 = arith.addf %17, %18 : vector<8x8xf32>
    %cst_9 = arith.constant dense<0xFF800000> : vector<8xf32>
    %20 = vector.multi_reduction <maximumf>, %19, %cst_9 [1] : vector<8x8xf32> to vector<8xf32>
    %21 = vector.shape_cast %20 : vector<8xf32> to vector<8x1xf32>
    %22 = vector.broadcast %21 : vector<8x1xf32> to vector<8x8xf32>
    %23 = arith.subf %19, %22 : vector<8x8xf32>
    %24 = math.exp %23 : vector<8x8xf32>
    %cst_10 = arith.constant dense<0.000000e+00> : vector<8xf32>
    %25 = vector.multi_reduction <add>, %24, %cst_10 [1] : vector<8x8xf32> to vector<8xf32>
    %26 = vector.shape_cast %25 : vector<8xf32> to vector<8x1xf32>
    %27 = tpu.reciprocal %26 {approx = true} : vector<8x1xf32> -> vector<8x1xf32>
    %28 = vector.broadcast %27 : vector<8x1xf32> to vector<8x8xf32>
    %29 = arith.mulf %24, %28 : vector<8x8xf32>
    %30 = arith.truncf %29 : vector<8x8xf32> to vector<8x8xbf16>
    %31 = arith.truncf %14 : vector<8x64xf32> to vector<8x64xbf16>
    %cst_11 = arith.constant dense<0.000000e+00> : vector<8x64xf32>
    %32 = tpu.matmul %30, %31, %cst_11 {dimension_numbers = #tpu.dot_dimension_numbers<[1], [0], [0], [1], [0, 0, 1, 1], [], []>} : vector<8x8xbf16>, vector<8x64xbf16>, vector<8x64xf32> -> vector<8x64xf32>
    %33 = vector.extract_strided_slice %7 {offsets = [0, 64], sizes = [8, 64], strides = [1, 1]} : vector<16x384xf32> to vector<8x64xf32>
    %cst_12 = arith.constant 1.250000e-01 : f32
    %34 = vector.broadcast %cst_12 : f32 to vector<8x64xf32>
    %35 = arith.mulf %33, %34 : vector<8x64xf32>
    %36 = vector.extract_strided_slice %7 {offsets = [0, 192], sizes = [8, 64], strides = [1, 1]} : vector<16x384xf32> to vector<8x64xf32>
    %37 = vector.extract_strided_slice %7 {offsets = [0, 320], sizes = [8, 64], strides = [1, 1]} : vector<16x384xf32> to vector<8x64xf32>
    %38 = arith.truncf %35 : vector<8x64xf32> to vector<8x64xbf16>
    %39 = arith.truncf %36 : vector<8x64xf32> to vector<8x64xbf16>
    %cst_13 = arith.constant dense<0.000000e+00> : vector<8x8xf32>
    %40 = tpu.matmul %38, %39, %cst_13 {dimension_numbers = #tpu.dot_dimension_numbers<[1], [1], [0], [0], [0, 0, 1, 0], [], []>} : vector<8x64xbf16>, vector<8x64xbf16>, vector<8x8xf32> -> vector<8x8xf32>
    %41 = vector.broadcast %9 : vector<1x8xf32> to vector<8x8xf32>
    %42 = arith.addf %40, %41 : vector<8x8xf32>
    %cst_14 = arith.constant dense<0xFF800000> : vector<8xf32>
    %43 = vector.multi_reduction <maximumf>, %42, %cst_14 [1] : vector<8x8xf32> to vector<8xf32>
    %44 = vector.shape_cast %43 : vector<8xf32> to vector<8x1xf32>
    %45 = vector.broadcast %44 : vector<8x1xf32> to vector<8x8xf32>
    %46 = arith.subf %42, %45 : vector<8x8xf32>
    %47 = math.exp %46 : vector<8x8xf32>
    %cst_15 = arith.constant dense<0.000000e+00> : vector<8xf32>
    %48 = vector.multi_reduction <add>, %47, %cst_15 [1] : vector<8x8xf32> to vector<8xf32>
    %49 = vector.shape_cast %48 : vector<8xf32> to vector<8x1xf32>
    %50 = tpu.reciprocal %49 {approx = true} : vector<8x1xf32> -> vector<8x1xf32>
    %51 = vector.broadcast %50 : vector<8x1xf32> to vector<8x8xf32>
    %52 = arith.mulf %47, %51 : vector<8x8xf32>
    %53 = arith.truncf %52 : vector<8x8xf32> to vector<8x8xbf16>
    %54 = arith.truncf %37 : vector<8x64xf32> to vector<8x64xbf16>
    %cst_16 = arith.constant dense<0.000000e+00> : vector<8x64xf32>
    %55 = tpu.matmul %53, %54, %cst_16 {dimension_numbers = #tpu.dot_dimension_numbers<[1], [0], [0], [1], [0, 0, 1, 1], [], []>} : vector<8x8xbf16>, vector<8x64xbf16>, vector<8x64xf32> -> vector<8x64xf32>
    %56 = tpu.concatenate %32, %55 in 1 : vector<8x64xf32>, vector<8x64xf32> -> vector<8x128xf32>
    %57 = vector.extract_strided_slice %8 {offsets = [1, 0], sizes = [1, 8], strides = [1, 1]} : vector<2x8xf32> to vector<1x8xf32>
    %58 = vector.extract_strided_slice %7 {offsets = [8, 0], sizes = [8, 64], strides = [1, 1]} : vector<16x384xf32> to vector<8x64xf32>
    %cst_17 = arith.constant 1.250000e-01 : f32
    %59 = vector.broadcast %cst_17 : f32 to vector<8x64xf32>
    %60 = arith.mulf %58, %59 : vector<8x64xf32>
    %61 = vector.extract_strided_slice %7 {offsets = [8, 128], sizes = [8, 64], strides = [1, 1]} : vector<16x384xf32> to vector<8x64xf32>
    %62 = vector.extract_strided_slice %7 {offsets = [8, 256], sizes = [8, 64], strides = [1, 1]} : vector<16x384xf32> to vector<8x64xf32>
    %63 = arith.truncf %60 : vector<8x64xf32> to vector<8x64xbf16>
    %64 = arith.truncf %61 : vector<8x64xf32> to vector<8x64xbf16>
    %cst_18 = arith.constant dense<0.000000e+00> : vector<8x8xf32>
    %65 = tpu.matmul %63, %64, %cst_18 {dimension_numbers = #tpu.dot_dimension_numbers<[1], [1], [0], [0], [0, 0, 1, 0], [], []>} : vector<8x64xbf16>, vector<8x64xbf16>, vector<8x8xf32> -> vector<8x8xf32>
    %66 = vector.broadcast %57 : vector<1x8xf32> to vector<8x8xf32>
    %67 = arith.addf %65, %66 : vector<8x8xf32>
    %cst_19 = arith.constant dense<0xFF800000> : vector<8xf32>
    %68 = vector.multi_reduction <maximumf>, %67, %cst_19 [1] : vector<8x8xf32> to vector<8xf32>
    %69 = vector.shape_cast %68 : vector<8xf32> to vector<8x1xf32>
    %70 = vector.broadcast %69 : vector<8x1xf32> to vector<8x8xf32>
    %71 = arith.subf %67, %70 : vector<8x8xf32>
    %72 = math.exp %71 : vector<8x8xf32>
    %cst_20 = arith.constant dense<0.000000e+00> : vector<8xf32>
    %73 = vector.multi_reduction <add>, %72, %cst_20 [1] : vector<8x8xf32> to vector<8xf32>
    %74 = vector.shape_cast %73 : vector<8xf32> to vector<8x1xf32>
    %75 = tpu.reciprocal %74 {approx = true} : vector<8x1xf32> -> vector<8x1xf32>
    %76 = vector.broadcast %75 : vector<8x1xf32> to vector<8x8xf32>
    %77 = arith.mulf %72, %76 : vector<8x8xf32>
    %78 = arith.truncf %77 : vector<8x8xf32> to vector<8x8xbf16>
    %79 = arith.truncf %62 : vector<8x64xf32> to vector<8x64xbf16>
    %cst_21 = arith.constant dense<0.000000e+00> : vector<8x64xf32>
    %80 = tpu.matmul %78, %79, %cst_21 {dimension_numbers = #tpu.dot_dimension_numbers<[1], [0], [0], [1], [0, 0, 1, 1], [], []>} : vector<8x8xbf16>, vector<8x64xbf16>, vector<8x64xf32> -> vector<8x64xf32>
    %81 = vector.extract_strided_slice %7 {offsets = [8, 64], sizes = [8, 64], strides = [1, 1]} : vector<16x384xf32> to vector<8x64xf32>
    %cst_22 = arith.constant 1.250000e-01 : f32
    %82 = vector.broadcast %cst_22 : f32 to vector<8x64xf32>
    %83 = arith.mulf %81, %82 : vector<8x64xf32>
    %84 = vector.extract_strided_slice %7 {offsets = [8, 192], sizes = [8, 64], strides = [1, 1]} : vector<16x384xf32> to vector<8x64xf32>
    %85 = vector.extract_strided_slice %7 {offsets = [8, 320], sizes = [8, 64], strides = [1, 1]} : vector<16x384xf32> to vector<8x64xf32>
    %86 = arith.truncf %83 : vector<8x64xf32> to vector<8x64xbf16>
    %87 = arith.truncf %84 : vector<8x64xf32> to vector<8x64xbf16>
    %cst_23 = arith.constant dense<0.000000e+00> : vector<8x8xf32>
    %88 = tpu.matmul %86, %87, %cst_23 {dimension_numbers = #tpu.dot_dimension_numbers<[1], [1], [0], [0], [0, 0, 1, 0], [], []>} : vector<8x64xbf16>, vector<8x64xbf16>, vector<8x8xf32> -> vector<8x8xf32>
    %89 = vector.broadcast %57 : vector<1x8xf32> to vector<8x8xf32>
    %90 = arith.addf %88, %89 : vector<8x8xf32>
    %cst_24 = arith.constant dense<0xFF800000> : vector<8xf32>
    %91 = vector.multi_reduction <maximumf>, %90, %cst_24 [1] : vector<8x8xf32> to vector<8xf32>
    %92 = vector.shape_cast %91 : vector<8xf32> to vector<8x1xf32>
    %93 = vector.broadcast %92 : vector<8x1xf32> to vector<8x8xf32>
    %94 = arith.subf %90, %93 : vector<8x8xf32>
    %95 = math.exp %94 : vector<8x8xf32>
    %cst_25 = arith.constant dense<0.000000e+00> : vector<8xf32>
    %96 = vector.multi_reduction <add>, %95, %cst_25 [1] : vector<8x8xf32> to vector<8xf32>
    %97 = vector.shape_cast %96 : vector<8xf32> to vector<8x1xf32>
    %98 = tpu.reciprocal %97 {approx = true} : vector<8x1xf32> -> vector<8x1xf32>
    %99 = vector.broadcast %98 : vector<8x1xf32> to vector<8x8xf32>
    %100 = arith.mulf %95, %99 : vector<8x8xf32>
    %101 = arith.truncf %100 : vector<8x8xf32> to vector<8x8xbf16>
    %102 = arith.truncf %85 : vector<8x64xf32> to vector<8x64xbf16>
    %cst_26 = arith.constant dense<0.000000e+00> : vector<8x64xf32>
    %103 = tpu.matmul %101, %102, %cst_26 {dimension_numbers = #tpu.dot_dimension_numbers<[1], [0], [0], [1], [0, 0, 1, 1], [], []>} : vector<8x8xbf16>, vector<8x64xbf16>, vector<8x64xf32> -> vector<8x64xf32>
    %104 = tpu.concatenate %80, %103 in 1 : vector<8x64xf32>, vector<8x64xf32> -> vector<8x128xf32>
    %105 = tpu.concatenate %56, %104 in 0 : vector<8x128xf32>, vector<8x128xf32> -> vector<16x128xf32>
    %c0_27 = arith.constant 0 : index
    %c0_28 = arith.constant 0 : index
    %106 = vector.load %arg4[%c0_27, %c0_28] : memref<128x128xf32, #tpu.memory_space<vmem>>, vector<128x128xf32>
    %107 = arith.truncf %105 : vector<16x128xf32> to vector<16x128xbf16>
    %108 = arith.truncf %106 : vector<128x128xf32> to vector<128x128xbf16>
    %cst_29 = arith.constant dense<0.000000e+00> : vector<16x128xf32>
    %109 = tpu.matmul %107, %108, %cst_29 {dimension_numbers = #tpu.dot_dimension_numbers<[1], [0], [0], [1], [0, 0, 1, 1], [], []>} : vector<16x128xbf16>, vector<128x128xbf16>, vector<16x128xf32> -> vector<16x128xf32>
    %c0_30 = arith.constant 0 : index
    %c0_31 = arith.constant 0 : index
    %110 = vector.load %arg5[%c0_30, %c0_31] : memref<1x128xf32, #tpu.memory_space<vmem>>, vector<1x128xf32>
    %111 = vector.broadcast %110 : vector<1x128xf32> to vector<16x128xf32>
    %112 = arith.addf %109, %111 : vector<16x128xf32>
    %113 = arith.addf %112, %0 : vector<16x128xf32>
    %c0_32 = arith.constant 0 : index
    %c0_33 = arith.constant 0 : index
    %114 = vector.load %arg6[%c0_32, %c0_33] : memref<1x128xf32, #tpu.memory_space<vmem>>, vector<1x128xf32>
    %c0_34 = arith.constant 0 : index
    %c0_35 = arith.constant 0 : index
    %115 = vector.load %arg7[%c0_34, %c0_35] : memref<1x128xf32, #tpu.memory_space<vmem>>, vector<1x128xf32>
    %cst_36 = arith.constant dense<0.000000e+00> : vector<16xf32>
    %116 = vector.multi_reduction <add>, %113, %cst_36 [1] : vector<16x128xf32> to vector<16xf32>
    %117 = vector.shape_cast %116 : vector<16xf32> to vector<16x1xf32>
    %cst_37 = arith.constant 1.280000e+02 : f32
    %118 = vector.broadcast %cst_37 : f32 to vector<16x1xf32>
    %119 = arith.divf %117, %118 : vector<16x1xf32>
    %120 = vector.broadcast %119 : vector<16x1xf32> to vector<16x128xf32>
    %121 = arith.subf %113, %120 : vector<16x128xf32>
    %122 = arith.mulf %121, %121 : vector<16x128xf32>
    %cst_38 = arith.constant dense<0.000000e+00> : vector<16xf32>
    %123 = vector.multi_reduction <add>, %122, %cst_38 [1] : vector<16x128xf32> to vector<16xf32>
    %124 = vector.shape_cast %123 : vector<16xf32> to vector<16x1xf32>
    %cst_39 = arith.constant 1.280000e+02 : f32
    %125 = vector.broadcast %cst_39 : f32 to vector<16x1xf32>
    %126 = arith.divf %124, %125 : vector<16x1xf32>
    %127 = vector.broadcast %119 : vector<16x1xf32> to vector<16x128xf32>
    %128 = arith.subf %113, %127 : vector<16x128xf32>
    %cst_40 = arith.constant 9.99999974E-6 : f32
    %129 = vector.broadcast %cst_40 : f32 to vector<16x1xf32>
    %130 = arith.addf %126, %129 : vector<16x1xf32>
    %131 = math.rsqrt %130 : vector<16x1xf32>
    %132 = vector.broadcast %131 : vector<16x1xf32> to vector<16x128xf32>
    %133 = arith.mulf %128, %132 : vector<16x128xf32>
    %134 = vector.broadcast %114 : vector<1x128xf32> to vector<16x128xf32>
    %135 = arith.mulf %133, %134 : vector<16x128xf32>
    %136 = vector.broadcast %115 : vector<1x128xf32> to vector<16x128xf32>
    %137 = arith.addf %135, %136 : vector<16x128xf32>
    %c0_41 = arith.constant 0 : index
    %c0_42 = arith.constant 0 : index
    %138 = vector.load %arg8[%c0_41, %c0_42] : memref<128x256xf32, #tpu.memory_space<vmem>>, vector<128x256xf32>
    %139 = arith.truncf %137 : vector<16x128xf32> to vector<16x128xbf16>
    %140 = arith.truncf %138 : vector<128x256xf32> to vector<128x256xbf16>
    %cst_43 = arith.constant dense<0.000000e+00> : vector<16x256xf32>
    %141 = tpu.matmul %139, %140, %cst_43 {dimension_numbers = #tpu.dot_dimension_numbers<[1], [0], [0], [1], [0, 0, 1, 1], [], []>} : vector<16x128xbf16>, vector<128x256xbf16>, vector<16x256xf32> -> vector<16x256xf32>
    %c0_44 = arith.constant 0 : index
    %c0_45 = arith.constant 0 : index
    %142 = vector.load %arg9[%c0_44, %c0_45] : memref<1x256xf32, #tpu.memory_space<vmem>>, vector<1x256xf32>
    %143 = vector.broadcast %142 : vector<1x256xf32> to vector<16x256xf32>
    %144 = arith.addf %141, %143 : vector<16x256xf32>
    %145 = arith.mulf %144, %144 : vector<16x256xf32>
    %146 = arith.mulf %144, %145 : vector<16x256xf32>
    %cst_46 = arith.constant 4.471500e-02 : f32
    %147 = vector.broadcast %cst_46 : f32 to vector<16x256xf32>
    %148 = arith.mulf %147, %146 : vector<16x256xf32>
    %149 = arith.addf %144, %148 : vector<16x256xf32>
    %cst_47 = arith.constant 0.797884583 : f32
    %150 = vector.broadcast %cst_47 : f32 to vector<16x256xf32>
    %151 = arith.mulf %150, %149 : vector<16x256xf32>
    %152 = math.tanh %151 : vector<16x256xf32>
    %cst_48 = arith.constant 1.000000e+00 : f32
    %153 = vector.broadcast %cst_48 : f32 to vector<16x256xf32>
    %154 = arith.addf %153, %152 : vector<16x256xf32>
    %cst_49 = arith.constant 5.000000e-01 : f32
    %155 = vector.broadcast %cst_49 : f32 to vector<16x256xf32>
    %156 = arith.mulf %155, %154 : vector<16x256xf32>
    %157 = arith.mulf %144, %156 : vector<16x256xf32>
    %c0_50 = arith.constant 0 : index
    %c0_51 = arith.constant 0 : index
    %158 = vector.load %arg10[%c0_50, %c0_51] : memref<256x128xf32, #tpu.memory_space<vmem>>, vector<256x128xf32>
    %159 = arith.truncf %157 : vector<16x256xf32> to vector<16x256xbf16>
    %160 = arith.truncf %158 : vector<256x128xf32> to vector<256x128xbf16>
    %cst_52 = arith.constant dense<0.000000e+00> : vector<16x128xf32>
    %161 = tpu.matmul %159, %160, %cst_52 {dimension_numbers = #tpu.dot_dimension_numbers<[1], [0], [0], [1], [0, 0, 1, 1], [], []>} : vector<16x256xbf16>, vector<256x128xbf16>, vector<16x128xf32> -> vector<16x128xf32>
    %c0_53 = arith.constant 0 : index
    %c0_54 = arith.constant 0 : index
    %162 = vector.load %arg11[%c0_53, %c0_54] : memref<1x128xf32, #tpu.memory_space<vmem>>, vector<1x128xf32>
    %163 = vector.broadcast %162 : vector<1x128xf32> to vector<16x128xf32>
    %164 = arith.addf %161, %163 : vector<16x128xf32>
    %165 = arith.addf %164, %137 : vector<16x128xf32>
    %c0_55 = arith.constant 0 : index
    %c0_56 = arith.constant 0 : index
    %166 = vector.load %arg12[%c0_55, %c0_56] : memref<1x128xf32, #tpu.memory_space<vmem>>, vector<1x128xf32>
    %c0_57 = arith.constant 0 : index
    %c0_58 = arith.constant 0 : index
    %167 = vector.load %arg13[%c0_57, %c0_58] : memref<1x128xf32, #tpu.memory_space<vmem>>, vector<1x128xf32>
    %cst_59 = arith.constant dense<0.000000e+00> : vector<16xf32>
    %168 = vector.multi_reduction <add>, %165, %cst_59 [1] : vector<16x128xf32> to vector<16xf32>
    %169 = vector.shape_cast %168 : vector<16xf32> to vector<16x1xf32>
    %cst_60 = arith.constant 1.280000e+02 : f32
    %170 = vector.broadcast %cst_60 : f32 to vector<16x1xf32>
    %171 = arith.divf %169, %170 : vector<16x1xf32>
    %172 = vector.broadcast %171 : vector<16x1xf32> to vector<16x128xf32>
    %173 = arith.subf %165, %172 : vector<16x128xf32>
    %174 = arith.mulf %173, %173 : vector<16x128xf32>
    %cst_61 = arith.constant dense<0.000000e+00> : vector<16xf32>
    %175 = vector.multi_reduction <add>, %174, %cst_61 [1] : vector<16x128xf32> to vector<16xf32>
    %176 = vector.shape_cast %175 : vector<16xf32> to vector<16x1xf32>
    %cst_62 = arith.constant 1.280000e+02 : f32
    %177 = vector.broadcast %cst_62 : f32 to vector<16x1xf32>
    %178 = arith.divf %176, %177 : vector<16x1xf32>
    %179 = vector.broadcast %171 : vector<16x1xf32> to vector<16x128xf32>
    %180 = arith.subf %165, %179 : vector<16x128xf32>
    %cst_63 = arith.constant 9.99999974E-6 : f32
    %181 = vector.broadcast %cst_63 : f32 to vector<16x1xf32>
    %182 = arith.addf %178, %181 : vector<16x1xf32>
    %183 = math.rsqrt %182 : vector<16x1xf32>
    %184 = vector.broadcast %183 : vector<16x1xf32> to vector<16x128xf32>
    %185 = arith.mulf %180, %184 : vector<16x128xf32>
    %186 = vector.broadcast %166 : vector<1x128xf32> to vector<16x128xf32>
    %187 = arith.mulf %185, %186 : vector<16x128xf32>
    %188 = vector.broadcast %167 : vector<1x128xf32> to vector<16x128xf32>
    %189 = arith.addf %187, %188 : vector<16x128xf32>
    %c0_64 = arith.constant 0 : index
    %c0_65 = arith.constant 0 : index
    %190 = vector.load %arg14[%c0_64, %c0_65] : memref<16x128xf32, #tpu.memory_space<vmem>>, vector<16x128xf32>
    tpu.vector_store %arg14[%c0_64, %c0_65], %189 {strides = array<i32>} : memref<16x128xf32, #tpu.memory_space<vmem>>, vector<16x128xf32>,
    return
  }
}

</mosaic_0001>

<bundles_post_ra>
// kernel: roberta_regressor_forward.4
= control target key start
LH: loop header
LB: loop body
LE: loop exit
PB: predicated region body
PF: predicated region fallthrough
CT: control target
= control target key end

     0   :  { %s107_s0 = inlined_call_operand.vmem [shape: f32[16,128], index: 0, kind: input, shape index: {}]   ;;  %s108_s1 = inlined_call_operand.vmem [shape: f32[1,128], index: 1, kind: input, shape index: {}]   ;;  %s109_s2 = inlined_call_operand.vmem [shape: f32[1,128], index: 2, kind: input, shape index: {}]   ;;  %s110_s3 = inlined_call_operand.vmem [shape: f32[16,128], index: 3, kind: output, shape index: {}]  }
   0x1   :  { %v14_v0 = vld [vmem:[%s107_s0] sm:$0xff]  ;;  %v15_v1 = vld [vmem:[%s107_s0 + $0x8] sm:$0xff] }
   0x2   :  { %18 = vadd.xlane.f32.xlu0 %v14_v0  ;;  %v63_v17 = vld [vmem:[%s108_s1] ss:$0 sm:$0xff] }
   0x3   :  { %v64_v19 = vld [vmem:[%s109_s2] ss:$0 sm:$0xff] }
   0x6   :  { %20 = vadd.xlane.f32.xlu0 %v15_v1 }
  0x8b   :  { %v19_v2 = vpop.xlane.xlu0 %18 }
  0x8c   :  { %v23_v3 = vmul.f32 0.0078125, %v19_v2 }
  0x8e   :  { %v25_v4 = vsub.f32 %v14_v0, %v23_v3 }
  0x8f   :  { %v21_v5 = vpop.xlane.xlu0 %20 }
  0x90   :  { %v24_v6 = vmul.f32 0.0078125, %v21_v5  ;;  %v27_v7 = vmul.f32 %v25_v4, %v25_v4 }
  0x92   :  { %v26_v8 = vsub.f32 %v15_v1, %v24_v6  ;;  %29 = vadd.xlane.f32.xlu1 %v27_v7 }
  0x94   :  { %v28_v9 = vmul.f32 %v26_v8, %v26_v8 }
  0x96   :  { %31 = vadd.xlane.f32.xlu1 %v28_v9 }
 0x11b   :  { %v30_v10 = vpop.xlane.xlu1 %29 }
 0x11c   :  { %v33_v11 = vmul.f32 0.0078125, %v30_v10 }
 0x11e   :  { %v35_v12 = vadd.f32 1e-05, %v33_v11 }
 0x11f   :  { %v32_v13 = vpop.xlane.xlu1 %31 }
 0x120   :  { %65 = vrsqrt.f32 %v35_v12  ;;  %v34_v14 = vmul.f32 0.0078125, %v32_v13 }
 0x122   :  { %v36_v15 = vadd.f32 1e-05, %v34_v14 }
 0x124   :  { %67 = vrsqrt.f32 %v36_v15 }
 0x12d   :  { %v66_v16 = vpop.eup %65 }
 0x12e   :  { %v39_v18 = vmul.f32 %v66_v16, %v25_v4 }
 0x130   :  { %v47_v20 = vmul.f32 %v63_v17, %v39_v18 }
 0x131   :  { %v68_v21 = vpop.eup %67 }
 0x132   :  { %v55_v22 = vadd.f32 %v64_v19, %v47_v20  ;;  %v40_v23 = vmul.f32 %v68_v21, %v26_v8 }
 0x134   :  { %57 = vst [vmem:[%s110_s3] sm:$0xff] %v55_v22  ;;  %v48_v24 = vmul.f32 %v63_v17, %v40_v23 }
 0x136   :  { %v56_v25 = vadd.f32 %v64_v19, %v48_v24 }
 0x138   :  { %58 = vst [vmem:[%s110_s3 + $0x8] sm:$0xff] %v56_v25 }

// kernel: roberta_regressor_forward.7
= control target key start
LH: loop header
LB: loop body
LE: loop exit
PB: predicated region body
PF: predicated region fallthrough
CT: control target
= control target key end

     0   :  { %v159_v0 = vmov 0.0   ;;  %vm160_vm0 = vmmov 0   ;;  %vm105_vm1 = vcmask 1041408   ;;  %vm117_vm2 = vcmask 1024   ;;  %s254_s1 = inlined_call_operand.vmem [shape: f32[128,128], index: 1, kind: input, shape index: {}]   ;;  %s255_s0 = inlined_call_operand.vmem [shape: f32[2,128], index: 0, kind: input, shape index: {}]   ;;  %s256_s4 = inlined_call_operand.<no memory space> [shape: f32[1,1], index: 4, kind: input, shape index: {}]   ;;  %s257_s2 = inlined_call_operand.vmem [shape: f32[1,128], index: 2, kind: input, shape index: {}]   ;;  %s258_s3 = inlined_call_operand.vmem [shape: f32[1,128], index: 3, kind: input, shape index: {}]   ;;  %s259_s5 = inlined_call_operand.vmem [shape: f32[2,1], index: 5, kind: output, shape index: {}]  }
   0x1   :  { %135 = vmatprep.subr.bf16.mxu0 %v159_v0  ;;  %v38_v1 = vld [vmem:[%s254_s1 + $0x70] sm:$0xff]  ;;  %v39_v2 = vld [vmem:[%s254_s1 + $0x78] sm:$0xff]  ;;  %v36_v3 = vld [vmem:[%s254_s1 + $0x60] sm:$0xff]  ;;  %151 = vmatprep.mubr.msk.bf16.mxu0 %vm160_vm0, %v159_v0  ;;  %v10_v27 = vstv %s256_s4 }
   0x2   :  { %v48_v4 = vpack.c.bf16 %v39_v2, %v38_v1  ;;  %v37_v5 = vld [vmem:[%s254_s1 + $0x68] sm:$0xff]  ;;  %v34_v7 = vld [vmem:[%s254_s1 + $0x50] sm:$0xff]  ;;  %v35_v8 = vld [vmem:[%s254_s1 + $0x58] sm:$0xff]  ;;  %11 = vst [vmem:[#allocation2] sm:$0x1] %v10_v27 }
   0x3   :  { %v47_v6 = vpack.c.bf16 %v37_v5, %v36_v3  ;;  %v46_v9 = vpack.c.bf16 %v35_v8, %v34_v7  ;;  %v32_v10 = vld [vmem:[%s254_s1 + $0x40] sm:$0xff]  ;;  %v33_v11 = vld [vmem:[%s254_s1 + $0x48] sm:$0xff]  ;;  %v30_v13 = vld [vmem:[%s254_s1 + $0x30] sm:$0xff] }
   0x4   :  { %136 = vmatpush3.bf16.msra.mxu0 %v48_v4  ;;  %v45_v12 = vpack.c.bf16 %v33_v11, %v32_v10  ;;  %v31_v14 = vld [vmem:[%s254_s1 + $0x38] sm:$0xff]  ;;  %v28_v16 = vld [vmem:[%s254_s1 + $0x20] sm:$0xff]  ;;  %v29_v17 = vld [vmem:[%s254_s1 + $0x28] sm:$0xff] }
   0x5   :  { %137 = vmatprep.subr.bf16.mxu0 %v159_v0  ;;  %v44_v15 = vpack.c.bf16 %v31_v14, %v30_v13  ;;  %v43_v18 = vpack.c.bf16 %v29_v17, %v28_v16  ;;  %v26_v19 = vld [vmem:[%s254_s1 + $0x10] sm:$0xff]  ;;  %v27_v20 = vld [vmem:[%s254_s1 + $0x18] sm:$0xff]  ;;  %v24_v22 = vld [vmem:[%s254_s1] sm:$0xff] }
   0x6   :  { %v42_v21 = vpack.c.bf16 %v27_v20, %v26_v19  ;;  %v25_v23 = vld [vmem:[%s254_s1 + $0x8] sm:$0xff]  ;;  %v23_v25 = vld [vmem:[%s255_s0] sm:$0x3] }
   0x7   :  { %v41_v24 = vpack.c.bf16 %v25_v23, %v24_v22  ;;  %v40_v26 = vpack.c.bf16 %v23_v25, %v23_v25  ;;  %v123_v28 = vld [vmem:[%s257_s2] ss:$0 sm:$0xff] }
   0x8   :  { %138 = vmatpush3.bf16.msra.mxu0 %v47_v6  ;;  %v124_v34 = vld [vmem:[%s258_s3] ss:$0 sm:$0xff] }
   0x9   :  { %139 = vmatprep.subr.bf16.mxu0 %v159_v0  ;;  %v125_v38 = vld [vmem:[#allocation2] ss:$0 sm:$0xff] }
   0xc   :  { %140 = vmatpush3.bf16.msra.mxu0 %v46_v9 }
   0xd   :  { %141 = vmatprep.subr.bf16.mxu0 %v159_v0 }
  0x10   :  { %142 = vmatpush3.bf16.msra.mxu0 %v45_v12 }
  0x11   :  { %143 = vmatprep.subr.bf16.mxu0 %v159_v0 }
  0x14   :  { %144 = vmatpush3.bf16.msra.mxu0 %v44_v15 }
  0x15   :  { %145 = vmatprep.subr.bf16.mxu0 %v159_v0 }
  0x18   :  { %146 = vmatpush3.bf16.msra.mxu0 %v43_v18 }
  0x19   :  { %147 = vmatprep.subr.bf16.mxu0 %v159_v0 }
  0x1c   :  { %148 = vmatpush3.bf16.msra.mxu0 %v42_v21 }
  0x1d   :  { %149 = vmatprep.subr.bf16.mxu0 %v159_v0 }
  0x20   :  { %150 = vmatpush3.bf16.msra.mxu0 %v41_v24 }
  0x23   :  { %152 = vmatmul.mubr.bf16.vlgmr.msra.gmra.mxu0 %v40_v26 }
  0xe3   :  { %v90_v29 = vpop.f32.mrf.mxu0 }
  0xe4   :  { %v91_v30 = vadd.f32 %v123_v28, %v90_v29 }
  0xe5   :  { %v153_v31 = vpop.f32.mrf.mxu0 }
  0xe6   :  { %157 = vtanh.f32 %v91_v30 }
  0xe7   :  { %v93_v32 = vpop.f32.mrf.mxu0 }
  0xe9   :  { %v154_v33 = vpop.f32.mrf.mxu0 }
  0xf3   :  { %v158_v35 = vpop.eup %157 }
  0xf4   :  { %v104_v36 = vmul.f32 %v158_v35, %v124_v34 }
  0xf6   :  { %v106_v37 = vsel %vm105_vm1, %v104_v36, 0.0 }
  0xf7   :  { %107 = vadd.xlane.f32.xlu0 %v106_v37 }
 0x180   :  { %v108_v39 = vpop.xlane.xlu0 %107 }
 0x181   :  { %v116_v40 = vadd.f32 %v125_v38, %v108_v39 }
 0x183   :  { %118 = vst.msk [vmem:[%s259_s5] sm:$0x3] %vm117_vm2, %v116_v40 }

// kernel: roberta_regressor_forward.5
= control target key start
LH: loop header
LB: loop body
LE: loop exit
PB: predicated region body
PF: predicated region fallthrough
CT: control target
= control target key end

     0   :  { %19 = vsyncpa [#allocation3], 0  ;;  %s1803_s0 = inlined_call_operand.vmem [shape: f32[16,128], index: 0, kind: input, shape index: {}]   ;;  %s1804_s1 = inlined_call_operand.vmem [shape: f32[2,8], index: 1, kind: input, shape index: {}]   ;;  %s1805_s2 = inlined_call_operand.vmem [shape: f32[128,384], index: 2, kind: input, shape index: {}]   ;;  %s1806_s3 = inlined_call_operand.vmem [shape: f32[1,384], index: 3, kind: input, shape index: {}]   ;;  %s1807_s4 = inlined_call_operand.hbm [shape: f32[128,128], index: 4, kind: input, shape index: {}]   ;;  %s1808_s5 = inlined_call_operand.vmem [shape: f32[1,128], index: 5, kind: input, shape index: {}]   ;;  %s1809_s6 = inlined_call_operand.vmem [shape: f32[1,128], index: 6, kind: input, shape index: {}]   ;;  %s1810_s7 = inlined_call_operand.vmem [shape: f32[1,128], index: 7, kind: input, shape index: {}]   ;;  %s1811_s8 = inlined_call_operand.hbm [shape: f32[128,256], index: 8, kind: input, shape index: {}]   ;;  %s1812_s9 = inlined_call_operand.vmem [shape: f32[1,256], index: 9, kind: input, shape index: {}]   ;;  %s1813_s10 = inlined_call_operand.hbm [shape: f32[256,128], index: 10, kind: input, shape index: {}]   ;;  %s1814_s11 = inlined_call_operand.vmem [shape: f32[1,128], index: 11, kind: input, shape index: {}]   ;;  %s1815_s12 = inlined_call_operand.vmem [shape: f32[1,128], index: 12, kind: input, shape index: {}]   ;;  %s1816_s13 = inlined_call_operand.vmem [shape: f32[1,128], index: 13, kind: input, shape index: {}]   ;;  %s1817_s14 = inlined_call_operand.vmem [shape: f32[16,128], index: 14, kind: output, shape index: {}]  }
   0x1   :  { %20 = vsyncpa [#allocation5], 0  ;;  %s1403_s29 = smov [#allocation4]  }
   0x2   :  { %s52_s30 = sshll.u32 %s1403_s29, 4  ;;  %s53_s30 = int_to_ptr.vmem [resolvable:$true] %s52_s30 }
   0x3   :  { %s1347_s15 = scalar_lea.vmem %s53_s30, 4096  ;;  %p1352_p1 = scmp.lt.s32.totalorder %s53_s30, %s53_s30 }
   0x4   :  { %p1348_p0 = scmp.ne.s32.totalorder %s53_s30, %s1347_s15  ;;  %p1353_p2 = scmp.lt.s32.totalorder %s1347_s15, %s1347_s15 }
   0x6   :  { %p1354_p3 = por %p1353_p2, %p1352_p1 }
   0x8   :  { %p1355_p4 = pnand %p1354_p3, %p1348_p0 }
   0xa   :  { %1358 = shalt.err (!%p1355_p4)
}
   0xb   :  { %s1404_s16 = smov 256   ;;  %s1405_s17 = smov 16  }
   0xc   :  { %58 = dma.hbm_to_vmem [thread:$0]  %s1811_s8, 4096, %s53_s30, [#allocation5], %s1404_s16, %s1404_s16, %s1405_s17  }
   0xd   :  { %s1406_s20 = smov [#allocation2]  }
   0xe   :  { %s34_s21 = sshll.u32 %s1406_s20, 4  ;;  %s35_s21 = int_to_ptr.vmem [resolvable:$true] %s34_s21 }
   0xf   :  { %s1367_s22 = scalar_lea.vmem %s35_s21, 2048  ;;  %p1372_p6 = scmp.lt.s32.totalorder %s35_s21, %s35_s21 }
  0x10   :  { %p1368_p5 = scmp.ne.s32.totalorder %s35_s21, %s1367_s22  ;;  %p1373_p7 = scmp.lt.s32.totalorder %s1367_s22, %s1367_s22 }
  0x12   :  { %p1374_p8 = por %p1373_p7, %p1372_p6 }
  0x14   :  { %p1375_p9 = pnand %p1374_p8, %p1368_p5 }
  0x16   :  { %1378 = shalt.err (!%p1375_p9)
}
  0x17   :  { %s1407_s23 = smov 128   ;;  %s1408_s24 = smov 8  }
  0x18   :  { %40 = dma.hbm_to_vmem [thread:$0]  %s1807_s4, 2048, %s35_s21, [#allocation3], %s1407_s23, %s1407_s23, %s1408_s24  }
  0x19   :  { %s1409_s27 = smov [#allocation6]  }
  0x1a   :  { %s66_s28 = sshll.u32 %s1409_s27, 4  ;;  %s67_s28 = int_to_ptr.vmem [resolvable:$true] %s66_s28 }
  0x1b   :  { %s1387_s8 = scalar_lea.vmem %s67_s28, 4096  ;;  %p1392_p11 = scmp.lt.s32.totalorder %s67_s28, %s67_s28 }
  0x1c   :  { %p1388_p10 = scmp.ne.s32.totalorder %s67_s28, %s1387_s8  ;;  %p1393_p12 = scmp.lt.s32.totalorder %s1387_s8, %s1387_s8 }
  0x1e   :  { %p1394_p13 = por %p1393_p12, %p1392_p11 }
  0x20   :  { %p1395_p0 = pnand %p1394_p13, %p1388_p10 }
  0x22   :  { %1398 = shalt.err (!%p1395_p0)
}
  0x23   :  { %72 = dma.hbm_to_vmem [thread:$0]  %s1813_s10, 4096, %s67_s28, [#allocation5], %s1407_s23, %s1407_s23, %s1408_s24  }
  0x24   :  { %1399 = dma.done.wait [#allocation3], 2048  }
  0x25   :  { %1400 = vsyncadd [#allocation3], 4294965248 }
  0x26   :  { %1401 = dma.done.wait [#allocation5], 8192  }
  0x27   :  { %1402 = vsyncadd [#allocation5], 4294959104  ;;  %v1410_v0 = vmov 0   ;;  %v1411_v1 = vmov 0.0   ;;  %v134_v2 = vld [vmem:[%s1805_s2 + $0x158] sm:$0xff]  ;;  %v137_v3 = vld [vmem:[%s1805_s2 + $0x170] sm:$0xff] }
  0x28   :  { %213 = vmatprep.mubr.bf16.mxu0 %v1410_v0  ;;  %1203 = vmatprep.subr.bf16.mxu1 %v1411_v1  ;;  %v133_v4 = vld [vmem:[%s1805_s2 + $0x150] sm:$0xff]  ;;  %v162_v5 = vpack.c.bf16 %v137_v3, %v134_v2  ;;  %v136_v6 = vld [vmem:[%s1805_s2 + $0x168] sm:$0xff]  ;;  %v131_v8 = vld [vmem:[%s1805_s2 + $0x140] sm:$0xff]  ;;  %vm1412_vm0 = vmmov 0   ;;  %vm273_vm1 = vcmask 523264   ;;  %vm337_vm2 = vcmask 1043456  }
  0x29   :  { %v128_v7 = vld [vmem:[%s1805_s2 + $0x128] sm:$0xff]  ;;  %v161_v9 = vpack.c.bf16 %v136_v6, %v133_v4  ;;  %v127_v11 = vld [vmem:[%s1805_s2 + $0x120] sm:$0xff]  ;;  %v130_v12 = vld [vmem:[%s1805_s2 + $0x138] sm:$0xff]  ;;  %1219 = vmatprep.mubr.msk.bf16.mxu1 %vm1412_vm0, %v1411_v1  ;;  %vm320_vm3 = vcmask 64512  }
  0x2a   :  { %v159_v10 = vpack.c.bf16 %v131_v8, %v128_v7  ;;  %v122_v13 = vld [vmem:[%s1805_s2 + $0xf8] sm:$0xff]  ;;  %181 = vmatprep.subr.bf16.mxu0 %v162_v5  ;;  %v125_v14 = vld [vmem:[%s1805_s2 + $0x110] sm:$0xff]  ;;  %v158_v15 = vpack.c.bf16 %v130_v12, %v127_v11  ;;  %v124_v18 = vld [vmem:[%s1805_s2 + $0x108] sm:$0xff] }
  0x2b   :  { %182 = vmatpush1.bf16.msra.mxu0 %v161_v9  ;;  %v156_v16 = vpack.c.bf16 %v125_v14, %v122_v13  ;;  %v121_v17 = vld [vmem:[%s1805_s2 + $0xf0] sm:$0xff]  ;;  %v116_v19 = vld [vmem:[%s1805_s2 + $0xc8] sm:$0xff]  ;;  %v119_v20 = vld [vmem:[%s1805_s2 + $0xe0] sm:$0xff] }
  0x2c   :  { %183 = vmatprep.subr.bf16.mxu0 %v159_v10  ;;  %v155_v21 = vpack.c.bf16 %v124_v18, %v121_v17  ;;  %v153_v22 = vpack.c.bf16 %v119_v20, %v116_v19  ;;  %v115_v23 = vld [vmem:[%s1805_s2 + $0xc0] sm:$0xff]  ;;  %v118_v24 = vld [vmem:[%s1805_s2 + $0xd8] sm:$0xff]  ;;  %v113_v26 = vld [vmem:[%s1805_s2 + $0xb0] sm:$0xff] }
  0x2d   :  { %v110_v25 = vld [vmem:[%s1805_s2 + $0x98] sm:$0xff]  ;;  %v135_v27 = vld [vmem:[%s1805_s2 + $0x160] sm:$0xff]  ;;  %v152_v29 = vpack.c.bf16 %v118_v24, %v115_v23  ;;  %v129_v31 = vld [vmem:[%s1805_s2 + $0x130] sm:$0xff] }
  0x2e   :  { %v138_v28 = vld [vmem:[%s1805_s2 + $0x178] sm:$0xff]  ;;  %v132_v32 = vld [vmem:[%s1805_s2 + $0x148] sm:$0xff]  ;;  %v150_v33 = vpack.c.bf16 %v113_v26, %v110_v25  ;;  %v109_v34 = vld [vmem:[%s1805_s2 + $0x90] sm:$0xff] }
  0x2f   :  { %184 = vmatpush1.bf16.msra.mxu0 %v158_v15  ;;  %v163_v30 = vpack.c.bf16 %v138_v28, %v135_v27  ;;  %v112_v35 = vld [vmem:[%s1805_s2 + $0xa8] sm:$0xff]  ;;  %v107_v37 = vld [vmem:[%s1805_s2 + $0x80] sm:$0xff]  ;;  %v160_v38 = vpack.c.bf16 %v132_v32, %v129_v31  ;;  %v126_v40 = vld [vmem:[%s1805_s2 + $0x118] sm:$0xff]  ;;  %v166_v15 = vlaneseq }
  0x30   :  { %185 = vmatprep.subr.bf16.mxu0 %v156_v16  ;;  %v104_v36 = vld [vmem:[%s1805_s2 + $0x68] sm:$0xff]  ;;  %v123_v39 = vld [vmem:[%s1805_s2 + $0x100] sm:$0xff]  ;;  %v149_v41 = vpack.c.bf16 %v112_v35, %v109_v34  ;;  %v106_v44 = vld [vmem:[%s1805_s2 + $0x78] sm:$0xff] }
  0x31   :  { %1204 = vmatpush3.bf16.msra.mxu1 %v163_v30  ;;  %v147_v42 = vpack.c.bf16 %v107_v37, %v104_v36  ;;  %v103_v43 = vld [vmem:[%s1805_s2 + $0x60] sm:$0xff]  ;;  %v98_v45 = vld [vmem:[%s1805_s2 + $0x38] sm:$0xff]  ;;  %v101_v46 = vld [vmem:[%s1805_s2 + $0x50] sm:$0xff]  ;;  %v157_v47 = vpack.c.bf16 %v126_v40, %v123_v39  ;;  %v167_v16 = vshrl.u32 %v166_v15, 7 }
  0x32   :  { %1205 = vmatprep.subr.bf16.mxu1 %v1411_v1  ;;  %v117_v48 = vld [vmem:[%s1805_s2 + $0xd0] sm:$0xff]  ;;  %v120_v49 = vld [vmem:[%s1805_s2 + $0xe8] sm:$0xff]  ;;  %v146_v50 = vpack.c.bf16 %v106_v44, %v103_v43  ;;  %v144_v51 = vpack.c.bf16 %v101_v46, %v98_v45  ;;  %v95_v55 = vld [vmem:[%s1805_s2 + $0x20] sm:$0xff] }
  0x33   :  { %186 = vmatpush1.bf16.msra.mxu0 %v155_v21  ;;  %v97_v52 = vld [vmem:[%s1805_s2 + $0x30] sm:$0xff]  ;;  %v100_v53 = vld [vmem:[%s1805_s2 + $0x48] sm:$0xff]  ;;  %v154_v56 = vpack.c.bf16 %v120_v49, %v117_v48  ;;  %v111_v57 = vld [vmem:[%s1805_s2 + $0xa0] sm:$0xff]  ;;  %v1671_v17 = vsub.s32 0, %v167_v16  ;;  %v1676_v19 = vsub.s32 1, %v167_v16 }
  0x34   :  { %187 = vmatprep.subr.bf16.mxu0 %v153_v22  ;;  %v92_v54 = vld [vmem:[%s1805_s2 + $0x8] sm:$0xff]  ;;  %v114_v58 = vld [vmem:[%s1805_s2 + $0xb8] sm:$0xff]  ;;  %v143_v59 = vpack.c.bf16 %v100_v53, %v97_v52  ;;  %v91_v61 = vld [vmem:[%s1805_s2] sm:$0xff] }
  0x35   :  { %1206 = vmatpush3.bf16.msra.mxu1 %v160_v38  ;;  %v141_v60 = vpack.c.bf16 %v95_v55, %v92_v54  ;;  %v94_v62 = vld [vmem:[%s1805_s2 + $0x18] sm:$0xff]  ;;  %v151_v63 = vpack.c.bf16 %v114_v58, %v111_v57  ;;  %v105_v2 = vld [vmem:[%s1805_s2 + $0x70] sm:$0xff]  ;;  %v108_v3 = vld [vmem:[%s1805_s2 + $0x88] sm:$0xff]  ;;  %v176_v38 = vsub.s32 2, %v167_v16 }
  0x36   :  { %1207 = vmatprep.subr.bf16.mxu1 %v1411_v1  ;;  %v140_v4 = vpack.c.bf16 %v94_v62, %v91_v61  ;;  %v1639_v5 = vld [vmem:[%s1803_s0] sm:$0xff]  ;;  %v1644_v6 = vld [vmem:[%s1803_s0 + $0x8] sm:$0xff]  ;;  %v148_v7 = vpack.c.bf16 %v108_v3, %v105_v2  ;;  %v102_v10 = vld [vmem:[%s1805_s2 + $0x58] sm:$0xff] }
  0x37   :  { %188 = vmatpush1.bf16.msra.mxu0 %v152_v29  ;;  %v139_v8 = vpack.c.bf16 %v1644_v6, %v1639_v5  ;;  %v99_v9 = vld [vmem:[%s1805_s2 + $0x40] sm:$0xff]  ;;  %v93_v12 = vld [vmem:[%s1805_s2 + $0x10] sm:$0xff]  ;;  %v96_v13 = vld [vmem:[%s1805_s2 + $0x28] sm:$0xff] }
  0x38   :  { %189 = vmatprep.subr.bf16.mxu0 %v150_v33  ;;  %v145_v11 = vpack.c.bf16 %v102_v10, %v99_v9  ;;  %v142_v14 = vpack.c.bf16 %v96_v13, %v93_v12  ;;  %v164_v18 = vld [vmem:[%s1806_s3] sm:$0x7]  ;;  %s1413_s3 = smov 64  }
  0x39   :  { %1208 = vmatpush3.bf16.msra.mxu1 %v157_v47  ;;  %v169_v20 = vrot.slane %v164_v18, %v1671_v17  ;;  %v173_v21 = vrot.slane %v164_v18, %v1676_v19  ;;  %v177_v39 = vrot.slane %v164_v18, %v176_v38  ;;  %v265_v48 = vld [vmem:[%s1804_s1] sm:$0x3] }
  0x3a   :  { %1209 = vmatprep.subr.bf16.mxu1 %v1411_v1  ;;  %v272_v49 = vrot.slane %v265_v48, %v1671_v17  ;;  %v505_v3 = vrot.slane %v265_v48, %v1676_v19 }
  0x3b   :  { %190 = vmatpush1.bf16.msra.mxu0 %v149_v41 }
  0x3c   :  { %191 = vmatprep.subr.bf16.mxu0 %v147_v42 }
  0x3d   :  { %1210 = vmatpush3.bf16.msra.mxu1 %v154_v56 }
  0x3e   :  { %1211 = vmatprep.subr.bf16.mxu1 %v1411_v1 }
  0x3f   :  { %192 = vmatpush1.bf16.msra.mxu0 %v146_v50 }
  0x40   :  { %193 = vmatprep.subr.bf16.mxu0 %v144_v51 }
  0x41   :  { %1212 = vmatpush3.bf16.msra.mxu1 %v151_v63 }
  0x42   :  { %1213 = vmatprep.subr.bf16.mxu1 %v1411_v1 }
  0x43   :  { %194 = vmatpush1.bf16.msra.mxu0 %v143_v59 }
  0x44   :  { %195 = vmatprep.subr.bf16.mxu0 %v141_v60 }
  0x45   :  { %1214 = vmatpush3.bf16.msra.mxu1 %v148_v7 }
  0x46   :  { %1215 = vmatprep.subr.bf16.mxu1 %v1411_v1 }
  0x47   :  { %196 = vmatpush1.bf16.msra.mxu0 %v140_v4 }
  0x48   :  { %1247 = vmatprep.subr.bf16.mxu0 %v1411_v1 }
  0x49   :  { %1216 = vmatpush3.bf16.msra.mxu1 %v145_v11 }
  0x4a   :  { %214 = vmatmul.mubr.bf16.vlgmr.msra.gmra.mxu0 %v139_v8  ;;  %1217 = vmatprep.subr.bf16.mxu1 %v1411_v1 }
  0x4b   :  { %1249 = vmatprep.mubr.msk.bf16.mxu0 %vm1412_vm0, %v1411_v1 }
  0x4d   :  { %1218 = vmatpush3.bf16.msra.mxu1 %v142_v14 }
  0x4e   :  { %1223 = vmatprep.subr.bf16.mxu1 %v1411_v1 }
  0x50   :  { %1220 = vmatmul.mubr.bf16.vlgmr.msra.gmra.mxu1 %v139_v8 }
  0x51   :  { %1225 = vmatprep.mubr.msk.bf16.mxu1 %vm1412_vm0, %v1411_v1 }
 0x10a   :  { %v215_v22 = vpop.f32.mrf.mxu0 }
 0x10b   :  { %v216_v23 = vadd.f32 %v215_v22, %v169_v20 }
 0x10c   :  { %v217_v24 = vpop.f32.mrf.mxu0 }
 0x10d   :  { %v218_v25 = vadd.f32 %v217_v24, %v173_v21  ;;  %v266_v27 = vmul.f32 0.125, %v216_v23 }
 0x10e   :  { %v219_v26 = vpop.f32.mrf.mxu0 }
 0x10f   :  { %v268_v28 = vpack.c.bf16 %v218_v25, %v218_v25  ;;  %v220_v29 = vadd.f32 %v219_v26, %v169_v20  ;;  %v267_v33 = vpack.c.bf16 %v266_v27, %v266_v27 }
 0x110   :  { %v221_v30 = vpop.f32.mrf.mxu0  ;;  %v258_v40 = vpop.f32.mrf.mxu1 }
 0x111   :  { %v278_v31 = vsel %vm273_vm1, %v268_v28, 0  ;;  %v222_v32 = vadd.f32 %v221_v30, %v173_v21  ;;  %385 = vrot.lane.b32.xlu1 %v268_v28, %s1413_s3  ;;  %v499_v34 = vmul.f32 0.125, %v220_v29  ;;  %v259_v41 = vadd.f32 %v258_v40, %v177_v39 }
 0x112   :  { %1224 = vmatpush3.bf16.xpose.msra.mxu1 %v278_v31  ;;  %v1221_v42 = vpop.f32.mrf.mxu1 }
 0x113   :  { %v501_v35 = vpack.c.bf16 %v222_v32, %v222_v32  ;;  %1229 = vmatprep.subr.bf16.mxu1 %v1411_v1  ;;  %v500_v37 = vpack.c.bf16 %v499_v34, %v499_v34  ;;  %v333_v43 = vpack.c.bf16 %v259_v41, %v259_v41 }
 0x114   :  { %v261_v44 = vpop.f32.mrf.mxu1 }
 0x115   :  { %v510_v36 = vsel %vm273_vm1, %v501_v35, 0  ;;  %382 = vrot.lane.b32.xlu1 %v267_v33, %s1413_s3  ;;  %v339_v45 = vsel %vm337_vm2, %v333_v43, 0  ;;  %v1694_v46 = vadd.f32 %v261_v44, %v177_v39 }
 0x116   :  { %1248 = vmatpush3.bf16.xpose.msra.mxu0 %v510_v36  ;;  %v1222_v47 = vpop.f32.mrf.mxu1 }
 0x117   :  { %1259 = vmatprep.subr.bf16.mxu0 %v1411_v1 }
 0x119   :  { %612 = vrot.lane.b32.xlu1 %v500_v37, %s1413_s3  ;;  %1226 = vmatmul.mubr.msk.bf16.vlgmr.msra.gmra.mxu1 %vm273_vm1, %v267_v33 }
 0x11a   :  { %1231 = vmatprep.mubr.msk.bf16.mxu1 %vm1412_vm0, %v1411_v1  ;;  %1230 = vmatpush3.bf16.msra.mxu1 %v339_v45 }
 0x11b   :  { %1235 = vmatprep.subr.bf16.mxu1 %v1411_v1 }
 0x11d   :  { %1250 = vmatmul.mubr.msk.bf16.vlgmr.msra.gmra.mxu0 %vm273_vm1, %v500_v37 }
 0x11e   :  { %1261 = vmatprep.mubr.msk.bf16.mxu0 %vm1412_vm0, %v1411_v1 }
 0x183   :  { %v386_v8 = vpop.permute.xlu1 %385 }
 0x184   :  { %v391_v18 = vsel %vm273_vm1, %v386_v8, 0 }
 0x187   :  { %v383_v12 = vpop.permute.xlu1 %382 }
 0x18b   :  { %v613_v13 = vpop.permute.xlu1 %612 }
 0x1d9   :  { %v314_v50 = vpop.f32.mrf.mxu1 }
 0x1da   :  { %v315_v51 = vadd.f32 %v314_v50, %v272_v49 }
 0x1db   :  { %v1227_v52 = vpop.f32.mrf.mxu1 }
 0x1dc   :  { %v321_v53 = vsel %vm320_vm3, %v315_v51, -inf }
 0x1dd   :  { %v546_v54 = vpop.f32.mrf.mxu0  ;;  %322 = vmax.xlane.f32.xlu0 %v321_v53  ;;  %v317_v55 = vpop.f32.mrf.mxu1 }
 0x1de   :  { %v547_v4 = vadd.f32 %v546_v54, %v505_v3  ;;  %v564_v54 = vpack.c.bf16 %v1694_v46, %v1694_v46 }
 0x1df   :  { %v1228_v56 = vpop.f32.mrf.mxu1  ;;  %v1251_v57 = vpop.f32.mrf.mxu0 }
 0x1e0   :  { %v552_v7 = vsel %vm320_vm3, %v547_v4, -inf }
 0x1e1   :  { %v549_v58 = vpop.f32.mrf.mxu0 }
 0x1e3   :  { %v1252_v59 = vpop.f32.mrf.mxu0 }
 0x266   :  { %v323_v60 = vpop.xlane.xlu0 %322 }
 0x267   :  { %v324_v61 = vsub.f32 %v315_v51, %v323_v60 }
 0x269   :  { %v325_v62 = vmul.f32 1.442695, %v324_v61 }
 0x26b   :  { %1307 = vpow2.f32 %v325_v62  ;;  %v569_v62 = vsel %vm337_vm2, %v564_v54, 0 }
 0x278   :  { %v1308_v63 = vpop.eup %1307 }
 0x279   :  { %v327_v2 = vsel %vm320_vm3, %v1308_v63, 0.0 }
 0x27a   :  { %328 = vadd.xlane.f32.xlu0 %v327_v2 }
 0x290   :  { %615 = vrot.lane.b32.xlu0 %v501_v35, %s1413_s3 }
 0x2af   :  { %553 = vmax.xlane.f32.xlu0 %v552_v7 }
 0x2c5   :  { %446 = vrot.lane.b32.xlu0 %v333_v43, %s1413_s3 }
 0x303   :  { %v329_v9 = vpop.xlane.xlu0 %328 }
 0x304   :  { %1309 = vrcp.f32 %v329_v9  ;;  %v743_v9 = vld [vmem:[#allocation2 + $0x70] sm:$0xff] }
 0x307   :  { %v616_v10 = vpop.permute.xlu0 %615 }
 0x308   :  { %v621_v11 = vsel %vm273_vm1, %v616_v10, 0  ;;  %v744_v10 = vld [vmem:[#allocation2 + $0x78] sm:$0xff] }
 0x309   :  { %1260 = vmatpush3.bf16.xpose.msra.mxu0 %v621_v11  ;;  %v741_v11 = vld [vmem:[#allocation2 + $0x60] sm:$0xff] }
 0x30a   :  { %1271 = vmatprep.subr.bf16.mxu0 %v1411_v1 }
 0x310   :  { %1262 = vmatmul.mubr.msk.bf16.vlgmr.msra.gmra.mxu0 %vm273_vm1, %v613_v13  ;;  %v742_v13 = vld [vmem:[#allocation2 + $0x68] sm:$0xff] }
 0x311   :  { %v1310_v14 = vpop.eup %1309  ;;  %1287 = vmatprep.mubr.msk.bf16.mxu0 %vm1412_vm0, %v1411_v1 }
 0x312   :  { %v331_v15 = vmul.f32 %v1310_v14, %v1308_v63  ;;  %v752_v14 = vpack.c.bf16 %v742_v13, %v741_v11  ;;  %v870_v13 = vld [vmem:[#allocation4 + $0xc8] sm:$0xff] }
 0x314   :  { %v332_v16 = vpack.c.bf16 %v331_v15, %v331_v15  ;;  %v739_v15 = vld [vmem:[#allocation2 + $0x50] sm:$0xff] }
 0x316   :  { %1232 = vmatmul.mubr.msk.bf16.vlgmr.msra.gmra.mxu1 %vm320_vm3, %v332_v16  ;;  %v740_v16 = vld [vmem:[#allocation2 + $0x58] sm:$0xff] }
 0x317   :  { %1236 = vmatpush3.bf16.xpose.msra.mxu1 %v391_v18  ;;  %1237 = vmatprep.mubr.msk.bf16.mxu1 %vm1412_vm0, %v1411_v1  ;;  %v751_v18 = vpack.c.bf16 %v740_v16, %v739_v15  ;;  %v869_v16 = vld [vmem:[#allocation4 + $0xc0] sm:$0xff] }
 0x318   :  { %1241 = vmatprep.subr.bf16.mxu1 %v1411_v1 }
 0x31e   :  { %1238 = vmatmul.mubr.msk.bf16.vlgmr.msra.gmra.mxu1 %vm273_vm1, %v383_v12  ;;  %v753_v12 = vpack.c.bf16 %v744_v10, %v743_v9 }
 0x31f   :  { %1243 = vmatprep.mubr.msk.bf16.mxu1 %vm1412_vm0, %v1411_v1 }
 0x320   :  { %1272 = vmatpush3.bf16.msra.mxu0 %v753_v12 }
 0x321   :  { %1273 = vmatprep.subr.bf16.mxu0 %v1411_v1 }
 0x324   :  { %1274 = vmatpush3.bf16.msra.mxu0 %v752_v14  ;;  %v872_v14 = vld [vmem:[#allocation4 + $0xd8] sm:$0xff] }
 0x325   :  { %1275 = vmatprep.subr.bf16.mxu0 %v1411_v1  ;;  %v891_v15 = vpack.c.bf16 %v872_v14, %v870_v13  ;;  %v999_v14 = vld [vmem:[#allocation6 + $0x70] sm:$0xff] }
 0x328   :  { %1276 = vmatpush3.bf16.msra.mxu0 %v751_v18  ;;  %v871_v18 = vld [vmem:[#allocation4 + $0xd0] sm:$0xff] }
 0x329   :  { %1277 = vmatprep.subr.bf16.mxu0 %v1411_v1 }
 0x338   :  { %v554_v20 = vpop.xlane.xlu0 %553 }
 0x339   :  { %v555_v39 = vsub.f32 %v547_v4, %v554_v20  ;;  %v737_v20 = vld [vmem:[#allocation2 + $0x40] sm:$0xff] }
 0x33b   :  { %v556_v42 = vmul.f32 1.442695, %v555_v39 }
 0x33c   :  { %v447_v21 = vpop.permute.xlu0 %446 }
 0x33d   :  { %v452_v22 = vsel %vm337_vm2, %v447_v21, 0  ;;  %v738_v21 = vld [vmem:[#allocation2 + $0x48] sm:$0xff] }
 0x33e   :  { %1242 = vmatpush3.bf16.msra.mxu1 %v452_v22  ;;  %v750_v22 = vpack.c.bf16 %v738_v21, %v737_v20  ;;  %v890_v20 = vpack.c.bf16 %v871_v18, %v869_v16  ;;  %v866_v21 = vld [vmem:[#allocation4 + $0xa8] sm:$0xff]  ;;  %v1013_v16 = vld [vmem:[#allocation6 + $0xe0] sm:$0xff] }
 0x33f   :  { %1253 = vmatprep.subr.bf16.mxu1 %v1411_v1  ;;  %v1014_v18 = vld [vmem:[#allocation6 + $0xe8] sm:$0xff] }
 0x340   :  { %1278 = vmatpush3.bf16.msra.mxu0 %v750_v22  ;;  %v868_v22 = vld [vmem:[#allocation4 + $0xb8] sm:$0xff] }
 0x341   :  { %1279 = vmatprep.subr.bf16.mxu0 %v1411_v1 }
 0x3d0   :  { %v657_v23 = vpop.f32.mrf.mxu0 }
 0x3d1   :  { %v658_v34 = vadd.f32 %v657_v23, %v505_v3  ;;  %v736_v23 = vld [vmem:[#allocation2 + $0x38] sm:$0xff] }
 0x3d2   :  { %v1263_v24 = vpop.f32.mrf.mxu0 }
 0x3d3   :  { %v663_v38 = vsel %vm320_vm3, %v658_v34, -inf }
 0x3d4   :  { %v660_v25 = vpop.f32.mrf.mxu0 }
 0x3d5   :  { %v733_v25 = vld [vmem:[#allocation2 + $0x20] sm:$0xff] }
 0x3d6   :  { %v1722_v26 = vpop.f32.mrf.mxu1  ;;  %v1264_v27 = vpop.f32.mrf.mxu0 }
 0x3d7   :  { %v734_v27 = vld [vmem:[#allocation2 + $0x28] sm:$0xff] }
 0x3d8   :  { %v1233_v28 = vpop.f32.mrf.mxu1 }
 0x3d9   :  { %v748_v28 = vpack.c.bf16 %v734_v27, %v733_v25  ;;  %v862_v27 = vld [vmem:[#allocation4 + $0x88] sm:$0xff] }
 0x3da   :  { %v378_v29 = vpop.f32.mrf.mxu1 }
 0x3db   :  { %v731_v29 = vld [vmem:[#allocation2 + $0x10] sm:$0xff] }
 0x3dc   :  { %v1234_v30 = vpop.f32.mrf.mxu1 }
 0x3dd   :  { %v732_v30 = vld [vmem:[#allocation2 + $0x18] sm:$0xff] }
 0x3de   :  { %v427_v31 = vpop.f32.mrf.mxu1 }
 0x3df   :  { %v428_v32 = vadd.f32 %v427_v31, %v272_v49  ;;  %v747_v31 = vpack.c.bf16 %v732_v30, %v731_v29  ;;  %v861_v29 = vld [vmem:[#allocation4 + $0x80] sm:$0xff] }
 0x3e0   :  { %v1239_v33 = vpop.f32.mrf.mxu1 }
 0x3e1   :  { %v433_v35 = vsel %vm320_vm3, %v428_v32, -inf }
 0x3e2   :  { %434 = vmax.xlane.f32.xlu1 %v433_v35  ;;  %v430_v36 = vpop.f32.mrf.mxu1 }
 0x3e3   :  { %v729_v36 = vld [vmem:[#allocation2] sm:$0xff] }
 0x3e4   :  { %v1240_v37 = vpop.f32.mrf.mxu1 }
 0x3e5   :  { %v730_v37 = vld [vmem:[#allocation2 + $0x8] sm:$0xff] }
 0x3e6   :  { %664 = vmax.xlane.f32.xlu1 %v663_v38  ;;  %v746_v38 = vpack.c.bf16 %v730_v37, %v729_v36  ;;  %v857_v36 = vld [vmem:[#allocation4 + $0x60] sm:$0xff]  ;;  %v859_v37 = vld [vmem:[#allocation4 + $0x70] sm:$0xff] }
 0x46b   :  { %v435_v40 = vpop.xlane.xlu1 %434 }
 0x46c   :  { %v436_v41 = vsub.f32 %v428_v32, %v435_v40 }
 0x46e   :  { %v437_v43 = vmul.f32 1.442695, %v436_v41 }
 0x46f   :  { %v665_v44 = vpop.xlane.xlu1 %664 }
 0x470   :  { %1311 = vpow2.f32 %v437_v43  ;;  %v666_v45 = vsub.f32 %v658_v34, %v665_v44 }
 0x471   :  { %1313 = vpow2.f32 %v556_v42 }
 0x472   :  { %v667_v47 = vmul.f32 1.442695, %v666_v45 }
 0x474   :  { %1315 = vpow2.f32 %v667_v47 }
 0x47d   :  { %v1312_v48 = vpop.eup %1311 }
 0x47e   :  { %v439_v49 = vsel %vm320_vm3, %v1312_v48, 0.0  ;;  %v1314_v50 = vpop.eup %1313 }
 0x47f   :  { %440 = vadd.xlane.f32.xlu1 %v439_v49  ;;  %v558_v51 = vsel %vm320_vm3, %v1314_v50, 0.0 }
 0x481   :  { %v1316_v52 = vpop.eup %1315 }
 0x482   :  { %v669_v53 = vsel %vm320_vm3, %v1316_v52, 0.0 }
 0x483   :  { %559 = vadd.xlane.f32.xlu1 %v558_v51 }
 0x487   :  { %670 = vadd.xlane.f32.xlu1 %v669_v53 }
 0x498   :  { %676 = vrot.lane.b32.xlu1 %v564_v54, %s1413_s3  ;;  %v1141_v54 = vld [vmem:[%s1808_s5] ss:$0 sm:$0xff] }
 0x508   :  { %v441_v55 = vpop.xlane.xlu1 %440 }
 0x509   :  { %1317 = vrcp.f32 %v441_v55 }
 0x50c   :  { %v560_v56 = vpop.xlane.xlu1 %559 }
 0x50d   :  { %1319 = vrcp.f32 %v560_v56 }
 0x510   :  { %v671_v57 = vpop.xlane.xlu1 %670 }
 0x511   :  { %1321 = vrcp.f32 %v671_v57 }
 0x514   :  { %v677_v63 = vpop.permute.xlu1 %676 }
 0x515   :  { %v682_v4 = vsel %vm337_vm2, %v677_v63, 0  ;;  %v873_v63 = vld [vmem:[#allocation4 + $0xe0] sm:$0xff] }
 0x516   :  { %v1318_v58 = vpop.eup %1317 }
 0x517   :  { %v443_v59 = vmul.f32 %v1318_v58, %v1312_v48 }
 0x519   :  { %v444_v60 = vpack.c.bf16 %v443_v59, %v443_v59 }
 0x51a   :  { %v1320_v61 = vpop.eup %1319 }
 0x51b   :  { %1244 = vmatmul.mubr.msk.bf16.vlgmr.msra.gmra.mxu1 %vm320_vm3, %v444_v60  ;;  %v562_v46 = vmul.f32 %v1320_v61, %v1314_v50 }
 0x51c   :  { %1254 = vmatpush3.bf16.msra.mxu1 %v569_v62  ;;  %1255 = vmatprep.mubr.msk.bf16.mxu1 %vm1412_vm0, %v1411_v1 }
 0x51d   :  { %1265 = vmatprep.subr.bf16.mxu1 %v1411_v1  ;;  %v563_v2 = vpack.c.bf16 %v562_v46, %v562_v46  ;;  %v874_v46 = vld [vmem:[#allocation4 + $0xe8] sm:$0xff] }
 0x51e   :  { %v1322_v3 = vpop.eup %1321 }
 0x51f   :  { %v673_v7 = vmul.f32 %v1322_v3, %v1316_v52  ;;  %v875_v3 = vld [vmem:[#allocation4 + $0xf0] sm:$0xff] }
 0x521   :  { %v674_v8 = vpack.c.bf16 %v673_v7, %v673_v7 }
 0x523   :  { %1256 = vmatmul.mubr.msk.bf16.vlgmr.msra.gmra.mxu1 %vm320_vm3, %v563_v2 }
 0x524   :  { %1266 = vmatpush3.bf16.msra.mxu1 %v682_v4  ;;  %1267 = vmatprep.mubr.msk.bf16.mxu1 %vm1412_vm0, %v1411_v1  ;;  %v892_v4 = vpack.c.bf16 %v875_v3, %v873_v63  ;;  %v1142_v63 = vld [vmem:[%s1809_s6] ss:$0 sm:$0xff] }
 0x52b   :  { %1268 = vmatmul.mubr.msk.bf16.vlgmr.msra.gmra.mxu1 %vm320_vm3, %v674_v8 }
 0x52c   :  { %938 = vmatprep.mubr.bf16.mxu1 %v1410_v0  ;;  %v735_v0 = vld [vmem:[#allocation2 + $0x30] sm:$0xff] }
 0x52d   :  { %v749_v24 = vpack.c.bf16 %v736_v23, %v735_v0  ;;  %v889_v0 = vpack.c.bf16 %v868_v22, %v866_v21  ;;  %v865_v23 = vld [vmem:[#allocation4 + $0xa0] sm:$0xff]  ;;  %v998_v22 = vld [vmem:[#allocation6 + $0x68] sm:$0xff] }
 0x52e   :  { %v997_v21 = vld [vmem:[#allocation6 + $0x60] sm:$0xff] }
 0x52f   :  { %1280 = vmatpush3.bf16.msra.mxu0 %v749_v24  ;;  %v867_v24 = vld [vmem:[#allocation4 + $0xb0] sm:$0xff] }
 0x530   :  { %1281 = vmatprep.subr.bf16.mxu0 %v1411_v1  ;;  %v888_v25 = vpack.c.bf16 %v867_v24, %v865_v23  ;;  %v1011_v23 = vld [vmem:[#allocation6 + $0xd0] sm:$0xff]  ;;  %v1012_v24 = vld [vmem:[#allocation6 + $0xd8] sm:$0xff] }
 0x533   :  { %1282 = vmatpush3.bf16.msra.mxu0 %v748_v28  ;;  %v864_v28 = vld [vmem:[#allocation4 + $0x98] sm:$0xff] }
 0x534   :  { %1283 = vmatprep.subr.bf16.mxu0 %v1411_v1  ;;  %v887_v30 = vpack.c.bf16 %v864_v28, %v862_v27  ;;  %v995_v27 = vld [vmem:[#allocation6 + $0x50] sm:$0xff]  ;;  %v996_v28 = vld [vmem:[#allocation6 + $0x58] sm:$0xff] }
 0x537   :  { %1284 = vmatpush3.bf16.msra.mxu0 %v747_v31  ;;  %v863_v31 = vld [vmem:[#allocation4 + $0x90] sm:$0xff] }
 0x538   :  { %1285 = vmatprep.subr.bf16.mxu0 %v1411_v1 }
 0x53b   :  { %1286 = vmatpush3.bf16.msra.mxu0 %v746_v38  ;;  %v854_v38 = vld [vmem:[#allocation4 + $0x48] sm:$0xff] }
 0x5db   :  { %v488_v32 = vpop.f32.mrf.mxu1 }
 0x5dd   :  { %v1245_v33 = vpop.f32.mrf.mxu1 }
 0x5de   :  { %v860_v33 = vld [vmem:[#allocation4 + $0x78] sm:$0xff] }
 0x5df   :  { %v491_v34 = vpop.f32.mrf.mxu1 }
 0x5e0   :  { %v886_v34 = vpack.c.bf16 %v863_v31, %v861_v29  ;;  %v1024_v29 = vpack.c.bf16 %v996_v28, %v995_v27  ;;  %v1010_v31 = vld [vmem:[#allocation6 + $0xc8] sm:$0xff] }
 0x5e1   :  { %v1246_v35 = vpop.f32.mrf.mxu1 }
 0x5e3   :  { %v605_v39 = vpop.f32.mrf.mxu1 }
 0x5e5   :  { %v1257_v40 = vpop.f32.mrf.mxu1 }
 0x5e6   :  { %v884_v40 = vpack.c.bf16 %v859_v37, %v857_v36  ;;  %v1007_v36 = vld [vmem:[#allocation6 + $0xb0] sm:$0xff]  ;;  %v1008_v37 = vld [vmem:[#allocation6 + $0xb8] sm:$0xff] }
 0x5e7   :  { %v608_v41 = vpop.f32.mrf.mxu1 }
 0x5e9   :  { %v1258_v42 = vpop.f32.mrf.mxu1 }
 0x5ea   :  { %v853_v42 = vld [vmem:[#allocation4 + $0x40] sm:$0xff] }
 0x5eb   :  { %v718_v43 = vpop.f32.mrf.mxu1 }
 0x5ec   :  { %v1302_v44 = vpack.i.bf16 %v718_v43, %v488_v32  ;;  %v858_v32 = vld [vmem:[#allocation4 + $0x68] sm:$0xff]  ;;  %v855_v43 = vld [vmem:[#allocation4 + $0x50] sm:$0xff] }
 0x5ed   :  { %v1269_v45 = vpop.f32.mrf.mxu1  ;;  %v885_v35 = vpack.c.bf16 %v860_v33, %v858_v32  ;;  %v993_v33 = vld [vmem:[#allocation6 + $0x40] sm:$0xff] }
 0x5ee   :  { %1303 = vrot.lane.b32.xlu1 %v1302_v44, %s1413_s3  ;;  %v850_v44 = vld [vmem:[#allocation4 + $0x28] sm:$0xff]  ;;  %v852_v45 = vld [vmem:[#allocation4 + $0x38] sm:$0xff] }
 0x5ef   :  { %v721_v47 = vpop.f32.mrf.mxu1 }
 0x5f0   :  { %v882_v47 = vpack.c.bf16 %v855_v43, %v853_v42  ;;  %v1005_v42 = vld [vmem:[#allocation6 + $0xa0] sm:$0xff]  ;;  %v1006_v43 = vld [vmem:[#allocation6 + $0xa8] sm:$0xff] }
 0x5f1   :  { %v1270_v48 = vpop.f32.mrf.mxu1 }
 0x5f2   :  { %v881_v48 = vpack.c.bf16 %v852_v45, %v850_v44  ;;  %v1029_v44 = vpack.c.bf16 %v1006_v43, %v1005_v42  ;;  %v989_v45 = vld [vmem:[#allocation6 + $0x20] sm:$0xff] }
 0x660   :  { %v1304_v1 = vpop.permute.xlu1 %1303 }
 0x661   :  { %v1306_v49 = vunpack.i.h.bf16 %v1304_v1  ;;  %v1305_v50 = vunpack.i.l.bf16 %v1304_v1  ;;  %v849_v1 = vld [vmem:[#allocation4 + $0x20] sm:$0xff] }
 0x663   :  { %v728_v51 = vsel %vm273_vm1, %v605_v39, %v1306_v49  ;;  %v498_v52 = vsel %vm273_vm1, %v1722_v26, %v1305_v50  ;;  %v876_v26 = vld [vmem:[#allocation4 + $0xf8] sm:$0xff]  ;;  %v851_v49 = vld [vmem:[#allocation4 + $0x30] sm:$0xff]  ;;  %v846_v50 = vld [vmem:[#allocation4 + $0x8] sm:$0xff] }
 0x664   :  { %v745_v53 = vpack.c.bf16 %v728_v51, %v498_v52  ;;  %v893_v2 = vpack.c.bf16 %v876_v26, %v874_v46  ;;  %v856_v39 = vld [vmem:[#allocation4 + $0x58] sm:$0xff]  ;;  %v880_v52 = vpack.c.bf16 %v851_v49, %v849_v1  ;;  %v1003_v1 = vld [vmem:[#allocation6 + $0x90] sm:$0xff] }
 0x665   :  { %v883_v41 = vpack.c.bf16 %v856_v39, %v854_v38  ;;  %v848_v51 = vld [vmem:[#allocation4 + $0x18] sm:$0xff]  ;;  %v1030_v38 = vpack.c.bf16 %v1008_v37, %v1007_v36  ;;  %v991_v39 = vld [vmem:[#allocation6 + $0x30] sm:$0xff] }
 0x666   :  { %1288 = vmatmul.mubr.bf16.vlgmr.msra.gmra.mxu0 %v745_v53  ;;  %906 = vmatprep.subr.bf16.mxu1 %v893_v2  ;;  %v879_v53 = vpack.c.bf16 %v848_v51, %v846_v50  ;;  %v1004_v49 = vld [vmem:[#allocation6 + $0x98] sm:$0xff]  ;;  %v987_v51 = vld [vmem:[#allocation6 + $0x10] sm:$0xff] }
 0x667   :  { %907 = vmatpush1.bf16.msra.mxu1 %v892_v4  ;;  %v1028_v50 = vpack.c.bf16 %v1004_v49, %v1003_v1  ;;  %v1144_v1 = vld [vmem:[%s1814_s11] ss:$0 sm:$0xff] }
 0x668   :  { %908 = vmatprep.subr.bf16.mxu1 %v891_v15  ;;  %v1000_v15 = vld [vmem:[#allocation6 + $0x78] sm:$0xff] }
 0x66b   :  { %909 = vmatpush1.bf16.msra.mxu1 %v890_v20  ;;  %v1033_v20 = vpack.c.bf16 %v1014_v18, %v1013_v16 }
 0x66c   :  { %910 = vmatprep.subr.bf16.mxu1 %v889_v0  ;;  %v1025_v0 = vpack.c.bf16 %v998_v22, %v997_v21 }
 0x66f   :  { %911 = vmatpush1.bf16.msra.mxu1 %v888_v25  ;;  %v1032_v25 = vpack.c.bf16 %v1012_v24, %v1011_v23 }
 0x670   :  { %912 = vmatprep.subr.bf16.mxu1 %v887_v30  ;;  %v1009_v30 = vld [vmem:[#allocation6 + $0xc0] sm:$0xff] }
 0x671   :  { %v1031_v32 = vpack.c.bf16 %v1010_v31, %v1009_v30 }
 0x673   :  { %913 = vmatpush1.bf16.msra.mxu1 %v886_v34  ;;  %v994_v34 = vld [vmem:[#allocation6 + $0x48] sm:$0xff] }
 0x674   :  { %914 = vmatprep.subr.bf16.mxu1 %v885_v35  ;;  %v1023_v35 = vpack.c.bf16 %v994_v34, %v993_v33 }
 0x677   :  { %915 = vmatpush1.bf16.msra.mxu1 %v884_v40  ;;  %v992_v40 = vld [vmem:[#allocation6 + $0x38] sm:$0xff] }
 0x678   :  { %916 = vmatprep.subr.bf16.mxu1 %v883_v41  ;;  %v1022_v41 = vpack.c.bf16 %v992_v40, %v991_v39 }
 0x67b   :  { %917 = vmatpush1.bf16.msra.mxu1 %v882_v47  ;;  %v990_v47 = vld [vmem:[#allocation6 + $0x28] sm:$0xff] }
 0x67c   :  { %918 = vmatprep.subr.bf16.mxu1 %v881_v48  ;;  %v1021_v48 = vpack.c.bf16 %v990_v47, %v989_v45 }
 0x67f   :  { %919 = vmatpush1.bf16.msra.mxu1 %v880_v52  ;;  %v988_v52 = vld [vmem:[#allocation6 + $0x18] sm:$0xff] }
 0x680   :  { %920 = vmatprep.subr.bf16.mxu1 %v879_v53  ;;  %v1020_v53 = vpack.c.bf16 %v988_v52, %v987_v51 }
 0x726   :  { %v795_v55 = vpop.f32.mrf.mxu0 }
 0x727   :  { %v796_v56 = vadd.f32 %v1141_v54, %v795_v55  ;;  %v847_v55 = vld [vmem:[#allocation4 + $0x10] sm:$0xff] }
 0x728   :  { %v1289_v57 = vpop.f32.mrf.mxu0 }
 0x729   :  { %v802_v58 = vadd.f32 %v796_v56, %v1639_v5 }
 0x72a   :  { %v798_v59 = vpop.f32.mrf.mxu0 }
 0x72b   :  { %v799_v60 = vadd.f32 %v1141_v54, %v798_v59  ;;  %806 = vadd.xlane.f32.xlu0 %v802_v58  ;;  %v845_v54 = vld [vmem:[#allocation4] sm:$0xff] }
 0x72c   :  { %v1290_v61 = vpop.f32.mrf.mxu0  ;;  %v878_v56 = vpack.c.bf16 %v847_v55, %v845_v54  ;;  %v1001_v54 = vld [vmem:[#allocation6 + $0x80] sm:$0xff]  ;;  %v1002_v55 = vld [vmem:[#allocation6 + $0x88] sm:$0xff] }
 0x72d   :  { %v803_v62 = vadd.f32 %v799_v60, %v1644_v6 }
 0x72e   :  { %921 = vmatpush1.bf16.msra.mxu1 %v878_v56  ;;  %v985_v56 = vld [vmem:[#allocation6] sm:$0xff] }
 0x72f   :  { %808 = vadd.xlane.f32.xlu1 %v803_v62 }
 0x7b4   :  { %v807_v7 = vpop.xlane.xlu0 %806 }
 0x7b5   :  { %v811_v8 = vmul.f32 0.0078125, %v807_v7  ;;  %v1143_v7 = vld [vmem:[%s1810_s7] ss:$0 sm:$0xff] }
 0x7b7   :  { %v1759_v9 = vsub.f32 %v802_v58, %v811_v8 }
 0x7b8   :  { %v809_v5 = vpop.xlane.xlu1 %808 }
 0x7b9   :  { %v812_v10 = vmul.f32 0.0078125, %v809_v5  ;;  %v815_v11 = vmul.f32 %v1759_v9, %v1759_v9 }
 0x7bb   :  { %v1763_v12 = vsub.f32 %v803_v62, %v812_v10  ;;  %817 = vadd.xlane.f32.xlu0 %v815_v11  ;;  %v1015_v11 = vld [vmem:[#allocation6 + $0xf0] sm:$0xff] }
 0x7bd   :  { %v816_v6 = vmul.f32 %v1763_v12, %v1763_v12 }
 0x7bf   :  { %819 = vadd.xlane.f32.xlu0 %v816_v6  ;;  %v1016_v6 = vld [vmem:[#allocation6 + $0xf8] sm:$0xff] }
 0x7c0   :  { %v1034_v13 = vpack.c.bf16 %v1016_v6, %v1015_v11 }
 0x7c2   :  { %1181 = vmatprep.subr.bf16.mxu0 %v1034_v13 }
 0x844   :  { %v818_v57 = vpop.xlane.xlu0 %817 }
 0x845   :  { %v821_v58 = vmul.f32 0.0078125, %v818_v57  ;;  %v1027_v57 = vpack.c.bf16 %v1002_v55, %v1001_v54 }
 0x847   :  { %v823_v59 = vadd.f32 1e-05, %v821_v58  ;;  %v986_v58 = vld [vmem:[#allocation6 + $0x8] sm:$0xff] }
 0x848   :  { %v820_v60 = vpop.xlane.xlu0 %819 }
 0x849   :  { %1323 = vrsqrt.f32 %v823_v59  ;;  %v822_v61 = vmul.f32 0.0078125, %v820_v60  ;;  %v1019_v59 = vpack.c.bf16 %v986_v58, %v985_v56  ;;  %v894_v60 = vld [vmem:[%s1812_s9] sm:$0x3] }
 0x84b   :  { %v824_v62 = vadd.f32 1e-05, %v822_v61  ;;  %v899_v61 = vrot.slane %v894_v60, %v1671_v17 }
 0x84d   :  { %1325 = vrsqrt.f32 %v824_v62  ;;  %v903_v62 = vrot.slane %v894_v60, %v1676_v19 }
 0x856   :  { %v1324_v46 = vpop.eup %1323 }
 0x857   :  { %v827_v26 = vmul.f32 %v1324_v46, %v1759_v9 }
 0x859   :  { %v835_v4 = vmul.f32 %v1142_v63, %v827_v26 }
 0x85a   :  { %v1326_v2 = vpop.eup %1325 }
 0x85b   :  { %v828_v3 = vmul.f32 %v1326_v2, %v1763_v12  ;;  %v1775_v5 = vadd.f32 %v1143_v7, %v835_v4  ;;  %v1026_v12 = vpack.c.bf16 %v1000_v15, %v999_v14 }
 0x85d   :  { %v836_v8 = vmul.f32 %v1142_v63, %v828_v3  ;;  %1182 = vmatpush3.bf16.msra.mxu0 %v1026_v12 }
 0x85e   :  { %1183 = vmatprep.subr.bf16.mxu0 %v1033_v20 }
 0x85f   :  { %v1777_v10 = vadd.f32 %v1143_v7, %v836_v8 }
 0x861   :  { %v877_v9 = vpack.c.bf16 %v1777_v10, %v1775_v5  ;;  %1184 = vmatpush3.bf16.msra.mxu0 %v1025_v0 }
 0x862   :  { %1185 = vmatprep.subr.bf16.mxu0 %v1032_v25 }
 0x863   :  { %939 = vmatmul.mubr.bf16.vlgmr.msra.gmra.mxu1 %v877_v9 }
 0x865   :  { %1186 = vmatpush3.bf16.msra.mxu0 %v1024_v29 }
 0x866   :  { %1187 = vmatprep.subr.bf16.mxu0 %v1031_v32 }
 0x869   :  { %1188 = vmatpush3.bf16.msra.mxu0 %v1023_v35 }
 0x86a   :  { %1189 = vmatprep.subr.bf16.mxu0 %v1030_v38 }
 0x86d   :  { %1190 = vmatpush3.bf16.msra.mxu0 %v1022_v41 }
 0x86e   :  { %1191 = vmatprep.subr.bf16.mxu0 %v1029_v44 }
 0x871   :  { %1192 = vmatpush3.bf16.msra.mxu0 %v1021_v48 }
 0x872   :  { %1193 = vmatprep.subr.bf16.mxu0 %v1028_v50 }
 0x875   :  { %1194 = vmatpush3.bf16.msra.mxu0 %v1020_v53 }
 0x876   :  { %1195 = vmatprep.subr.bf16.mxu0 %v1027_v57 }
 0x879   :  { %1196 = vmatpush3.bf16.msra.mxu0 %v1019_v59 }
 0x923   :  { %v940_v46 = vpop.f32.mrf.mxu1 }
 0x924   :  { %v941_v26 = vadd.f32 %v940_v46, %v899_v61 }
 0x925   :  { %v942_v63 = vpop.f32.mrf.mxu1 }
 0x926   :  { %v949_v2 = vmul.f32 %v941_v26, %v941_v26  ;;  %v943_v3 = vadd.f32 %v942_v63, %v903_v62 }
 0x927   :  { %v944_v4 = vpop.f32.mrf.mxu1 }
 0x928   :  { %v953_v7 = vmul.f32 %v949_v2, %v941_v26  ;;  %v950_v8 = vmul.f32 %v943_v3, %v943_v3  ;;  %v945_v9 = vadd.f32 %v944_v4, %v899_v61 }
 0x929   :  { %v946_v11 = vpop.f32.mrf.mxu1 }
 0x92a   :  { %v957_v6 = vmul.f32 0.044715, %v953_v7  ;;  %v954_v13 = vmul.f32 %v950_v8, %v943_v3  ;;  %v951_v14 = vmul.f32 %v945_v9, %v945_v9  ;;  %v947_v15 = vadd.f32 %v946_v11, %v903_v62 }
 0x92c   :  { %v961_v12 = vadd.f32 %v957_v6, %v941_v26  ;;  %v958_v16 = vmul.f32 0.044715, %v954_v13  ;;  %v955_v18 = vmul.f32 %v951_v14, %v945_v9  ;;  %v952_v17 = vmul.f32 %v947_v15, %v947_v15  ;;  %v1146_v6 = vld [vmem:[%s1816_s13] ss:$0 sm:$0xff] }
 0x92e   :  { %v965_v20 = vmul.f32 0.7978846, %v961_v12  ;;  %v962_v19 = vadd.f32 %v958_v16, %v943_v3  ;;  %v959_v21 = vmul.f32 0.044715, %v955_v18  ;;  %v956_v22 = vmul.f32 %v952_v17, %v947_v15 }
 0x930   :  { %v966_v0 = vmul.f32 0.7978846, %v962_v19  ;;  %v963_v23 = vadd.f32 %v959_v21, %v945_v9  ;;  %v960_v24 = vmul.f32 0.044715, %v956_v22  ;;  %1327 = vtanh.f32 %v965_v20 }
 0x932   :  { %1329 = vtanh.f32 %v966_v0  ;;  %v967_v25 = vmul.f32 0.7978846, %v963_v23  ;;  %v964_v27 = vadd.f32 %v960_v24, %v947_v15 }
 0x934   :  { %1331 = vtanh.f32 %v967_v25  ;;  %v968_v28 = vmul.f32 0.7978846, %v964_v27 }
 0x936   :  { %1333 = vtanh.f32 %v968_v28 }
 0x93d   :  { %v1328_v29 = vpop.eup %1327 }
 0x93e   :  { %v973_v33 = vadd.f32 1.0, %v1328_v29 }
 0x93f   :  { %v1330_v30 = vpop.eup %1329 }
 0x940   :  { %v974_v31 = vadd.f32 1.0, %v1330_v30  ;;  %v977_v39 = vmul.f32 0.5, %v973_v33 }
 0x941   :  { %v1332_v32 = vpop.eup %1331 }
 0x942   :  { %v975_v34 = vadd.f32 1.0, %v1332_v32  ;;  %v978_v38 = vmul.f32 0.5, %v974_v31  ;;  %v981_v44 = vmul.f32 %v977_v39, %v941_v26 }
 0x943   :  { %v1334_v35 = vpop.eup %1333 }
 0x944   :  { %v979_v36 = vmul.f32 0.5, %v975_v34  ;;  %v976_v37 = vadd.f32 1.0, %v1334_v35  ;;  %v982_v42 = vmul.f32 %v978_v38, %v943_v3 }
 0x946   :  { %v980_v40 = vmul.f32 0.5, %v976_v37  ;;  %v983_v41 = vmul.f32 %v979_v36, %v945_v9  ;;  %v1145_v9 = vld [vmem:[%s1815_s12] ss:$0 sm:$0xff] }
 0x948   :  { %v984_v43 = vmul.f32 %v980_v40, %v947_v15  ;;  %v1017_v47 = vpack.c.bf16 %v983_v41, %v981_v44 }
 0x94a   :  { %v1018_v45 = vpack.c.bf16 %v984_v43, %v982_v42 }
 0x94c   :  { %1074 = vmatprep.mubr.bf16.mxu0 %v1018_v45 }
 0x94d   :  { %1075 = vmatmul.mubr.bf16.vlgmr.msra.gmra.mxu0 %v1017_v47 }
 0xa0d   :  { %v1197_v48 = vpop.f32.mrf.mxu0 }
 0xa0f   :  { %v1198_v49 = vpop.f32.mrf.mxu0 }
 0xa10   :  { %v1199_v50 = vadd.f32 %v1198_v49, %v1197_v48 }
 0xa11   :  { %v1200_v51 = vpop.f32.mrf.mxu0 }
 0xa12   :  { %v1077_v52 = vadd.f32 %v1199_v50, %v1144_v1 }
 0xa13   :  { %v1201_v53 = vpop.f32.mrf.mxu0 }
 0xa14   :  { %v1202_v54 = vadd.f32 %v1201_v53, %v1200_v51  ;;  %v1083_v55 = vadd.f32 %v1077_v52, %v1775_v5 }
 0xa16   :  { %v1080_v56 = vadd.f32 %v1202_v54, %v1144_v1  ;;  %1087 = vadd.xlane.f32.xlu1 %v1083_v55 }
 0xa18   :  { %v1084_v57 = vadd.f32 %v1080_v56, %v1777_v10 }
 0xa1a   :  { %1089 = vadd.xlane.f32.xlu0 %v1084_v57 }
 0xa9f   :  { %v1088_v58 = vpop.xlane.xlu1 %1087 }
 0xaa0   :  { %v1091_v59 = vmul.f32 0.0078125, %v1088_v58 }
 0xaa2   :  { %v1093_v60 = vsub.f32 %v1083_v55, %v1091_v59 }
 0xaa3   :  { %v1090_v61 = vpop.xlane.xlu0 %1089 }
 0xaa4   :  { %v1092_v62 = vmul.f32 0.0078125, %v1090_v61  ;;  %v1095_v46 = vmul.f32 %v1093_v60, %v1093_v60 }
 0xaa6   :  { %v1094_v26 = vsub.f32 %v1084_v57, %v1092_v62  ;;  %1097 = vadd.xlane.f32.xlu1 %v1095_v46 }
 0xaa8   :  { %v1096_v63 = vmul.f32 %v1094_v26, %v1094_v26 }
 0xaaa   :  { %1099 = vadd.xlane.f32.xlu0 %v1096_v63 }
 0xb2f   :  { %v1098_v2 = vpop.xlane.xlu1 %1097 }
 0xb30   :  { %v1101_v3 = vmul.f32 0.0078125, %v1098_v2 }
 0xb32   :  { %v1103_v4 = vadd.f32 1e-05, %v1101_v3 }
 0xb33   :  { %v1100_v7 = vpop.xlane.xlu0 %1099 }
 0xb34   :  { %1335 = vrsqrt.f32 %v1103_v4  ;;  %v1102_v5 = vmul.f32 0.0078125, %v1100_v7 }
 0xb36   :  { %v1104_v8 = vadd.f32 1e-05, %v1102_v5 }
 0xb38   :  { %1337 = vrsqrt.f32 %v1104_v8 }
 0xb41   :  { %v1336_v10 = vpop.eup %1335 }
 0xb42   :  { %v1107_v11 = vmul.f32 %v1336_v10, %v1093_v60 }
 0xb44   :  { %v1115_v13 = vmul.f32 %v1145_v9, %v1107_v11 }
 0xb45   :  { %v1338_v14 = vpop.eup %1337 }
 0xb46   :  { %v1123_v15 = vadd.f32 %v1146_v6, %v1115_v13  ;;  %v1108_v12 = vmul.f32 %v1338_v14, %v1094_v26 }
 0xb48   :  { %1125 = vst [vmem:[%s1817_s14] sm:$0xff] %v1123_v15  ;;  %v1116_v16 = vmul.f32 %v1145_v9, %v1108_v12 }
 0xb4a   :  { %v1124_v18 = vadd.f32 %v1146_v6, %v1116_v16 }
 0xb4c   :  { %1126 = vst [vmem:[%s1817_s14 + $0x8] sm:$0xff] %v1124_v18 }
 0xb4d   :  { %1131 = vsyncpa [#allocation3], 1 }
 0xb4e   :  { %1132 = vsyncpa [#allocation5], 1 }

// kernel: roberta_regressor_forward.6
= control target key start
LH: loop header
LB: loop body
LE: loop exit
PB: predicated region body
PF: predicated region fallthrough
CT: control target
= control target key end

     0   :  { %v1289_v3 = vmov 0   ;;  %v1290_v4 = vmov 0.0   ;;  %vm1291_vm0 = vmmov 0   ;;  %vm232_vm1 = vcmask 523264   ;;  %s1913_s2 = inlined_call_operand.vmem [shape: f32[128,384], index: 2, kind: input, shape index: {}]   ;;  %s1914_s0 = inlined_call_operand.vmem [shape: f32[16,128], index: 0, kind: input, shape index: {}]   ;;  %s1915_s3 = inlined_call_operand.vmem [shape: f32[1,384], index: 3, kind: input, shape index: {}]   ;;  %s1916_s1 = inlined_call_operand.vmem [shape: f32[2,8], index: 1, kind: input, shape index: {}]   ;;  %s1917_s4 = inlined_call_operand.vmem [shape: f32[128,128], index: 4, kind: input, shape index: {}]   ;;  %s1918_s5 = inlined_call_operand.vmem [shape: f32[1,128], index: 5, kind: input, shape index: {}]   ;;  %s1919_s8 = inlined_call_operand.vmem [shape: f32[128,256], index: 8, kind: input, shape index: {}]   ;;  %s1920_s6 = inlined_call_operand.vmem [shape: f32[1,128], index: 6, kind: input, shape index: {}]   ;;  %s1921_s7 = inlined_call_operand.vmem [shape: f32[1,128], index: 7, kind: input, shape index: {}]   ;;  %s1922_s10 = inlined_call_operand.vmem [shape: f32[256,128], index: 10, kind: input, shape index: {}]   ;;  %s1923_s9 = inlined_call_operand.vmem [shape: f32[1,256], index: 9, kind: input, shape index: {}]   ;;  %s1924_s11 = inlined_call_operand.vmem [shape: f32[1,128], index: 11, kind: input, shape index: {}]   ;;  %s1925_s12 = inlined_call_operand.vmem [shape: f32[1,128], index: 12, kind: input, shape index: {}]   ;;  %s1926_s13 = inlined_call_operand.vmem [shape: f32[1,128], index: 13, kind: input, shape index: {}]   ;;  %s1927_s14 = inlined_call_operand.vmem [shape: f32[16,128], index: 14, kind: output, shape index: {}]  }
   0x1   :  { %v93_v0 = vld [vmem:[%s1913_s2 + $0x158] sm:$0xff]  ;;  %v96_v1 = vld [vmem:[%s1913_s2 + $0x170] sm:$0xff]  ;;  %172 = vmatprep.mubr.bf16.mxu0 %v1289_v3  ;;  %1160 = vmatprep.subr.bf16.mxu1 %v1290_v4  ;;  %v95_v6 = vld [vmem:[%s1913_s2 + $0x168] sm:$0xff]  ;;  %vm296_vm2 = vcmask 1043456   ;;  %vm279_vm3 = vcmask 64512  }
   0x2   :  { %v92_v2 = vld [vmem:[%s1913_s2 + $0x150] sm:$0xff]  ;;  %v121_v5 = vpack.c.bf16 %v96_v1, %v93_v0  ;;  %v87_v7 = vld [vmem:[%s1913_s2 + $0x128] sm:$0xff]  ;;  %v90_v8 = vld [vmem:[%s1913_s2 + $0x140] sm:$0xff]  ;;  %1176 = vmatprep.mubr.msk.bf16.mxu1 %vm1291_vm0, %v1290_v4 }
   0x3   :  { %v120_v9 = vpack.c.bf16 %v95_v6, %v92_v2  ;;  %v118_v10 = vpack.c.bf16 %v90_v8, %v87_v7  ;;  %v86_v11 = vld [vmem:[%s1913_s2 + $0x120] sm:$0xff]  ;;  %v89_v12 = vld [vmem:[%s1913_s2 + $0x138] sm:$0xff]  ;;  %v84_v14 = vld [vmem:[%s1913_s2 + $0x110] sm:$0xff] }
   0x4   :  { %v81_v13 = vld [vmem:[%s1913_s2 + $0xf8] sm:$0xff]  ;;  %140 = vmatprep.subr.bf16.mxu0 %v121_v5  ;;  %v117_v15 = vpack.c.bf16 %v89_v12, %v86_v11  ;;  %v80_v17 = vld [vmem:[%s1913_s2 + $0xf0] sm:$0xff]  ;;  %v83_v18 = vld [vmem:[%s1913_s2 + $0x108] sm:$0xff] }
   0x5   :  { %141 = vmatpush1.bf16.msra.mxu0 %v120_v9  ;;  %v115_v16 = vpack.c.bf16 %v84_v14, %v81_v13  ;;  %v75_v19 = vld [vmem:[%s1913_s2 + $0xc8] sm:$0xff]  ;;  %v78_v20 = vld [vmem:[%s1913_s2 + $0xe0] sm:$0xff]  ;;  %v114_v21 = vpack.c.bf16 %v83_v18, %v80_v17  ;;  %v77_v24 = vld [vmem:[%s1913_s2 + $0xd8] sm:$0xff] }
   0x6   :  { %142 = vmatprep.subr.bf16.mxu0 %v118_v10  ;;  %v112_v22 = vpack.c.bf16 %v78_v20, %v75_v19  ;;  %v74_v23 = vld [vmem:[%s1913_s2 + $0xc0] sm:$0xff]  ;;  %v69_v25 = vld [vmem:[%s1913_s2 + $0x98] sm:$0xff]  ;;  %v72_v26 = vld [vmem:[%s1913_s2 + $0xb0] sm:$0xff] }
   0x7   :  { %v94_v27 = vld [vmem:[%s1913_s2 + $0x160] sm:$0xff]  ;;  %v97_v28 = vld [vmem:[%s1913_s2 + $0x178] sm:$0xff]  ;;  %v111_v29 = vpack.c.bf16 %v77_v24, %v74_v23  ;;  %v88_v31 = vld [vmem:[%s1913_s2 + $0x130] sm:$0xff]  ;;  %v109_v33 = vpack.c.bf16 %v72_v26, %v69_v25 }
   0x8   :  { %v122_v30 = vpack.c.bf16 %v97_v28, %v94_v27  ;;  %v91_v32 = vld [vmem:[%s1913_s2 + $0x148] sm:$0xff]  ;;  %v68_v34 = vld [vmem:[%s1913_s2 + $0x90] sm:$0xff]  ;;  %v66_v37 = vld [vmem:[%s1913_s2 + $0x80] sm:$0xff] }
   0x9   :  { %143 = vmatpush1.bf16.msra.mxu0 %v117_v15  ;;  %v71_v35 = vld [vmem:[%s1913_s2 + $0xa8] sm:$0xff]  ;;  %v119_v38 = vpack.c.bf16 %v91_v32, %v88_v31  ;;  %v82_v39 = vld [vmem:[%s1913_s2 + $0x100] sm:$0xff]  ;;  %v85_v40 = vld [vmem:[%s1913_s2 + $0x118] sm:$0xff]  ;;  %v125_v15 = vlaneseq }
   0xa   :  { %144 = vmatprep.subr.bf16.mxu0 %v115_v16  ;;  %v63_v36 = vld [vmem:[%s1913_s2 + $0x68] sm:$0xff]  ;;  %1161 = vmatpush3.bf16.msra.mxu1 %v122_v30  ;;  %v108_v41 = vpack.c.bf16 %v71_v35, %v68_v34  ;;  %v62_v43 = vld [vmem:[%s1913_s2 + $0x60] sm:$0xff]  ;;  %v65_v44 = vld [vmem:[%s1913_s2 + $0x78] sm:$0xff]  ;;  %v116_v47 = vpack.c.bf16 %v85_v40, %v82_v39 }
   0xb   :  { %1162 = vmatprep.subr.bf16.mxu1 %v1290_v4  ;;  %v106_v42 = vpack.c.bf16 %v66_v37, %v63_v36  ;;  %v57_v45 = vld [vmem:[%s1913_s2 + $0x38] sm:$0xff]  ;;  %v60_v46 = vld [vmem:[%s1913_s2 + $0x50] sm:$0xff]  ;;  %v79_v49 = vld [vmem:[%s1913_s2 + $0xe8] sm:$0xff]  ;;  %v105_v50 = vpack.c.bf16 %v65_v44, %v62_v43  ;;  %v126_v16 = vshrl.u32 %v125_v15, 7 }
   0xc   :  { %v76_v48 = vld [vmem:[%s1913_s2 + $0xd0] sm:$0xff]  ;;  %v103_v51 = vpack.c.bf16 %v60_v46, %v57_v45  ;;  %v59_v53 = vld [vmem:[%s1913_s2 + $0x48] sm:$0xff]  ;;  %v54_v55 = vld [vmem:[%s1913_s2 + $0x20] sm:$0xff] }
   0xd   :  { %145 = vmatpush1.bf16.msra.mxu0 %v114_v21  ;;  %v56_v52 = vld [vmem:[%s1913_s2 + $0x30] sm:$0xff]  ;;  %v51_v54 = vld [vmem:[%s1913_s2 + $0x8] sm:$0xff]  ;;  %v113_v56 = vpack.c.bf16 %v79_v49, %v76_v48  ;;  %v70_v57 = vld [vmem:[%s1913_s2 + $0xa0] sm:$0xff]  ;;  %v1541_v17 = vsub.s32 0, %v126_v16  ;;  %v1546_v19 = vsub.s32 1, %v126_v16 }
   0xe   :  { %146 = vmatprep.subr.bf16.mxu0 %v112_v22  ;;  %1163 = vmatpush3.bf16.msra.mxu1 %v119_v38  ;;  %v73_v58 = vld [vmem:[%s1913_s2 + $0xb8] sm:$0xff]  ;;  %v102_v59 = vpack.c.bf16 %v59_v53, %v56_v52  ;;  %v100_v60 = vpack.c.bf16 %v54_v55, %v51_v54  ;;  %v50_v61 = vld [vmem:[%s1913_s2] sm:$0xff]  ;;  %v64_v0 = vld [vmem:[%s1913_s2 + $0x70] sm:$0xff]  ;;  %v135_v38 = vsub.s32 2, %v126_v16 }
   0xf   :  { %1164 = vmatprep.subr.bf16.mxu1 %v1290_v4  ;;  %v53_v62 = vld [vmem:[%s1913_s2 + $0x18] sm:$0xff]  ;;  %v110_v63 = vpack.c.bf16 %v73_v58, %v70_v57  ;;  %v67_v1 = vld [vmem:[%s1913_s2 + $0x88] sm:$0xff]  ;;  %v1509_v5 = vld [vmem:[%s1914_s0] sm:$0xff] }
  0x10   :  { %v99_v2 = vpack.c.bf16 %v53_v62, %v50_v61  ;;  %v1514_v6 = vld [vmem:[%s1914_s0 + $0x8] sm:$0xff]  ;;  %v107_v7 = vpack.c.bf16 %v67_v1, %v64_v0  ;;  %v58_v9 = vld [vmem:[%s1913_s2 + $0x40] sm:$0xff]  ;;  %v61_v10 = vld [vmem:[%s1913_s2 + $0x58] sm:$0xff] }
  0x11   :  { %147 = vmatpush1.bf16.msra.mxu0 %v111_v29  ;;  %v98_v8 = vpack.c.bf16 %v1514_v6, %v1509_v5  ;;  %v104_v11 = vpack.c.bf16 %v61_v10, %v58_v9  ;;  %v52_v12 = vld [vmem:[%s1913_s2 + $0x10] sm:$0xff]  ;;  %v55_v13 = vld [vmem:[%s1913_s2 + $0x28] sm:$0xff]  ;;  %v123_v18 = vld [vmem:[%s1915_s3] sm:$0x7]  ;;  %s1292_s3 = smov 64  }
  0x12   :  { %148 = vmatprep.subr.bf16.mxu0 %v109_v33  ;;  %1165 = vmatpush3.bf16.msra.mxu1 %v116_v47  ;;  %v101_v14 = vpack.c.bf16 %v55_v13, %v52_v12  ;;  %v128_v20 = vrot.slane %v123_v18, %v1541_v17  ;;  %v132_v21 = vrot.slane %v123_v18, %v1546_v19  ;;  %v224_v48 = vld [vmem:[%s1916_s1] sm:$0x3] }
  0x13   :  { %1166 = vmatprep.subr.bf16.mxu1 %v1290_v4  ;;  %v136_v39 = vrot.slane %v123_v18, %v135_v38  ;;  %v231_v49 = vrot.slane %v224_v48, %v1541_v17  ;;  %v464_v1 = vrot.slane %v224_v48, %v1546_v19 }
  0x15   :  { %149 = vmatpush1.bf16.msra.mxu0 %v108_v41 }
  0x16   :  { %150 = vmatprep.subr.bf16.mxu0 %v106_v42  ;;  %1167 = vmatpush3.bf16.msra.mxu1 %v113_v56 }
  0x17   :  { %1168 = vmatprep.subr.bf16.mxu1 %v1290_v4 }
  0x19   :  { %151 = vmatpush1.bf16.msra.mxu0 %v105_v50 }
  0x1a   :  { %152 = vmatprep.subr.bf16.mxu0 %v103_v51  ;;  %1169 = vmatpush3.bf16.msra.mxu1 %v110_v63 }
  0x1b   :  { %1170 = vmatprep.subr.bf16.mxu1 %v1290_v4 }
  0x1d   :  { %153 = vmatpush1.bf16.msra.mxu0 %v102_v59 }
  0x1e   :  { %154 = vmatprep.subr.bf16.mxu0 %v100_v60  ;;  %1171 = vmatpush3.bf16.msra.mxu1 %v107_v7 }
  0x1f   :  { %1172 = vmatprep.subr.bf16.mxu1 %v1290_v4 }
  0x21   :  { %155 = vmatpush1.bf16.msra.mxu0 %v99_v2 }
  0x22   :  { %1204 = vmatprep.subr.bf16.mxu0 %v1290_v4  ;;  %1173 = vmatpush3.bf16.msra.mxu1 %v104_v11 }
  0x23   :  { %1174 = vmatprep.subr.bf16.mxu1 %v1290_v4 }
  0x24   :  { %173 = vmatmul.mubr.bf16.vlgmr.msra.gmra.mxu0 %v98_v8 }
  0x25   :  { %1206 = vmatprep.mubr.msk.bf16.mxu0 %vm1291_vm0, %v1290_v4 }
  0x26   :  { %1175 = vmatpush3.bf16.msra.mxu1 %v101_v14 }
  0x27   :  { %1180 = vmatprep.subr.bf16.mxu1 %v1290_v4 }
  0x29   :  { %1177 = vmatmul.mubr.bf16.vlgmr.msra.gmra.mxu1 %v98_v8 }
  0x2a   :  { %1182 = vmatprep.mubr.msk.bf16.mxu1 %vm1291_vm0, %v1290_v4 }
  0xe4   :  { %v174_v22 = vpop.f32.mrf.mxu0 }
  0xe5   :  { %v175_v23 = vadd.f32 %v174_v22, %v128_v20 }
  0xe6   :  { %v176_v24 = vpop.f32.mrf.mxu0 }
  0xe7   :  { %v177_v25 = vadd.f32 %v176_v24, %v132_v21  ;;  %v225_v27 = vmul.f32 0.125, %v175_v23 }
  0xe8   :  { %v178_v26 = vpop.f32.mrf.mxu0 }
  0xe9   :  { %v227_v28 = vpack.c.bf16 %v177_v25, %v177_v25  ;;  %v179_v29 = vadd.f32 %v178_v26, %v128_v20  ;;  %v226_v33 = vpack.c.bf16 %v225_v27, %v225_v27  ;;  %v217_v40 = vpop.f32.mrf.mxu1 }
  0xea   :  { %v180_v30 = vpop.f32.mrf.mxu0  ;;  %v218_v41 = vadd.f32 %v217_v40, %v136_v39 }
  0xeb   :  { %v237_v31 = vsel %vm232_vm1, %v227_v28, 0  ;;  %v181_v32 = vadd.f32 %v180_v30, %v132_v21  ;;  %344 = vrot.lane.b32.xlu1 %v227_v28, %s1292_s3  ;;  %v458_v34 = vmul.f32 0.125, %v179_v29  ;;  %v1178_v42 = vpop.f32.mrf.mxu1 }
  0xec   :  { %1181 = vmatpush3.bf16.xpose.msra.mxu1 %v237_v31  ;;  %v292_v43 = vpack.c.bf16 %v218_v41, %v218_v41 }
  0xed   :  { %v460_v35 = vpack.c.bf16 %v181_v32, %v181_v32  ;;  %1186 = vmatprep.subr.bf16.mxu1 %v1290_v4  ;;  %v459_v37 = vpack.c.bf16 %v458_v34, %v458_v34  ;;  %v220_v44 = vpop.f32.mrf.mxu1 }
  0xee   :  { %v298_v45 = vsel %vm296_vm2, %v292_v43, 0  ;;  %v1564_v46 = vadd.f32 %v220_v44, %v136_v39 }
  0xef   :  { %v469_v36 = vsel %vm232_vm1, %v460_v35, 0  ;;  %341 = vrot.lane.b32.xlu1 %v226_v33, %s1292_s3  ;;  %v1179_v47 = vpop.f32.mrf.mxu1 }
  0xf0   :  { %1205 = vmatpush3.bf16.xpose.msra.mxu0 %v469_v36 }
  0xf1   :  { %1216 = vmatprep.subr.bf16.mxu0 %v1290_v4 }
  0xf3   :  { %571 = vrot.lane.b32.xlu1 %v459_v37, %s1292_s3  ;;  %1183 = vmatmul.mubr.msk.bf16.vlgmr.msra.gmra.mxu1 %vm232_vm1, %v226_v33 }
  0xf4   :  { %1188 = vmatprep.mubr.msk.bf16.mxu1 %vm1291_vm0, %v1290_v4  ;;  %1187 = vmatpush3.bf16.msra.mxu1 %v298_v45 }
  0xf5   :  { %1192 = vmatprep.subr.bf16.mxu1 %v1290_v4 }
  0xf7   :  { %1207 = vmatmul.mubr.msk.bf16.vlgmr.msra.gmra.mxu0 %vm232_vm1, %v459_v37 }
  0xf8   :  { %1218 = vmatprep.mubr.msk.bf16.mxu0 %vm1291_vm0, %v1290_v4 }
 0x15d   :  { %v345_v8 = vpop.permute.xlu1 %344 }
 0x15e   :  { %v350_v18 = vsel %vm232_vm1, %v345_v8, 0 }
 0x161   :  { %v342_v12 = vpop.permute.xlu1 %341 }
 0x165   :  { %v572_v13 = vpop.permute.xlu1 %571 }
 0x1b3   :  { %v273_v50 = vpop.f32.mrf.mxu1 }
 0x1b4   :  { %v274_v51 = vadd.f32 %v273_v50, %v231_v49 }
 0x1b5   :  { %v1184_v52 = vpop.f32.mrf.mxu1 }
 0x1b6   :  { %v280_v53 = vsel %vm279_vm3, %v274_v51, -inf }
 0x1b7   :  { %v505_v54 = vpop.f32.mrf.mxu0  ;;  %281 = vmax.xlane.f32.xlu0 %v280_v53  ;;  %v276_v55 = vpop.f32.mrf.mxu1 }
 0x1b8   :  { %v506_v2 = vadd.f32 %v505_v54, %v464_v1  ;;  %v523_v54 = vpack.c.bf16 %v1564_v46, %v1564_v46 }
 0x1b9   :  { %v1185_v56 = vpop.f32.mrf.mxu1  ;;  %v1208_v57 = vpop.f32.mrf.mxu0 }
 0x1ba   :  { %v511_v7 = vsel %vm279_vm3, %v506_v2, -inf }
 0x1bb   :  { %v508_v58 = vpop.f32.mrf.mxu0 }
 0x1bd   :  { %v1209_v59 = vpop.f32.mrf.mxu0 }
 0x240   :  { %v282_v60 = vpop.xlane.xlu0 %281 }
 0x241   :  { %v283_v61 = vsub.f32 %v274_v51, %v282_v60 }
 0x243   :  { %v284_v62 = vmul.f32 1.442695, %v283_v61 }
 0x245   :  { %1257 = vpow2.f32 %v284_v62  ;;  %v528_v62 = vsel %vm296_vm2, %v523_v54, 0 }
 0x252   :  { %v1258_v63 = vpop.eup %1257 }
 0x253   :  { %v286_v0 = vsel %vm279_vm3, %v1258_v63, 0.0 }
 0x254   :  { %287 = vadd.xlane.f32.xlu0 %v286_v0 }
 0x26a   :  { %574 = vrot.lane.b32.xlu0 %v460_v35, %s1292_s3 }
 0x289   :  { %512 = vmax.xlane.f32.xlu0 %v511_v7 }
 0x29f   :  { %405 = vrot.lane.b32.xlu0 %v292_v43, %s1292_s3 }
 0x2dd   :  { %v288_v9 = vpop.xlane.xlu0 %287 }
 0x2de   :  { %1259 = vrcp.f32 %v288_v9  ;;  %v702_v9 = vld [vmem:[%s1917_s4 + $0x70] sm:$0xff] }
 0x2e1   :  { %v575_v10 = vpop.permute.xlu0 %574 }
 0x2e2   :  { %v580_v11 = vsel %vm232_vm1, %v575_v10, 0  ;;  %v703_v10 = vld [vmem:[%s1917_s4 + $0x78] sm:$0xff] }
 0x2e3   :  { %1217 = vmatpush3.bf16.xpose.msra.mxu0 %v580_v11  ;;  %v700_v11 = vld [vmem:[%s1917_s4 + $0x60] sm:$0xff] }
 0x2e4   :  { %1228 = vmatprep.subr.bf16.mxu0 %v1290_v4 }
 0x2ea   :  { %1219 = vmatmul.mubr.msk.bf16.vlgmr.msra.gmra.mxu0 %vm232_vm1, %v572_v13  ;;  %v701_v13 = vld [vmem:[%s1917_s4 + $0x68] sm:$0xff] }
 0x2eb   :  { %v1260_v14 = vpop.eup %1259  ;;  %1244 = vmatprep.mubr.msk.bf16.mxu0 %vm1291_vm0, %v1290_v4 }
 0x2ec   :  { %v290_v15 = vmul.f32 %v1260_v14, %v1258_v63  ;;  %v711_v14 = vpack.c.bf16 %v701_v13, %v700_v11  ;;  %v829_v13 = vld [vmem:[%s1919_s8 + $0xc8] sm:$0xff] }
 0x2ee   :  { %v291_v16 = vpack.c.bf16 %v290_v15, %v290_v15  ;;  %v699_v15 = vld [vmem:[%s1917_s4 + $0x58] sm:$0xff] }
 0x2f0   :  { %1189 = vmatmul.mubr.msk.bf16.vlgmr.msra.gmra.mxu1 %vm279_vm3, %v291_v16 }
 0x2f1   :  { %1193 = vmatpush3.bf16.xpose.msra.mxu1 %v350_v18  ;;  %1194 = vmatprep.mubr.msk.bf16.mxu1 %vm1291_vm0, %v1290_v4  ;;  %v696_v18 = vld [vmem:[%s1917_s4 + $0x40] sm:$0xff] }
 0x2f2   :  { %1198 = vmatprep.subr.bf16.mxu1 %v1290_v4 }
 0x2f8   :  { %1195 = vmatmul.mubr.msk.bf16.vlgmr.msra.gmra.mxu1 %vm232_vm1, %v342_v12  ;;  %v712_v12 = vpack.c.bf16 %v703_v10, %v702_v9 }
 0x2f9   :  { %1200 = vmatprep.mubr.msk.bf16.mxu1 %vm1291_vm0, %v1290_v4 }
 0x2fa   :  { %1229 = vmatpush3.bf16.msra.mxu0 %v712_v12 }
 0x2fb   :  { %1230 = vmatprep.subr.bf16.mxu0 %v1290_v4 }
 0x2fe   :  { %1231 = vmatpush3.bf16.msra.mxu0 %v711_v14  ;;  %v831_v14 = vld [vmem:[%s1919_s8 + $0xd8] sm:$0xff] }
 0x2ff   :  { %1232 = vmatprep.subr.bf16.mxu0 %v1290_v4 }
 0x312   :  { %v513_v20 = vpop.xlane.xlu0 %512 }
 0x313   :  { %v514_v39 = vsub.f32 %v506_v2, %v513_v20  ;;  %v697_v20 = vld [vmem:[%s1917_s4 + $0x48] sm:$0xff] }
 0x315   :  { %v515_v42 = vmul.f32 1.442695, %v514_v39 }
 0x316   :  { %v406_v21 = vpop.permute.xlu0 %405 }
 0x317   :  { %v411_v22 = vsel %vm296_vm2, %v406_v21, 0  ;;  %v709_v21 = vpack.c.bf16 %v697_v20, %v696_v18  ;;  %v825_v20 = vld [vmem:[%s1919_s8 + $0xa8] sm:$0xff] }
 0x318   :  { %1199 = vmatpush3.bf16.msra.mxu1 %v411_v22  ;;  %v694_v22 = vld [vmem:[%s1917_s4 + $0x30] sm:$0xff] }
 0x319   :  { %1210 = vmatprep.subr.bf16.mxu1 %v1290_v4 }
 0x3aa   :  { %v616_v23 = vpop.f32.mrf.mxu0 }
 0x3ab   :  { %v617_v34 = vadd.f32 %v616_v23, %v464_v1  ;;  %v695_v23 = vld [vmem:[%s1917_s4 + $0x38] sm:$0xff] }
 0x3ac   :  { %v1220_v24 = vpop.f32.mrf.mxu0 }
 0x3ad   :  { %v622_v38 = vsel %vm279_vm3, %v617_v34, -inf  ;;  %v708_v24 = vpack.c.bf16 %v695_v23, %v694_v22  ;;  %v824_v23 = vld [vmem:[%s1919_s8 + $0xa0] sm:$0xff] }
 0x3ae   :  { %v619_v25 = vpop.f32.mrf.mxu0 }
 0x3af   :  { %v692_v25 = vld [vmem:[%s1917_s4 + $0x20] sm:$0xff] }
 0x3b0   :  { %v1592_v26 = vpop.f32.mrf.mxu1  ;;  %v1221_v27 = vpop.f32.mrf.mxu0 }
 0x3b1   :  { %v693_v27 = vld [vmem:[%s1917_s4 + $0x28] sm:$0xff] }
 0x3b2   :  { %v1190_v28 = vpop.f32.mrf.mxu1 }
 0x3b3   :  { %v707_v28 = vpack.c.bf16 %v693_v27, %v692_v25  ;;  %v821_v27 = vld [vmem:[%s1919_s8 + $0x88] sm:$0xff] }
 0x3b4   :  { %v337_v29 = vpop.f32.mrf.mxu1 }
 0x3b5   :  { %v690_v29 = vld [vmem:[%s1917_s4 + $0x10] sm:$0xff] }
 0x3b6   :  { %v1191_v30 = vpop.f32.mrf.mxu1 }
 0x3b7   :  { %v691_v30 = vld [vmem:[%s1917_s4 + $0x18] sm:$0xff] }
 0x3b8   :  { %v386_v31 = vpop.f32.mrf.mxu1 }
 0x3b9   :  { %v387_v32 = vadd.f32 %v386_v31, %v231_v49  ;;  %v706_v31 = vpack.c.bf16 %v691_v30, %v690_v29  ;;  %v820_v29 = vld [vmem:[%s1919_s8 + $0x80] sm:$0xff] }
 0x3ba   :  { %v1196_v33 = vpop.f32.mrf.mxu1 }
 0x3bb   :  { %v392_v35 = vsel %vm279_vm3, %v387_v32, -inf }
 0x3bc   :  { %393 = vmax.xlane.f32.xlu1 %v392_v35  ;;  %v389_v36 = vpop.f32.mrf.mxu1 }
 0x3bd   :  { %v688_v36 = vld [vmem:[%s1917_s4] sm:$0xff] }
 0x3be   :  { %v1197_v37 = vpop.f32.mrf.mxu1 }
 0x3bf   :  { %v689_v37 = vld [vmem:[%s1917_s4 + $0x8] sm:$0xff] }
 0x3c0   :  { %623 = vmax.xlane.f32.xlu1 %v622_v38  ;;  %v705_v38 = vpack.c.bf16 %v689_v37, %v688_v36  ;;  %v816_v36 = vld [vmem:[%s1919_s8 + $0x60] sm:$0xff]  ;;  %v818_v37 = vld [vmem:[%s1919_s8 + $0x70] sm:$0xff] }
 0x445   :  { %v394_v40 = vpop.xlane.xlu1 %393 }
 0x446   :  { %v395_v41 = vsub.f32 %v387_v32, %v394_v40 }
 0x448   :  { %v396_v43 = vmul.f32 1.442695, %v395_v41 }
 0x449   :  { %v624_v44 = vpop.xlane.xlu1 %623 }
 0x44a   :  { %1261 = vpow2.f32 %v396_v43  ;;  %v625_v45 = vsub.f32 %v617_v34, %v624_v44 }
 0x44b   :  { %1263 = vpow2.f32 %v515_v42 }
 0x44c   :  { %v626_v47 = vmul.f32 1.442695, %v625_v45 }
 0x44e   :  { %1265 = vpow2.f32 %v626_v47 }
 0x457   :  { %v1262_v48 = vpop.eup %1261 }
 0x458   :  { %v398_v49 = vsel %vm279_vm3, %v1262_v48, 0.0  ;;  %v1264_v50 = vpop.eup %1263 }
 0x459   :  { %399 = vadd.xlane.f32.xlu1 %v398_v49  ;;  %v517_v51 = vsel %vm279_vm3, %v1264_v50, 0.0 }
 0x45b   :  { %v1266_v52 = vpop.eup %1265 }
 0x45c   :  { %v628_v53 = vsel %vm279_vm3, %v1266_v52, 0.0 }
 0x45d   :  { %518 = vadd.xlane.f32.xlu1 %v517_v51 }
 0x461   :  { %629 = vadd.xlane.f32.xlu1 %v628_v53 }
 0x472   :  { %635 = vrot.lane.b32.xlu1 %v523_v54, %s1292_s3  ;;  %v1098_v54 = vld [vmem:[%s1918_s5] ss:$0 sm:$0xff] }
 0x4e2   :  { %v400_v55 = vpop.xlane.xlu1 %399 }
 0x4e3   :  { %1267 = vrcp.f32 %v400_v55 }
 0x4e6   :  { %v519_v56 = vpop.xlane.xlu1 %518 }
 0x4e7   :  { %1269 = vrcp.f32 %v519_v56 }
 0x4ea   :  { %v630_v57 = vpop.xlane.xlu1 %629 }
 0x4eb   :  { %1271 = vrcp.f32 %v630_v57 }
 0x4ee   :  { %v636_v63 = vpop.permute.xlu1 %635 }
 0x4ef   :  { %v641_v2 = vsel %vm296_vm2, %v636_v63, 0  ;;  %v832_v63 = vld [vmem:[%s1919_s8 + $0xe0] sm:$0xff] }
 0x4f0   :  { %v1268_v58 = vpop.eup %1267 }
 0x4f1   :  { %v402_v59 = vmul.f32 %v1268_v58, %v1262_v48 }
 0x4f3   :  { %v403_v60 = vpack.c.bf16 %v402_v59, %v402_v59 }
 0x4f4   :  { %v1270_v61 = vpop.eup %1269 }
 0x4f5   :  { %1201 = vmatmul.mubr.msk.bf16.vlgmr.msra.gmra.mxu1 %vm279_vm3, %v403_v60  ;;  %v521_v46 = vmul.f32 %v1270_v61, %v1264_v50 }
 0x4f6   :  { %1211 = vmatpush3.bf16.msra.mxu1 %v528_v62  ;;  %1212 = vmatprep.mubr.msk.bf16.mxu1 %vm1291_vm0, %v1290_v4 }
 0x4f7   :  { %1222 = vmatprep.subr.bf16.mxu1 %v1290_v4  ;;  %v522_v0 = vpack.c.bf16 %v521_v46, %v521_v46  ;;  %v835_v46 = vld [vmem:[%s1919_s8 + $0xf8] sm:$0xff] }
 0x4f8   :  { %v1272_v1 = vpop.eup %1271 }
 0x4f9   :  { %v632_v7 = vmul.f32 %v1272_v1, %v1266_v52 }
 0x4fb   :  { %v633_v8 = vpack.c.bf16 %v632_v7, %v632_v7 }
 0x4fd   :  { %1213 = vmatmul.mubr.msk.bf16.vlgmr.msra.gmra.mxu1 %vm279_vm3, %v522_v0  ;;  %v834_v0 = vld [vmem:[%s1919_s8 + $0xf0] sm:$0xff] }
 0x4fe   :  { %1223 = vmatpush3.bf16.msra.mxu1 %v641_v2  ;;  %1224 = vmatprep.mubr.msk.bf16.mxu1 %vm1291_vm0, %v1290_v4  ;;  %v851_v1 = vpack.c.bf16 %v834_v0, %v832_v63  ;;  %v1099_v63 = vld [vmem:[%s1920_s6] ss:$0 sm:$0xff] }
 0x505   :  { %1225 = vmatmul.mubr.msk.bf16.vlgmr.msra.gmra.mxu1 %vm279_vm3, %v633_v8 }
 0x506   :  { %897 = vmatprep.mubr.bf16.mxu1 %v1289_v3  ;;  %v698_v3 = vld [vmem:[%s1917_s4 + $0x50] sm:$0xff] }
 0x507   :  { %v710_v16 = vpack.c.bf16 %v699_v15, %v698_v3  ;;  %v850_v3 = vpack.c.bf16 %v831_v14, %v829_v13  ;;  %v828_v15 = vld [vmem:[%s1919_s8 + $0xc0] sm:$0xff]  ;;  %v958_v13 = vld [vmem:[%s1922_s10 + $0x70] sm:$0xff]  ;;  %v959_v14 = vld [vmem:[%s1922_s10 + $0x78] sm:$0xff] }
 0x509   :  { %1233 = vmatpush3.bf16.msra.mxu0 %v710_v16  ;;  %v830_v16 = vld [vmem:[%s1919_s8 + $0xd0] sm:$0xff] }
 0x50a   :  { %1234 = vmatprep.subr.bf16.mxu0 %v1290_v4  ;;  %v849_v18 = vpack.c.bf16 %v830_v16, %v828_v15  ;;  %v972_v15 = vld [vmem:[%s1922_s10 + $0xe0] sm:$0xff]  ;;  %v973_v16 = vld [vmem:[%s1922_s10 + $0xe8] sm:$0xff] }
 0x50d   :  { %1235 = vmatpush3.bf16.msra.mxu0 %v709_v21  ;;  %v827_v21 = vld [vmem:[%s1919_s8 + $0xb8] sm:$0xff] }
 0x50e   :  { %1236 = vmatprep.subr.bf16.mxu0 %v1290_v4  ;;  %v848_v22 = vpack.c.bf16 %v827_v21, %v825_v20  ;;  %v956_v20 = vld [vmem:[%s1922_s10 + $0x60] sm:$0xff]  ;;  %v957_v21 = vld [vmem:[%s1922_s10 + $0x68] sm:$0xff] }
 0x511   :  { %1237 = vmatpush3.bf16.msra.mxu0 %v708_v24  ;;  %v826_v24 = vld [vmem:[%s1919_s8 + $0xb0] sm:$0xff] }
 0x512   :  { %1238 = vmatprep.subr.bf16.mxu0 %v1290_v4  ;;  %v847_v25 = vpack.c.bf16 %v826_v24, %v824_v23  ;;  %v970_v23 = vld [vmem:[%s1922_s10 + $0xd0] sm:$0xff]  ;;  %v971_v24 = vld [vmem:[%s1922_s10 + $0xd8] sm:$0xff] }
 0x515   :  { %1239 = vmatpush3.bf16.msra.mxu0 %v707_v28  ;;  %v823_v28 = vld [vmem:[%s1919_s8 + $0x98] sm:$0xff] }
 0x516   :  { %1240 = vmatprep.subr.bf16.mxu0 %v1290_v4  ;;  %v846_v30 = vpack.c.bf16 %v823_v28, %v821_v27  ;;  %v954_v27 = vld [vmem:[%s1922_s10 + $0x50] sm:$0xff]  ;;  %v955_v28 = vld [vmem:[%s1922_s10 + $0x58] sm:$0xff] }
 0x519   :  { %1241 = vmatpush3.bf16.msra.mxu0 %v706_v31  ;;  %v822_v31 = vld [vmem:[%s1919_s8 + $0x90] sm:$0xff] }
 0x51a   :  { %1242 = vmatprep.subr.bf16.mxu0 %v1290_v4 }
 0x51d   :  { %1243 = vmatpush3.bf16.msra.mxu0 %v705_v38  ;;  %v813_v38 = vld [vmem:[%s1919_s8 + $0x48] sm:$0xff] }
 0x5b5   :  { %v447_v32 = vpop.f32.mrf.mxu1 }
 0x5b7   :  { %v1202_v33 = vpop.f32.mrf.mxu1 }
 0x5b8   :  { %v819_v33 = vld [vmem:[%s1919_s8 + $0x78] sm:$0xff] }
 0x5b9   :  { %v450_v34 = vpop.f32.mrf.mxu1 }
 0x5ba   :  { %v845_v34 = vpack.c.bf16 %v822_v31, %v820_v29  ;;  %v983_v29 = vpack.c.bf16 %v955_v28, %v954_v27  ;;  %v969_v31 = vld [vmem:[%s1922_s10 + $0xc8] sm:$0xff] }
 0x5bb   :  { %v1203_v35 = vpop.f32.mrf.mxu1 }
 0x5bd   :  { %v564_v39 = vpop.f32.mrf.mxu1 }
 0x5bf   :  { %v1214_v40 = vpop.f32.mrf.mxu1 }
 0x5c0   :  { %v843_v40 = vpack.c.bf16 %v818_v37, %v816_v36  ;;  %v966_v36 = vld [vmem:[%s1922_s10 + $0xb0] sm:$0xff]  ;;  %v967_v37 = vld [vmem:[%s1922_s10 + $0xb8] sm:$0xff] }
 0x5c1   :  { %v567_v41 = vpop.f32.mrf.mxu1 }
 0x5c3   :  { %v1215_v42 = vpop.f32.mrf.mxu1 }
 0x5c4   :  { %v812_v42 = vld [vmem:[%s1919_s8 + $0x40] sm:$0xff] }
 0x5c5   :  { %v677_v43 = vpop.f32.mrf.mxu1 }
 0x5c6   :  { %v1252_v4 = vpack.i.bf16 %v677_v43, %v447_v32  ;;  %v817_v32 = vld [vmem:[%s1919_s8 + $0x68] sm:$0xff]  ;;  %v814_v43 = vld [vmem:[%s1919_s8 + $0x50] sm:$0xff] }
 0x5c7   :  { %v1226_v44 = vpop.f32.mrf.mxu1  ;;  %v844_v35 = vpack.c.bf16 %v819_v33, %v817_v32  ;;  %v952_v33 = vld [vmem:[%s1922_s10 + $0x40] sm:$0xff] }
 0x5c8   :  { %1253 = vrot.lane.b32.xlu1 %v1252_v4, %s1292_s3  ;;  %v809_v4 = vld [vmem:[%s1919_s8 + $0x28] sm:$0xff]  ;;  %v811_v44 = vld [vmem:[%s1919_s8 + $0x38] sm:$0xff] }
 0x5c9   :  { %v680_v45 = vpop.f32.mrf.mxu1 }
 0x5ca   :  { %v841_v45 = vpack.c.bf16 %v814_v43, %v812_v42  ;;  %v964_v42 = vld [vmem:[%s1922_s10 + $0xa0] sm:$0xff]  ;;  %v965_v43 = vld [vmem:[%s1922_s10 + $0xa8] sm:$0xff] }
 0x5cb   :  { %v1227_v47 = vpop.f32.mrf.mxu1 }
 0x5cc   :  { %v840_v47 = vpack.c.bf16 %v811_v44, %v809_v4  ;;  %v988_v4 = vpack.c.bf16 %v965_v43, %v964_v42  ;;  %v948_v44 = vld [vmem:[%s1922_s10 + $0x20] sm:$0xff] }
 0x63a   :  { %v1254_v48 = vpop.permute.xlu1 %1253 }
 0x63b   :  { %v1256_v49 = vunpack.i.h.bf16 %v1254_v48  ;;  %v1255_v50 = vunpack.i.l.bf16 %v1254_v48  ;;  %v808_v48 = vld [vmem:[%s1919_s8 + $0x20] sm:$0xff] }
 0x63d   :  { %v687_v51 = vsel %vm232_vm1, %v564_v39, %v1256_v49  ;;  %v457_v52 = vsel %vm232_vm1, %v1592_v26, %v1255_v50  ;;  %v833_v26 = vld [vmem:[%s1919_s8 + $0xe8] sm:$0xff]  ;;  %v815_v39 = vld [vmem:[%s1919_s8 + $0x58] sm:$0xff]  ;;  %v810_v49 = vld [vmem:[%s1919_s8 + $0x30] sm:$0xff] }
 0x63e   :  { %v704_v53 = vpack.c.bf16 %v687_v51, %v457_v52  ;;  %v842_v41 = vpack.c.bf16 %v815_v39, %v813_v38  ;;  %v805_v50 = vld [vmem:[%s1919_s8 + $0x8] sm:$0xff]  ;;  %v807_v51 = vld [vmem:[%s1919_s8 + $0x18] sm:$0xff]  ;;  %v839_v52 = vpack.c.bf16 %v810_v49, %v808_v48  ;;  %v989_v38 = vpack.c.bf16 %v967_v37, %v966_v36  ;;  %v950_v39 = vld [vmem:[%s1922_s10 + $0x30] sm:$0xff] }
 0x63f   :  { %v962_v48 = vld [vmem:[%s1922_s10 + $0x90] sm:$0xff]  ;;  %v963_v49 = vld [vmem:[%s1922_s10 + $0x98] sm:$0xff] }
 0x640   :  { %1245 = vmatmul.mubr.bf16.vlgmr.msra.gmra.mxu0 %v704_v53  ;;  %v838_v53 = vpack.c.bf16 %v807_v51, %v805_v50  ;;  %v987_v50 = vpack.c.bf16 %v963_v49, %v962_v48  ;;  %v946_v51 = vld [vmem:[%s1922_s10 + $0x10] sm:$0xff]  ;;  %v1101_v48 = vld [vmem:[%s1924_s11] ss:$0 sm:$0xff] }
 0x700   :  { %v754_v55 = vpop.f32.mrf.mxu0 }
 0x701   :  { %v755_v56 = vadd.f32 %v1098_v54, %v754_v55  ;;  %v806_v55 = vld [vmem:[%s1919_s8 + $0x10] sm:$0xff] }
 0x702   :  { %v1246_v57 = vpop.f32.mrf.mxu0 }
 0x703   :  { %v761_v58 = vadd.f32 %v755_v56, %v1509_v5  ;;  %v852_v5 = vpack.c.bf16 %v835_v46, %v833_v26 }
 0x704   :  { %v757_v59 = vpop.f32.mrf.mxu0 }
 0x705   :  { %v758_v60 = vadd.f32 %v1098_v54, %v757_v59  ;;  %765 = vadd.xlane.f32.xlu0 %v761_v58  ;;  %865 = vmatprep.subr.bf16.mxu1 %v852_v5  ;;  %v804_v54 = vld [vmem:[%s1919_s8] sm:$0xff] }
 0x706   :  { %v1247_v61 = vpop.f32.mrf.mxu0  ;;  %866 = vmatpush1.bf16.msra.mxu1 %v851_v1  ;;  %v837_v56 = vpack.c.bf16 %v806_v55, %v804_v54  ;;  %v960_v54 = vld [vmem:[%s1922_s10 + $0x80] sm:$0xff]  ;;  %v961_v55 = vld [vmem:[%s1922_s10 + $0x88] sm:$0xff] }
 0x707   :  { %v762_v62 = vadd.f32 %v758_v60, %v1514_v6  ;;  %867 = vmatprep.subr.bf16.mxu1 %v850_v3  ;;  %v985_v3 = vpack.c.bf16 %v959_v14, %v958_v13 }
 0x709   :  { %767 = vadd.xlane.f32.xlu1 %v762_v62 }
 0x70a   :  { %868 = vmatpush1.bf16.msra.mxu1 %v849_v18  ;;  %v992_v18 = vpack.c.bf16 %v973_v16, %v972_v15 }
 0x70b   :  { %869 = vmatprep.subr.bf16.mxu1 %v848_v22  ;;  %v984_v22 = vpack.c.bf16 %v957_v21, %v956_v20 }
 0x70e   :  { %870 = vmatpush1.bf16.msra.mxu1 %v847_v25  ;;  %v991_v25 = vpack.c.bf16 %v971_v24, %v970_v23 }
 0x70f   :  { %871 = vmatprep.subr.bf16.mxu1 %v846_v30  ;;  %v968_v30 = vld [vmem:[%s1922_s10 + $0xc0] sm:$0xff] }
 0x710   :  { %v990_v32 = vpack.c.bf16 %v969_v31, %v968_v30 }
 0x712   :  { %872 = vmatpush1.bf16.msra.mxu1 %v845_v34  ;;  %v953_v34 = vld [vmem:[%s1922_s10 + $0x48] sm:$0xff] }
 0x713   :  { %873 = vmatprep.subr.bf16.mxu1 %v844_v35  ;;  %v982_v35 = vpack.c.bf16 %v953_v34, %v952_v33 }
 0x716   :  { %874 = vmatpush1.bf16.msra.mxu1 %v843_v40  ;;  %v951_v40 = vld [vmem:[%s1922_s10 + $0x38] sm:$0xff] }
 0x717   :  { %875 = vmatprep.subr.bf16.mxu1 %v842_v41  ;;  %v981_v41 = vpack.c.bf16 %v951_v40, %v950_v39 }
 0x71a   :  { %876 = vmatpush1.bf16.msra.mxu1 %v841_v45  ;;  %v949_v45 = vld [vmem:[%s1922_s10 + $0x28] sm:$0xff] }
 0x71b   :  { %877 = vmatprep.subr.bf16.mxu1 %v840_v47  ;;  %v980_v47 = vpack.c.bf16 %v949_v45, %v948_v44 }
 0x71e   :  { %878 = vmatpush1.bf16.msra.mxu1 %v839_v52  ;;  %v947_v52 = vld [vmem:[%s1922_s10 + $0x18] sm:$0xff] }
 0x71f   :  { %879 = vmatprep.subr.bf16.mxu1 %v838_v53  ;;  %v979_v53 = vpack.c.bf16 %v947_v52, %v946_v51 }
 0x722   :  { %880 = vmatpush1.bf16.msra.mxu1 %v837_v56  ;;  %v944_v56 = vld [vmem:[%s1922_s10] sm:$0xff] }
 0x78e   :  { %v766_v6 = vpop.xlane.xlu0 %765 }
 0x78f   :  { %v770_v2 = vmul.f32 0.0078125, %v766_v6  ;;  %v1100_v6 = vld [vmem:[%s1921_s7] ss:$0 sm:$0xff] }
 0x791   :  { %v1689_v7 = vsub.f32 %v761_v58, %v770_v2 }
 0x792   :  { %v768_v8 = vpop.xlane.xlu1 %767 }
 0x793   :  { %v771_v9 = vmul.f32 0.0078125, %v768_v8  ;;  %v774_v10 = vmul.f32 %v1689_v7, %v1689_v7 }
 0x795   :  { %v1693_v11 = vsub.f32 %v762_v62, %v771_v9  ;;  %776 = vadd.xlane.f32.xlu0 %v774_v10  ;;  %v974_v10 = vld [vmem:[%s1922_s10 + $0xf0] sm:$0xff] }
 0x797   :  { %v775_v12 = vmul.f32 %v1693_v11, %v1693_v11 }
 0x799   :  { %778 = vadd.xlane.f32.xlu0 %v775_v12 }
 0x81e   :  { %v777_v57 = vpop.xlane.xlu0 %776 }
 0x81f   :  { %v780_v58 = vmul.f32 0.0078125, %v777_v57  ;;  %v986_v57 = vpack.c.bf16 %v961_v55, %v960_v54 }
 0x821   :  { %v782_v59 = vadd.f32 1e-05, %v780_v58  ;;  %v945_v58 = vld [vmem:[%s1922_s10 + $0x8] sm:$0xff] }
 0x822   :  { %v779_v60 = vpop.xlane.xlu0 %778 }
 0x823   :  { %1273 = vrsqrt.f32 %v782_v59  ;;  %v781_v61 = vmul.f32 0.0078125, %v779_v60  ;;  %v978_v59 = vpack.c.bf16 %v945_v58, %v944_v56  ;;  %v853_v60 = vld [vmem:[%s1923_s9] sm:$0x3] }
 0x825   :  { %v783_v62 = vadd.f32 1e-05, %v781_v61  ;;  %v858_v61 = vrot.slane %v853_v60, %v1541_v17 }
 0x827   :  { %1275 = vrsqrt.f32 %v783_v62  ;;  %v862_v62 = vrot.slane %v853_v60, %v1546_v19 }
 0x830   :  { %v1274_v26 = vpop.eup %1273 }
 0x831   :  { %v786_v46 = vmul.f32 %v1274_v26, %v1689_v7 }
 0x833   :  { %v794_v1 = vmul.f32 %v1099_v63, %v786_v46 }
 0x834   :  { %v1276_v5 = vpop.eup %1275 }
 0x835   :  { %v787_v0 = vmul.f32 %v1276_v5, %v1693_v11  ;;  %v1789_v8 = vadd.f32 %v1100_v6, %v794_v1  ;;  %v975_v11 = vld [vmem:[%s1922_s10 + $0xf8] sm:$0xff] }
 0x836   :  { %v993_v12 = vpack.c.bf16 %v975_v11, %v974_v10 }
 0x837   :  { %v795_v2 = vmul.f32 %v1099_v63, %v787_v0 }
 0x838   :  { %1138 = vmatprep.subr.bf16.mxu0 %v993_v12 }
 0x839   :  { %v1791_v9 = vadd.f32 %v1100_v6, %v795_v2  ;;  %1139 = vmatpush3.bf16.msra.mxu0 %v985_v3 }
 0x83a   :  { %1140 = vmatprep.subr.bf16.mxu0 %v992_v18 }
 0x83b   :  { %v836_v7 = vpack.c.bf16 %v1791_v9, %v1789_v8 }
 0x83d   :  { %898 = vmatmul.mubr.bf16.vlgmr.msra.gmra.mxu1 %v836_v7  ;;  %1141 = vmatpush3.bf16.msra.mxu0 %v984_v22 }
 0x83e   :  { %1142 = vmatprep.subr.bf16.mxu0 %v991_v25 }
 0x841   :  { %1143 = vmatpush3.bf16.msra.mxu0 %v983_v29 }
 0x842   :  { %1144 = vmatprep.subr.bf16.mxu0 %v990_v32 }
 0x845   :  { %1145 = vmatpush3.bf16.msra.mxu0 %v982_v35 }
 0x846   :  { %1146 = vmatprep.subr.bf16.mxu0 %v989_v38 }
 0x849   :  { %1147 = vmatpush3.bf16.msra.mxu0 %v981_v41 }
 0x84a   :  { %1148 = vmatprep.subr.bf16.mxu0 %v988_v4 }
 0x84d   :  { %1149 = vmatpush3.bf16.msra.mxu0 %v980_v47 }
 0x84e   :  { %1150 = vmatprep.subr.bf16.mxu0 %v987_v50 }
 0x851   :  { %1151 = vmatpush3.bf16.msra.mxu0 %v979_v53 }
 0x852   :  { %1152 = vmatprep.subr.bf16.mxu0 %v986_v57 }
 0x855   :  { %1153 = vmatpush3.bf16.msra.mxu0 %v978_v59 }
 0x8fd   :  { %v899_v26 = vpop.f32.mrf.mxu1 }
 0x8fe   :  { %v900_v46 = vadd.f32 %v899_v26, %v858_v61 }
 0x8ff   :  { %v901_v63 = vpop.f32.mrf.mxu1 }
 0x900   :  { %v908_v5 = vmul.f32 %v900_v46, %v900_v46  ;;  %v902_v0 = vadd.f32 %v901_v63, %v862_v62 }
 0x901   :  { %v903_v1 = vpop.f32.mrf.mxu1 }
 0x902   :  { %v912_v6 = vmul.f32 %v908_v5, %v900_v46  ;;  %v909_v2 = vmul.f32 %v902_v0, %v902_v0  ;;  %v904_v7 = vadd.f32 %v903_v1, %v858_v61 }
 0x903   :  { %v905_v10 = vpop.f32.mrf.mxu1 }
 0x904   :  { %v916_v11 = vmul.f32 0.044715, %v912_v6  ;;  %v913_v12 = vmul.f32 %v909_v2, %v902_v0  ;;  %v910_v13 = vmul.f32 %v904_v7, %v904_v7  ;;  %v906_v14 = vadd.f32 %v905_v10, %v862_v62 }
 0x906   :  { %v920_v3 = vadd.f32 %v916_v11, %v900_v46  ;;  %v917_v15 = vmul.f32 0.044715, %v913_v12  ;;  %v914_v16 = vmul.f32 %v910_v13, %v904_v7  ;;  %v911_v17 = vmul.f32 %v906_v14, %v906_v14  ;;  %v1103_v11 = vld [vmem:[%s1926_s13] ss:$0 sm:$0xff] }
 0x908   :  { %v924_v18 = vmul.f32 0.7978846, %v920_v3  ;;  %v921_v19 = vadd.f32 %v917_v15, %v902_v0  ;;  %v918_v20 = vmul.f32 0.044715, %v914_v16  ;;  %v915_v21 = vmul.f32 %v911_v17, %v906_v14 }
 0x90a   :  { %v925_v22 = vmul.f32 0.7978846, %v921_v19  ;;  %v922_v23 = vadd.f32 %v918_v20, %v904_v7  ;;  %v919_v24 = vmul.f32 0.044715, %v915_v21  ;;  %1277 = vtanh.f32 %v924_v18 }
 0x90c   :  { %1279 = vtanh.f32 %v925_v22  ;;  %v926_v25 = vmul.f32 0.7978846, %v922_v23  ;;  %v923_v27 = vadd.f32 %v919_v24, %v906_v14 }
 0x90e   :  { %1281 = vtanh.f32 %v926_v25  ;;  %v927_v28 = vmul.f32 0.7978846, %v923_v27 }
 0x910   :  { %1283 = vtanh.f32 %v927_v28 }
 0x917   :  { %v1278_v29 = vpop.eup %1277 }
 0x918   :  { %v932_v33 = vadd.f32 1.0, %v1278_v29 }
 0x919   :  { %v1280_v30 = vpop.eup %1279 }
 0x91a   :  { %v933_v31 = vadd.f32 1.0, %v1280_v30  ;;  %v936_v39 = vmul.f32 0.5, %v932_v33 }
 0x91b   :  { %v1282_v32 = vpop.eup %1281 }
 0x91c   :  { %v934_v34 = vadd.f32 1.0, %v1282_v32  ;;  %v937_v38 = vmul.f32 0.5, %v933_v31  ;;  %v940_v4 = vmul.f32 %v936_v39, %v900_v46 }
 0x91d   :  { %v1284_v35 = vpop.eup %1283 }
 0x91e   :  { %v938_v36 = vmul.f32 0.5, %v934_v34  ;;  %v935_v37 = vadd.f32 1.0, %v1284_v35  ;;  %v941_v42 = vmul.f32 %v937_v38, %v902_v0 }
 0x920   :  { %v939_v40 = vmul.f32 0.5, %v935_v37  ;;  %v942_v41 = vmul.f32 %v938_v36, %v904_v7  ;;  %v1102_v7 = vld [vmem:[%s1925_s12] ss:$0 sm:$0xff] }
 0x922   :  { %v943_v43 = vmul.f32 %v939_v40, %v906_v14  ;;  %v976_v45 = vpack.c.bf16 %v942_v41, %v940_v4 }
 0x924   :  { %v977_v44 = vpack.c.bf16 %v943_v43, %v941_v42 }
 0x926   :  { %1033 = vmatprep.mubr.bf16.mxu0 %v977_v44 }
 0x927   :  { %1034 = vmatmul.mubr.bf16.vlgmr.msra.gmra.mxu0 %v976_v45 }
 0x9e7   :  { %v1154_v47 = vpop.f32.mrf.mxu0 }
 0x9e9   :  { %v1155_v49 = vpop.f32.mrf.mxu0 }
 0x9ea   :  { %v1156_v50 = vadd.f32 %v1155_v49, %v1154_v47 }
 0x9eb   :  { %v1157_v51 = vpop.f32.mrf.mxu0 }
 0x9ec   :  { %v1036_v52 = vadd.f32 %v1156_v50, %v1101_v48 }
 0x9ed   :  { %v1158_v53 = vpop.f32.mrf.mxu0 }
 0x9ee   :  { %v1159_v54 = vadd.f32 %v1158_v53, %v1157_v51  ;;  %v1042_v55 = vadd.f32 %v1036_v52, %v1789_v8 }
 0x9f0   :  { %v1039_v56 = vadd.f32 %v1159_v54, %v1101_v48  ;;  %1046 = vadd.xlane.f32.xlu1 %v1042_v55 }
 0x9f2   :  { %v1043_v57 = vadd.f32 %v1039_v56, %v1791_v9 }
 0x9f4   :  { %1048 = vadd.xlane.f32.xlu0 %v1043_v57 }
 0xa79   :  { %v1047_v58 = vpop.xlane.xlu1 %1046 }
 0xa7a   :  { %v1050_v59 = vmul.f32 0.0078125, %v1047_v58 }
 0xa7c   :  { %v1052_v60 = vsub.f32 %v1042_v55, %v1050_v59 }
 0xa7d   :  { %v1049_v61 = vpop.xlane.xlu0 %1048 }
 0xa7e   :  { %v1051_v62 = vmul.f32 0.0078125, %v1049_v61  ;;  %v1054_v26 = vmul.f32 %v1052_v60, %v1052_v60 }
 0xa80   :  { %v1053_v46 = vsub.f32 %v1043_v57, %v1051_v62  ;;  %1056 = vadd.xlane.f32.xlu1 %v1054_v26 }
 0xa82   :  { %v1055_v63 = vmul.f32 %v1053_v46, %v1053_v46 }
 0xa84   :  { %1058 = vadd.xlane.f32.xlu0 %v1055_v63 }
 0xb09   :  { %v1057_v5 = vpop.xlane.xlu1 %1056 }
 0xb0a   :  { %v1060_v0 = vmul.f32 0.0078125, %v1057_v5 }
 0xb0c   :  { %v1062_v1 = vadd.f32 1e-05, %v1060_v0 }
 0xb0d   :  { %v1059_v6 = vpop.xlane.xlu0 %1058 }
 0xb0e   :  { %1285 = vrsqrt.f32 %v1062_v1  ;;  %v1061_v8 = vmul.f32 0.0078125, %v1059_v6 }
 0xb10   :  { %v1063_v2 = vadd.f32 1e-05, %v1061_v8 }
 0xb12   :  { %1287 = vrsqrt.f32 %v1063_v2 }
 0xb1b   :  { %v1286_v9 = vpop.eup %1285 }
 0xb1c   :  { %v1066_v10 = vmul.f32 %v1286_v9, %v1052_v60 }
 0xb1e   :  { %v1074_v12 = vmul.f32 %v1102_v7, %v1066_v10 }
 0xb1f   :  { %v1288_v13 = vpop.eup %1287 }
 0xb20   :  { %v1082_v14 = vadd.f32 %v1103_v11, %v1074_v12  ;;  %v1067_v3 = vmul.f32 %v1288_v13, %v1053_v46 }
 0xb22   :  { %1084 = vst [vmem:[%s1927_s14] sm:$0xff] %v1082_v14  ;;  %v1075_v15 = vmul.f32 %v1102_v7, %v1067_v3 }
 0xb24   :  { %v1083_v16 = vadd.f32 %v1103_v11, %v1075_v15 }
 0xb26   :  { %1085 = vst [vmem:[%s1927_s14 + $0x8] sm:$0xff] %v1083_v16 }

</bundles_post_ra>
